<compile_context>
chip_gen: v5e
topology: v5e:2x2
jax: 0.10.0
libtpu: 0.0.40
codegen_flags: <defaults>
</compile_context>

<pallas_src>
import functools

import jax
import jax.numpy as jnp
from jax.experimental import pallas as pl
from jax.experimental.pallas import tpu as pltpu

# ---------------------------------------------------------------------------
# Problem sizes (small, consistent with the module's __init__)
# ---------------------------------------------------------------------------
BATCH = 8
HIDDEN_DIM = 32
NUM_BELIEF_STATES = 16
NUM_LAYERS = 4
H2 = HIDDEN_DIM // 2          # coupling-MLP hidden width (16)
FUSED_H = 2 * H2              # 32: concatenated [scale|translate] hidden width
DEFAULT_FOLD = 4              # lane-fold factor (use 2 on v5e's 128-wide MXU)

_PREC = jax.lax.Precision.HIGHEST   # pin f32 matmul precision everywhere


# ---------------------------------------------------------------------------
# Pallas kernel: all coupling layers (fused scale+translate), projection, softmax
# ---------------------------------------------------------------------------
def _belief_head_kernel(x_ref, w1_ref, w2_ref, w3_ref, misc_ref, proj_ref,
                        seg_ref, out_ref, *, fold):
    fh = fold * HIDDEN_DIM          # folded feature width (== folded fused-hidden)
    z = x_ref[...].astype(jnp.float32)

    # num_layers is small & static -> unrolled Python loop (sequential data dep).
    for l in range(NUM_LAYERS):
        misc = misc_ref[l]                       # (8, 2*fh): aligned (8,128) tiles
        b1 = misc[0:1, 0:fh]                     # [sb1|tb1] tiled per fold
        b2 = misc[1:2, 0:fh]                     # [sb2|tb2] tiled per fold
        b3 = misc[2:3, :]                        # [sb3*F | tb3*F]
        mask = misc[3:4, 0:fh]                   # mask tiled per fold
        inv_mask = misc[4:5, 0:fh]               # precomputed (1 - mask)

        zm = z * mask                            # x * mask (reused in output)

        # fused scale|translate MLP (block-diagonal folded weights): 3 MXU dots
        h = jnp.dot(zm, w1_ref[l], preferred_element_type=jnp.float32,
                    precision=_PREC) + b1
        h = jnp.maximum(h, 0.0)
        h = jnp.dot(h, w2_ref[l], preferred_element_type=jnp.float32,
                    precision=_PREC) + b2
        h = jnp.maximum(h, 0.0)
        st = jnp.dot(h, w3_ref[l], preferred_element_type=jnp.float32,
                     precision=_PREC) + b3       # (tb, 2*fh): [scale | translate]

        scale = jnp.tanh(st[:, 0:fh])
        translate = st[:, fh:2 * fh]

        # y = x*mask + (1-mask) * (x * exp(scale) + translate)
        z = zm + inv_mask * (z * jnp.exp(scale) + translate)

    # discrete_belief_projection (block-diagonal folded) + per-segment softmax
    pw = proj_ref[0:fh, :]
    pb = proj_ref[fh:fh + 1, :]
    logits = jnp.dot(z, pw, preferred_element_type=jnp.float32,
                     precision=_PREC) + pb       # (tb, fold*NUM_BELIEF_STATES)

    # Global row max: within each 16-lane segment the same constant is
    # subtracted, and softmax is shift-invariant per segment -> exact.
    m = jnp.max(logits, axis=-1, keepdims=True)
    e = jnp.exp(logits - m)
    # Segmented sums broadcast back to every lane via block-diag ones matmul.
    s = jnp.dot(e, seg_ref[...], preferred_element_type=jnp.float32,
                precision=_PREC)
    # EUP approx reciprocal + one Newton step: ~2^-24 relative error, keeps the
    # divide off the VALU (the exact-divide path would also be correct).
    r = pl.reciprocal(s, approx=True)
    r = r * (2.0 - s * r)
    out_ref[...] = e * r


# ---------------------------------------------------------------------------
# Wrapper
# ---------------------------------------------------------------------------
def _pick_batch_tile(rows, batch_block):
    """Rows per grid step: multiple of 8 that divides `rows`, <= batch_block,
    and >=2 grid steps when possible so both v7x TensorCores get work."""
    if rows % 8 != 0 or rows <= 8:
        return rows                    # single block == full array (always legal)
    cap = min(batch_block, rows)
    if rows >= 16:
        cap = min(cap, rows // 2)      # ensure at least 2 parallel grid steps
    tb = cap - cap % 8
    while tb > 8 and rows % tb:
        tb -= 8
    return tb if rows % tb == 0 else rows


def belief_head_forward(x, packed, *, batch_block=1024):
    B, H = x.shape
    assert H == HIDDEN_DIM
    fold = int(packed["fold"])

    # Pad batch so it folds cleanly (and, for larger batches, so the folded row
    # count is a multiple of 8 sublanes). Padded rows are sliced off at the end.
    unit = fold * 8 if B >= fold * 8 else fold
    pad = (-B) % unit
    if pad:
        x = jnp.concatenate([x, jnp.zeros((pad, H), x.dtype)], axis=0)
    rows = (B + pad) // fold
    xf = x.reshape(rows, fold * H)               # lane-folded activations

    tb = _pick_batch_tile(rows, batch_block)
    grid = (rows // tb,)

    w1, w2, w3, misc, proj, seg = (packed[k] for k in
                                   ("w1", "w2", "w3", "misc", "proj", "seg"))

    # Honest cost hint so XLA can overlap this small custom call.
    flops = 2 * (B + pad) * (
        NUM_LAYERS * (HIDDEN_DIM * FUSED_H + FUSED_H * FUSED_H
                      + FUSED_H * 2 * HIDDEN_DIM)
        + HIDDEN_DIM * NUM_BELIEF_STATES
        + NUM_BELIEF_STATES * NUM_BELIEF_STATES)
    transcendentals = (B + pad) * (NUM_LAYERS * 2 * HIDDEN_DIM + NUM_BELIEF_STATES)
    bytes_accessed = 4 * (xf.size + w1.size + w2.size + w3.size + misc.size
                          + proj.size + seg.size
                          + rows * fold * NUM_BELIEF_STATES)

    def full_spec(a):
        nd = a.ndim
        return pl.BlockSpec(a.shape, lambda i: (0,) * nd)

    out = pl.pallas_call(
        functools.partial(_belief_head_kernel, fold=fold),
        out_shape=jax.ShapeDtypeStruct((rows, fold * NUM_BELIEF_STATES),
                                       jnp.float32),
        grid=grid,
        in_specs=[
            pl.BlockSpec((tb, fold * H), lambda i: (i, 0)),   # folded activations
            full_spec(w1), full_spec(w2), full_spec(w3),       # weight slabs
            full_spec(misc), full_spec(proj), full_spec(seg),  # biases/masks, proj, seg-ones
        ],
        out_specs=pl.BlockSpec((tb, fold * NUM_BELIEF_STATES), lambda i: (i, 0)),
        compiler_params=pltpu.CompilerParams(dimension_semantics=("parallel",)),
        cost_estimate=pl.CostEstimate(flops=flops, transcendentals=transcendentals,
                                      bytes_accessed=bytes_accessed),
    )(xf, w1, w2, w3, misc, proj, seg)

    return out.reshape(rows * fold, NUM_BELIEF_STATES)[:B]


# ---------------------------------------------------------------------------
# Deterministic parameter construction (synthetic, PyTorch-Linear-like init)
# ---------------------------------------------------------------------------
def _linear_params(key, in_f, out_f):
    """(W_transposed (in,out), b (out,)) with uniform(-1/sqrt(in), 1/sqrt(in))."""
    kw, kb = jax.random.split(key)
    bound = 1.0 / jnp.sqrt(jnp.float32(in_f))
    w = jax.random.uniform(kw, (in_f, out_f), jnp.float32, -bound, bound)
    b = jax.random.uniform(kb, (out_f,), jnp.float32, -bound, bound)
    return w, b


def make_raw_params(key):
    keys = jax.random.split(key, NUM_LAYERS * 6 + 1)

    masks = []
    for i in range(NUM_LAYERS):
        m = jnp.zeros((HIDDEN_DIM,), jnp.float32)
        m = m.at[0::2].set(1.0 if i % 2 == 0 else 0.0)
        m = m.at[1::2].set(0.0 if i % 2 == 0 else 1.0)
        masks.append(m)
    masks = jnp.stack(masks)  # (L, H)

    layers = []
    for l in range(NUM_LAYERS):
        base = 6 * l
        sw1, sb1 = _linear_params(keys[base + 0], HIDDEN_DIM, H2)
        sw2, sb2 = _linear_params(keys[base + 1], H2, H2)
        sw3, sb3 = _linear_params(keys[base + 2], H2, HIDDEN_DIM)
        tw1, tb1 = _linear_params(keys[base + 3], HIDDEN_DIM, H2)
        tw2, tb2 = _linear_params(keys[base + 4], H2, H2)
        tw3, tb3 = _linear_params(keys[base + 5], H2, HIDDEN_DIM)
        layers.append(dict(sw1=sw1, sb1=sb1, sw2=sw2, sb2=sb2, sw3=sw3, sb3=sb3,
                           tw1=tw1, tb1=tb1, tw2=tw2, tb2=tb2, tw3=tw3, tb3=tb3))

    pw, pb = _linear_params(keys[-1], HIDDEN_DIM, NUM_BELIEF_STATES)
    return dict(masks=masks, layers=layers, pw=pw, pb=pb)


def _block_diag(block, n):
    """n-fold block-diagonal replica of a 2-D block (host-side packing only)."""
    r, c = block.shape
    out = jnp.zeros((n * r, n * c), jnp.float32)
    for i in range(n):
        out = out.at[i * r:(i + 1) * r, i * c:(i + 1) * c].set(block)
    return out


def pack_params(raw, fold=DEFAULT_FOLD):
    """Pack per-layer scale/translate nets into fused, lane-folded block-diagonal
    slabs. Per fold: w1=[sw1|tw1], w2=blockdiag(sw2,tw2), w3 split so the folded
    output layout is [all scale columns | all translate columns]."""
    F = fold
    H, NBS = HIDDEN_DIM, NUM_BELIEF_STATES
    fh = F * H
    z_h2 = jnp.zeros((H2, H2), jnp.float32)
    z_h = jnp.zeros((H2, H), jnp.float32)

    w1s, w2s, w3s, miscs = [], [], [], []
    for l, p in enumerate(raw["layers"]):
        w1 = jnp.concatenate([p["sw1"], p["tw1"]], axis=1)          # (H, 2*H2)
        w2 = jnp.block([[p["sw2"], z_h2], [z_h2, p["tw2"]]])        # (2*H2, 2*H2)
        w3_scale = jnp.concatenate([p["sw3"], z_h], axis=0)         # (2*H2, H)
        w3_trans = jnp.concatenate([z_h, p["tw3"]], axis=0)         # (2*H2, H)

        w1s.append(_block_diag(w1, F))                              # (fh, fh)
        w2s.append(_block_diag(w2, F))                              # (fh, fh)
        w3s.append(jnp.concatenate([_block_diag(w3_scale, F),
                                    _block_diag(w3_trans, F)], axis=1))  # (fh, 2*fh)

        b1 = jnp.tile(jnp.concatenate([p["sb1"], p["tb1"]]), F)     # (fh,)
        b2 = jnp.tile(jnp.concatenate([p["sb2"], p["tb2"]]), F)     # (fh,)
        b3 = jnp.concatenate([jnp.tile(p["sb3"], F),
                              jnp.tile(p["tb3"], F)])               # (2*fh,)
        mask = jnp.tile(raw["masks"][l], F)                         # (fh,)

        misc = jnp.zeros((8, 2 * fh), jnp.float32)                  # aligned 8-row slab
        misc = misc.at[0, 0:fh].set(b1)
        misc = misc.at[1, 0:fh].set(b2)
        misc = misc.at[2, :].set(b3)
        misc = misc.at[3, 0:fh].set(mask)
        misc = misc.at[4, 0:fh].set(1.0 - mask)
        miscs.append(misc)

    proj = jnp.zeros((fh + 8, F * NBS), jnp.float32)
    proj = proj.at[0:fh, :].set(_block_diag(raw["pw"], F))
    proj = proj.at[fh, :].set(jnp.tile(raw["pb"], F))

    seg = _block_diag(jnp.ones((NBS, NBS), jnp.float32), F)         # segment-sum ones

    return dict(fold=F, w1=jnp.stack(w1s), w2=jnp.stack(w2s), w3=jnp.stack(w3s),
                misc=jnp.stack(miscs), proj=proj, seg=seg)


# ---------------------------------------------------------------------------
# Pure-JAX reference (mirrors the PyTorch forward exactly, unfused weights)
# ---------------------------------------------------------------------------
def reference_forward(x, raw):
    dot = functools.partial(jnp.dot, precision=_PREC)
    z = x
    for l, p in enumerate(raw["layers"]):
        mask = raw["masks"][l][None, :]
        zm = z * mask
        h = jnp.maximum(dot(zm, p["sw1"]) + p["sb1"], 0.0)
        h = jnp.maximum(dot(h, p["sw2"]) + p["sb2"], 0.0)
        scale = jnp.tanh(dot(h, p["sw3"]) + p["sb3"])
        g = jnp.maximum(dot(zm, p["tw1"]) + p["tb1"], 0.0)
        g = jnp.maximum(dot(g, p["tw2"]) + p["tb2"], 0.0)
        translate = dot(g, p["tw3"]) + p["tb3"]
        z = zm + (1.0 - mask) * (z * jnp.exp(scale) + translate)
    logits = dot(z, raw["pw"]) + raw["pb"]
    return jax.nn.softmax(logits, axis=-1)


# ---------------------------------------------------------------------------
if __name__ == "__main__":
    key = jax.random.PRNGKey(0)
    kx, kp = jax.random.split(key)

    x = jax.random.normal(kx, (BATCH, HIDDEN_DIM), jnp.float32)
    raw = make_raw_params(kp)
    packed = pack_params(raw, fold=DEFAULT_FOLD)

    out = belief_head_forward(x, packed)
    out = jax.block_until_ready(out)

    ref = reference_forward(x, raw)
    assert out.shape == (BATCH, NUM_BELIEF_STATES)
    assert jnp.allclose(out, ref, atol=1e-5, rtol=1e-5), "mismatch vs reference"
    assert jnp.allclose(jnp.sum(out, axis=-1), 1.0, atol=1e-5), "softmax rows != 1"

    # TODO(synk): inverse() uses torch.linalg.lstsq (general least-squares solve)
    # and log_prob() needs the Normal base log-density + log-det accumulation;
    # only the discrete forward() path (is_continuous=False) is implemented here.
    print("KERNEL_OK")
</pallas_src>

<mosaic_0001>
module attributes {stable_mosaic.version = 11 : i64} {
  func.func @_belief_head_kernel(%arg0: i32, %arg1: memref<2x128xf32, #tpu.memory_space<vmem>>, %arg2: memref<4x128x128xf32, #tpu.memory_space<vmem>>, %arg3: memref<4x128x128xf32, #tpu.memory_space<vmem>>, %arg4: memref<4x128x256xf32, #tpu.memory_space<vmem>>, %arg5: memref<4x8x256xf32, #tpu.memory_space<vmem>>, %arg6: memref<136x64xf32, #tpu.memory_space<vmem>>, %arg7: memref<64x64xf32, #tpu.memory_space<vmem>>, %arg8: memref<2x64xf32, #tpu.memory_space<vmem>>) attributes {dimension_semantics = [#tpu.dimension_semantics<parallel>], iteration_bounds = array<i64: 1>, scalar_prefetch = 0 : i64, scratch_operands = 0 : i64, tpu.core_type = #tpu.core_type<tc>, window_params = [{transform_indices = @transform_0, window_bounds = array<i64: 2, 128>}, {pipeline_mode = #tpu.pipeline_mode<synchronous>, transform_indices = @transform_1, window_bounds = array<i64: 4, 128, 128>}, {pipeline_mode = #tpu.pipeline_mode<synchronous>, transform_indices = @transform_2, window_bounds = array<i64: 4, 128, 128>}, {pipeline_mode = #tpu.pipeline_mode<synchronous>, transform_indices = @transform_3, window_bounds = array<i64: 4, 128, 256>}, {pipeline_mode = #tpu.pipeline_mode<synchronous>, transform_indices = @transform_4, window_bounds = array<i64: 4, 8, 256>}, {pipeline_mode = #tpu.pipeline_mode<synchronous>, transform_indices = @transform_5, window_bounds = array<i64: 136, 64>}, {pipeline_mode = #tpu.pipeline_mode<synchronous>, transform_indices = @transform_6, window_bounds = array<i64: 64, 64>}, {transform_indices = @transform_7, window_bounds = array<i64: 2, 64>}]} {
    %c0 = arith.constant 0 : index
    %c0_0 = arith.constant 0 : index
    %0 = vector.load %arg1[%c0, %c0_0] : memref<2x128xf32, #tpu.memory_space<vmem>>, vector<2x128xf32>
    %c0_1 = arith.constant 0 : index
    %c0_2 = arith.constant 0 : index
    %c0_3 = arith.constant 0 : index
    %1 = vector.load %arg5[%c0_1, %c0_2, %c0_3] : memref<4x8x256xf32, #tpu.memory_space<vmem>>, vector<1x8x256xf32>
    %2 = vector.shape_cast %1 : vector<1x8x256xf32> to vector<8x256xf32>
    %3 = vector.extract_strided_slice %2 {offsets = [0, 0], sizes = [1, 128], strides = [1, 1]} : vector<8x256xf32> to vector<1x128xf32>
    %4 = vector.extract_strided_slice %2 {offsets = [1, 0], sizes = [1, 128], strides = [1, 1]} : vector<8x256xf32> to vector<1x128xf32>
    %5 = vector.extract_strided_slice %2 {offsets = [2, 0], sizes = [1, 256], strides = [1, 1]} : vector<8x256xf32> to vector<1x256xf32>
    %6 = vector.extract_strided_slice %2 {offsets = [3, 0], sizes = [1, 128], strides = [1, 1]} : vector<8x256xf32> to vector<1x128xf32>
    %7 = vector.extract_strided_slice %2 {offsets = [4, 0], sizes = [1, 128], strides = [1, 1]} : vector<8x256xf32> to vector<1x128xf32>
    %8 = vector.broadcast %6 : vector<1x128xf32> to vector<2x128xf32>
    %9 = arith.mulf %0, %8 : vector<2x128xf32>
    %c0_4 = arith.constant 0 : index
    %c0_5 = arith.constant 0 : index
    %c0_6 = arith.constant 0 : index
    %10 = vector.load %arg2[%c0_4, %c0_5, %c0_6] : memref<4x128x128xf32, #tpu.memory_space<vmem>>, vector<1x128x128xf32>
    %11 = vector.shape_cast %10 : vector<1x128x128xf32> to vector<128x128xf32>
    %cst = arith.constant dense<0.000000e+00> : vector<2x128xf32>
    %12 = tpu.matmul %9, %11, %cst {dimension_numbers = #tpu.dot_dimension_numbers<[1], [0], [0], [1], [0, 0, 1, 1], [], []>, precision = #tpu.contract_precision<fp32>} : vector<2x128xf32>, vector<128x128xf32>, vector<2x128xf32> -> vector<2x128xf32>
    %13 = vector.broadcast %3 : vector<1x128xf32> to vector<2x128xf32>
    %14 = arith.addf %12, %13 : vector<2x128xf32>
    %cst_7 = arith.constant 0.000000e+00 : f32
    %15 = vector.broadcast %cst_7 : f32 to vector<2x128xf32>
    %16 = arith.maximumf %14, %15 : vector<2x128xf32>
    %c0_8 = arith.constant 0 : index
    %c0_9 = arith.constant 0 : index
    %c0_10 = arith.constant 0 : index
    %17 = vector.load %arg3[%c0_8, %c0_9, %c0_10] : memref<4x128x128xf32, #tpu.memory_space<vmem>>, vector<1x128x128xf32>
    %18 = vector.shape_cast %17 : vector<1x128x128xf32> to vector<128x128xf32>
    %cst_11 = arith.constant dense<0.000000e+00> : vector<2x128xf32>
    %19 = tpu.matmul %16, %18, %cst_11 {dimension_numbers = #tpu.dot_dimension_numbers<[1], [0], [0], [1], [0, 0, 1, 1], [], []>, precision = #tpu.contract_precision<fp32>} : vector<2x128xf32>, vector<128x128xf32>, vector<2x128xf32> -> vector<2x128xf32>
    %20 = vector.broadcast %4 : vector<1x128xf32> to vector<2x128xf32>
    %21 = arith.addf %19, %20 : vector<2x128xf32>
    %cst_12 = arith.constant 0.000000e+00 : f32
    %22 = vector.broadcast %cst_12 : f32 to vector<2x128xf32>
    %23 = arith.maximumf %21, %22 : vector<2x128xf32>
    %c0_13 = arith.constant 0 : index
    %c0_14 = arith.constant 0 : index
    %c0_15 = arith.constant 0 : index
    %24 = vector.load %arg4[%c0_13, %c0_14, %c0_15] : memref<4x128x256xf32, #tpu.memory_space<vmem>>, vector<1x128x256xf32>
    %25 = vector.shape_cast %24 : vector<1x128x256xf32> to vector<128x256xf32>
    %cst_16 = arith.constant dense<0.000000e+00> : vector<2x256xf32>
    %26 = tpu.matmul %23, %25, %cst_16 {dimension_numbers = #tpu.dot_dimension_numbers<[1], [0], [0], [1], [0, 0, 1, 1], [], []>, precision = #tpu.contract_precision<fp32>} : vector<2x128xf32>, vector<128x256xf32>, vector<2x256xf32> -> vector<2x256xf32>
    %27 = vector.broadcast %5 : vector<1x256xf32> to vector<2x256xf32>
    %28 = arith.addf %26, %27 : vector<2x256xf32>
    %29 = vector.extract_strided_slice %28 {offsets = [0, 0], sizes = [2, 128], strides = [1, 1]} : vector<2x256xf32> to vector<2x128xf32>
    %30 = math.tanh %29 : vector<2x128xf32>
    %31 = vector.extract_strided_slice %28 {offsets = [0, 128], sizes = [2, 128], strides = [1, 1]} : vector<2x256xf32> to vector<2x128xf32>
    %32 = math.exp %30 : vector<2x128xf32>
    %33 = arith.mulf %0, %32 : vector<2x128xf32>
    %34 = arith.addf %33, %31 : vector<2x128xf32>
    %35 = vector.broadcast %7 : vector<1x128xf32> to vector<2x128xf32>
    %36 = arith.mulf %35, %34 : vector<2x128xf32>
    %37 = arith.addf %9, %36 : vector<2x128xf32>
    %c1 = arith.constant 1 : index
    %c0_17 = arith.constant 0 : index
    %c0_18 = arith.constant 0 : index
    %38 = vector.load %arg5[%c1, %c0_17, %c0_18] : memref<4x8x256xf32, #tpu.memory_space<vmem>>, vector<1x8x256xf32>
    %39 = vector.shape_cast %38 : vector<1x8x256xf32> to vector<8x256xf32>
    %40 = vector.extract_strided_slice %39 {offsets = [0, 0], sizes = [1, 128], strides = [1, 1]} : vector<8x256xf32> to vector<1x128xf32>
    %41 = vector.extract_strided_slice %39 {offsets = [1, 0], sizes = [1, 128], strides = [1, 1]} : vector<8x256xf32> to vector<1x128xf32>
    %42 = vector.extract_strided_slice %39 {offsets = [2, 0], sizes = [1, 256], strides = [1, 1]} : vector<8x256xf32> to vector<1x256xf32>
    %43 = vector.extract_strided_slice %39 {offsets = [3, 0], sizes = [1, 128], strides = [1, 1]} : vector<8x256xf32> to vector<1x128xf32>
    %44 = vector.extract_strided_slice %39 {offsets = [4, 0], sizes = [1, 128], strides = [1, 1]} : vector<8x256xf32> to vector<1x128xf32>
    %45 = vector.broadcast %43 : vector<1x128xf32> to vector<2x128xf32>
    %46 = arith.mulf %37, %45 : vector<2x128xf32>
    %c1_19 = arith.constant 1 : index
    %c0_20 = arith.constant 0 : index
    %c0_21 = arith.constant 0 : index
    %47 = vector.load %arg2[%c1_19, %c0_20, %c0_21] : memref<4x128x128xf32, #tpu.memory_space<vmem>>, vector<1x128x128xf32>
    %48 = vector.shape_cast %47 : vector<1x128x128xf32> to vector<128x128xf32>
    %cst_22 = arith.constant dense<0.000000e+00> : vector<2x128xf32>
    %49 = tpu.matmul %46, %48, %cst_22 {dimension_numbers = #tpu.dot_dimension_numbers<[1], [0], [0], [1], [0, 0, 1, 1], [], []>, precision = #tpu.contract_precision<fp32>} : vector<2x128xf32>, vector<128x128xf32>, vector<2x128xf32> -> vector<2x128xf32>
    %50 = vector.broadcast %40 : vector<1x128xf32> to vector<2x128xf32>
    %51 = arith.addf %49, %50 : vector<2x128xf32>
    %cst_23 = arith.constant 0.000000e+00 : f32
    %52 = vector.broadcast %cst_23 : f32 to vector<2x128xf32>
    %53 = arith.maximumf %51, %52 : vector<2x128xf32>
    %c1_24 = arith.constant 1 : index
    %c0_25 = arith.constant 0 : index
    %c0_26 = arith.constant 0 : index
    %54 = vector.load %arg3[%c1_24, %c0_25, %c0_26] : memref<4x128x128xf32, #tpu.memory_space<vmem>>, vector<1x128x128xf32>
    %55 = vector.shape_cast %54 : vector<1x128x128xf32> to vector<128x128xf32>
    %cst_27 = arith.constant dense<0.000000e+00> : vector<2x128xf32>
    %56 = tpu.matmul %53, %55, %cst_27 {dimension_numbers = #tpu.dot_dimension_numbers<[1], [0], [0], [1], [0, 0, 1, 1], [], []>, precision = #tpu.contract_precision<fp32>} : vector<2x128xf32>, vector<128x128xf32>, vector<2x128xf32> -> vector<2x128xf32>
    %57 = vector.broadcast %41 : vector<1x128xf32> to vector<2x128xf32>
    %58 = arith.addf %56, %57 : vector<2x128xf32>
    %cst_28 = arith.constant 0.000000e+00 : f32
    %59 = vector.broadcast %cst_28 : f32 to vector<2x128xf32>
    %60 = arith.maximumf %58, %59 : vector<2x128xf32>
    %c1_29 = arith.constant 1 : index
    %c0_30 = arith.constant 0 : index
    %c0_31 = arith.constant 0 : index
    %61 = vector.load %arg4[%c1_29, %c0_30, %c0_31] : memref<4x128x256xf32, #tpu.memory_space<vmem>>, vector<1x128x256xf32>
    %62 = vector.shape_cast %61 : vector<1x128x256xf32> to vector<128x256xf32>
    %cst_32 = arith.constant dense<0.000000e+00> : vector<2x256xf32>
    %63 = tpu.matmul %60, %62, %cst_32 {dimension_numbers = #tpu.dot_dimension_numbers<[1], [0], [0], [1], [0, 0, 1, 1], [], []>, precision = #tpu.contract_precision<fp32>} : vector<2x128xf32>, vector<128x256xf32>, vector<2x256xf32> -> vector<2x256xf32>
    %64 = vector.broadcast %42 : vector<1x256xf32> to vector<2x256xf32>
    %65 = arith.addf %63, %64 : vector<2x256xf32>
    %66 = vector.extract_strided_slice %65 {offsets = [0, 0], sizes = [2, 128], strides = [1, 1]} : vector<2x256xf32> to vector<2x128xf32>
    %67 = math.tanh %66 : vector<2x128xf32>
    %68 = vector.extract_strided_slice %65 {offsets = [0, 128], sizes = [2, 128], strides = [1, 1]} : vector<2x256xf32> to vector<2x128xf32>
    %69 = math.exp %67 : vector<2x128xf32>
    %70 = arith.mulf %37, %69 : vector<2x128xf32>
    %71 = arith.addf %70, %68 : vector<2x128xf32>
    %72 = vector.broadcast %44 : vector<1x128xf32> to vector<2x128xf32>
    %73 = arith.mulf %72, %71 : vector<2x128xf32>
    %74 = arith.addf %46, %73 : vector<2x128xf32>
    %c2 = arith.constant 2 : index
    %c0_33 = arith.constant 0 : index
    %c0_34 = arith.constant 0 : index
    %75 = vector.load %arg5[%c2, %c0_33, %c0_34] : memref<4x8x256xf32, #tpu.memory_space<vmem>>, vector<1x8x256xf32>
    %76 = vector.shape_cast %75 : vector<1x8x256xf32> to vector<8x256xf32>
    %77 = vector.extract_strided_slice %76 {offsets = [0, 0], sizes = [1, 128], strides = [1, 1]} : vector<8x256xf32> to vector<1x128xf32>
    %78 = vector.extract_strided_slice %76 {offsets = [1, 0], sizes = [1, 128], strides = [1, 1]} : vector<8x256xf32> to vector<1x128xf32>
    %79 = vector.extract_strided_slice %76 {offsets = [2, 0], sizes = [1, 256], strides = [1, 1]} : vector<8x256xf32> to vector<1x256xf32>
    %80 = vector.extract_strided_slice %76 {offsets = [3, 0], sizes = [1, 128], strides = [1, 1]} : vector<8x256xf32> to vector<1x128xf32>
    %81 = vector.extract_strided_slice %76 {offsets = [4, 0], sizes = [1, 128], strides = [1, 1]} : vector<8x256xf32> to vector<1x128xf32>
    %82 = vector.broadcast %80 : vector<1x128xf32> to vector<2x128xf32>
    %83 = arith.mulf %74, %82 : vector<2x128xf32>
    %c2_35 = arith.constant 2 : index
    %c0_36 = arith.constant 0 : index
    %c0_37 = arith.constant 0 : index
    %84 = vector.load %arg2[%c2_35, %c0_36, %c0_37] : memref<4x128x128xf32, #tpu.memory_space<vmem>>, vector<1x128x128xf32>
    %85 = vector.shape_cast %84 : vector<1x128x128xf32> to vector<128x128xf32>
    %cst_38 = arith.constant dense<0.000000e+00> : vector<2x128xf32>
    %86 = tpu.matmul %83, %85, %cst_38 {dimension_numbers = #tpu.dot_dimension_numbers<[1], [0], [0], [1], [0, 0, 1, 1], [], []>, precision = #tpu.contract_precision<fp32>} : vector<2x128xf32>, vector<128x128xf32>, vector<2x128xf32> -> vector<2x128xf32>
    %87 = vector.broadcast %77 : vector<1x128xf32> to vector<2x128xf32>
    %88 = arith.addf %86, %87 : vector<2x128xf32>
    %cst_39 = arith.constant 0.000000e+00 : f32
    %89 = vector.broadcast %cst_39 : f32 to vector<2x128xf32>
    %90 = arith.maximumf %88, %89 : vector<2x128xf32>
    %c2_40 = arith.constant 2 : index
    %c0_41 = arith.constant 0 : index
    %c0_42 = arith.constant 0 : index
    %91 = vector.load %arg3[%c2_40, %c0_41, %c0_42] : memref<4x128x128xf32, #tpu.memory_space<vmem>>, vector<1x128x128xf32>
    %92 = vector.shape_cast %91 : vector<1x128x128xf32> to vector<128x128xf32>
    %cst_43 = arith.constant dense<0.000000e+00> : vector<2x128xf32>
    %93 = tpu.matmul %90, %92, %cst_43 {dimension_numbers = #tpu.dot_dimension_numbers<[1], [0], [0], [1], [0, 0, 1, 1], [], []>, precision = #tpu.contract_precision<fp32>} : vector<2x128xf32>, vector<128x128xf32>, vector<2x128xf32> -> vector<2x128xf32>
    %94 = vector.broadcast %78 : vector<1x128xf32> to vector<2x128xf32>
    %95 = arith.addf %93, %94 : vector<2x128xf32>
    %cst_44 = arith.constant 0.000000e+00 : f32
    %96 = vector.broadcast %cst_44 : f32 to vector<2x128xf32>
    %97 = arith.maximumf %95, %96 : vector<2x128xf32>
    %c2_45 = arith.constant 2 : index
    %c0_46 = arith.constant 0 : index
    %c0_47 = arith.constant 0 : index
    %98 = vector.load %arg4[%c2_45, %c0_46, %c0_47] : memref<4x128x256xf32, #tpu.memory_space<vmem>>, vector<1x128x256xf32>
    %99 = vector.shape_cast %98 : vector<1x128x256xf32> to vector<128x256xf32>
    %cst_48 = arith.constant dense<0.000000e+00> : vector<2x256xf32>
    %100 = tpu.matmul %97, %99, %cst_48 {dimension_numbers = #tpu.dot_dimension_numbers<[1], [0], [0], [1], [0, 0, 1, 1], [], []>, precision = #tpu.contract_precision<fp32>} : vector<2x128xf32>, vector<128x256xf32>, vector<2x256xf32> -> vector<2x256xf32>
    %101 = vector.broadcast %79 : vector<1x256xf32> to vector<2x256xf32>
    %102 = arith.addf %100, %101 : vector<2x256xf32>
    %103 = vector.extract_strided_slice %102 {offsets = [0, 0], sizes = [2, 128], strides = [1, 1]} : vector<2x256xf32> to vector<2x128xf32>
    %104 = math.tanh %103 : vector<2x128xf32>
    %105 = vector.extract_strided_slice %102 {offsets = [0, 128], sizes = [2, 128], strides = [1, 1]} : vector<2x256xf32> to vector<2x128xf32>
    %106 = math.exp %104 : vector<2x128xf32>
    %107 = arith.mulf %74, %106 : vector<2x128xf32>
    %108 = arith.addf %107, %105 : vector<2x128xf32>
    %109 = vector.broadcast %81 : vector<1x128xf32> to vector<2x128xf32>
    %110 = arith.mulf %109, %108 : vector<2x128xf32>
    %111 = arith.addf %83, %110 : vector<2x128xf32>
    %c3 = arith.constant 3 : index
    %c0_49 = arith.constant 0 : index
    %c0_50 = arith.constant 0 : index
    %112 = vector.load %arg5[%c3, %c0_49, %c0_50] : memref<4x8x256xf32, #tpu.memory_space<vmem>>, vector<1x8x256xf32>
    %113 = vector.shape_cast %112 : vector<1x8x256xf32> to vector<8x256xf32>
    %114 = vector.extract_strided_slice %113 {offsets = [0, 0], sizes = [1, 128], strides = [1, 1]} : vector<8x256xf32> to vector<1x128xf32>
    %115 = vector.extract_strided_slice %113 {offsets = [1, 0], sizes = [1, 128], strides = [1, 1]} : vector<8x256xf32> to vector<1x128xf32>
    %116 = vector.extract_strided_slice %113 {offsets = [2, 0], sizes = [1, 256], strides = [1, 1]} : vector<8x256xf32> to vector<1x256xf32>
    %117 = vector.extract_strided_slice %113 {offsets = [3, 0], sizes = [1, 128], strides = [1, 1]} : vector<8x256xf32> to vector<1x128xf32>
    %118 = vector.extract_strided_slice %113 {offsets = [4, 0], sizes = [1, 128], strides = [1, 1]} : vector<8x256xf32> to vector<1x128xf32>
    %119 = vector.broadcast %117 : vector<1x128xf32> to vector<2x128xf32>
    %120 = arith.mulf %111, %119 : vector<2x128xf32>
    %c3_51 = arith.constant 3 : index
    %c0_52 = arith.constant 0 : index
    %c0_53 = arith.constant 0 : index
    %121 = vector.load %arg2[%c3_51, %c0_52, %c0_53] : memref<4x128x128xf32, #tpu.memory_space<vmem>>, vector<1x128x128xf32>
    %122 = vector.shape_cast %121 : vector<1x128x128xf32> to vector<128x128xf32>
    %cst_54 = arith.constant dense<0.000000e+00> : vector<2x128xf32>
    %123 = tpu.matmul %120, %122, %cst_54 {dimension_numbers = #tpu.dot_dimension_numbers<[1], [0], [0], [1], [0, 0, 1, 1], [], []>, precision = #tpu.contract_precision<fp32>} : vector<2x128xf32>, vector<128x128xf32>, vector<2x128xf32> -> vector<2x128xf32>
    %124 = vector.broadcast %114 : vector<1x128xf32> to vector<2x128xf32>
    %125 = arith.addf %123, %124 : vector<2x128xf32>
    %cst_55 = arith.constant 0.000000e+00 : f32
    %126 = vector.broadcast %cst_55 : f32 to vector<2x128xf32>
    %127 = arith.maximumf %125, %126 : vector<2x128xf32>
    %c3_56 = arith.constant 3 : index
    %c0_57 = arith.constant 0 : index
    %c0_58 = arith.constant 0 : index
    %128 = vector.load %arg3[%c3_56, %c0_57, %c0_58] : memref<4x128x128xf32, #tpu.memory_space<vmem>>, vector<1x128x128xf32>
    %129 = vector.shape_cast %128 : vector<1x128x128xf32> to vector<128x128xf32>
    %cst_59 = arith.constant dense<0.000000e+00> : vector<2x128xf32>
    %130 = tpu.matmul %127, %129, %cst_59 {dimension_numbers = #tpu.dot_dimension_numbers<[1], [0], [0], [1], [0, 0, 1, 1], [], []>, precision = #tpu.contract_precision<fp32>} : vector<2x128xf32>, vector<128x128xf32>, vector<2x128xf32> -> vector<2x128xf32>
    %131 = vector.broadcast %115 : vector<1x128xf32> to vector<2x128xf32>
    %132 = arith.addf %130, %131 : vector<2x128xf32>
    %cst_60 = arith.constant 0.000000e+00 : f32
    %133 = vector.broadcast %cst_60 : f32 to vector<2x128xf32>
    %134 = arith.maximumf %132, %133 : vector<2x128xf32>
    %c3_61 = arith.constant 3 : index
    %c0_62 = arith.constant 0 : index
    %c0_63 = arith.constant 0 : index
    %135 = vector.load %arg4[%c3_61, %c0_62, %c0_63] : memref<4x128x256xf32, #tpu.memory_space<vmem>>, vector<1x128x256xf32>
    %136 = vector.shape_cast %135 : vector<1x128x256xf32> to vector<128x256xf32>
    %cst_64 = arith.constant dense<0.000000e+00> : vector<2x256xf32>
    %137 = tpu.matmul %134, %136, %cst_64 {dimension_numbers = #tpu.dot_dimension_numbers<[1], [0], [0], [1], [0, 0, 1, 1], [], []>, precision = #tpu.contract_precision<fp32>} : vector<2x128xf32>, vector<128x256xf32>, vector<2x256xf32> -> vector<2x256xf32>
    %138 = vector.broadcast %116 : vector<1x256xf32> to vector<2x256xf32>
    %139 = arith.addf %137, %138 : vector<2x256xf32>
    %140 = vector.extract_strided_slice %139 {offsets = [0, 0], sizes = [2, 128], strides = [1, 1]} : vector<2x256xf32> to vector<2x128xf32>
    %141 = math.tanh %140 : vector<2x128xf32>
    %142 = vector.extract_strided_slice %139 {offsets = [0, 128], sizes = [2, 128], strides = [1, 1]} : vector<2x256xf32> to vector<2x128xf32>
    %143 = math.exp %141 : vector<2x128xf32>
    %144 = arith.mulf %111, %143 : vector<2x128xf32>
    %145 = arith.addf %144, %142 : vector<2x128xf32>
    %146 = vector.broadcast %118 : vector<1x128xf32> to vector<2x128xf32>
    %147 = arith.mulf %146, %145 : vector<2x128xf32>
    %148 = arith.addf %120, %147 : vector<2x128xf32>
    %c0_65 = arith.constant 0 : index
    %c0_66 = arith.constant 0 : index
    %149 = vector.load %arg6[%c0_65, %c0_66] : memref<136x64xf32, #tpu.memory_space<vmem>>, vector<128x64xf32>
    %c128 = arith.constant 128 : index
    %c0_67 = arith.constant 0 : index
    %150 = vector.load %arg6[%c128, %c0_67] : memref<136x64xf32, #tpu.memory_space<vmem>>, vector<1x64xf32>
    %cst_68 = arith.constant dense<0.000000e+00> : vector<2x64xf32>
    %151 = tpu.matmul %148, %149, %cst_68 {dimension_numbers = #tpu.dot_dimension_numbers<[1], [0], [0], [1], [0, 0, 1, 1], [], []>, precision = #tpu.contract_precision<fp32>} : vector<2x128xf32>, vector<128x64xf32>, vector<2x64xf32> -> vector<2x64xf32>
    %152 = vector.broadcast %150 : vector<1x64xf32> to vector<2x64xf32>
    %153 = arith.addf %151, %152 : vector<2x64xf32>
    %cst_69 = arith.constant dense<0xFF800000> : vector<2xf32>
    %154 = vector.multi_reduction <maximumf>, %153, %cst_69 [1] : vector<2x64xf32> to vector<2xf32>
    %155 = vector.shape_cast %154 : vector<2xf32> to vector<2x1xf32>
    %156 = vector.broadcast %155 : vector<2x1xf32> to vector<2x64xf32>
    %157 = arith.subf %153, %156 : vector<2x64xf32>
    %158 = math.exp %157 : vector<2x64xf32>
    %c0_70 = arith.constant 0 : index
    %c0_71 = arith.constant 0 : index
    %159 = vector.load %arg7[%c0_70, %c0_71] : memref<64x64xf32, #tpu.memory_space<vmem>>, vector<64x64xf32>
    %cst_72 = arith.constant dense<0.000000e+00> : vector<2x64xf32>
    %160 = tpu.matmul %158, %159, %cst_72 {dimension_numbers = #tpu.dot_dimension_numbers<[1], [0], [0], [1], [0, 0, 1, 1], [], []>, precision = #tpu.contract_precision<fp32>} : vector<2x64xf32>, vector<64x64xf32>, vector<2x64xf32> -> vector<2x64xf32>
    %161 = tpu.reciprocal %160 {approx = true} : vector<2x64xf32> -> vector<2x64xf32>
    %162 = arith.mulf %160, %161 : vector<2x64xf32>
    %cst_73 = arith.constant 2.000000e+00 : f32
    %163 = vector.broadcast %cst_73 : f32 to vector<2x64xf32>
    %164 = arith.subf %163, %162 : vector<2x64xf32>
    %165 = arith.mulf %161, %164 : vector<2x64xf32>
    %166 = arith.mulf %158, %165 : vector<2x64xf32>
    %c0_74 = arith.constant 0 : index
    %c0_75 = arith.constant 0 : index
    %167 = vector.load %arg8[%c0_74, %c0_75] : memref<2x64xf32, #tpu.memory_space<vmem>>, vector<2x64xf32>
    tpu.vector_store %arg8[%c0_74, %c0_75], %166 {strides = array<i32>} : memref<2x64xf32, #tpu.memory_space<vmem>>, vector<2x64xf32>,
    return
  }
  func.func @transform_0(%arg0: i32) -> (i32, i32) {
    %c0_i32 = arith.constant 0 : i32
    %c0_i32_0 = arith.constant 0 : i32
    return %arg0, %c0_i32 : i32, i32
  }
  func.func @transform_1(%arg0: i32) -> (i32, i32, i32) {
    %c0_i32 = arith.constant 0 : i32
    %c0_i32_0 = arith.constant 0 : i32
    %c0_i32_1 = arith.constant 0 : i32
    %c0_i32_2 = arith.constant 0 : i32
    return %c0_i32, %c0_i32_0, %c0_i32_1 : i32, i32, i32
  }
  func.func @transform_2(%arg0: i32) -> (i32, i32, i32) {
    %c0_i32 = arith.constant 0 : i32
    %c0_i32_0 = arith.constant 0 : i32
    %c0_i32_1 = arith.constant 0 : i32
    %c0_i32_2 = arith.constant 0 : i32
    return %c0_i32, %c0_i32_0, %c0_i32_1 : i32, i32, i32
  }
  func.func @transform_3(%arg0: i32) -> (i32, i32, i32) {
    %c0_i32 = arith.constant 0 : i32
    %c0_i32_0 = arith.constant 0 : i32
    %c0_i32_1 = arith.constant 0 : i32
    %c0_i32_2 = arith.constant 0 : i32
    return %c0_i32, %c0_i32_0, %c0_i32_1 : i32, i32, i32
  }
  func.func @transform_4(%arg0: i32) -> (i32, i32, i32) {
    %c0_i32 = arith.constant 0 : i32
    %c0_i32_0 = arith.constant 0 : i32
    %c0_i32_1 = arith.constant 0 : i32
    %c0_i32_2 = arith.constant 0 : i32
    return %c0_i32, %c0_i32_0, %c0_i32_1 : i32, i32, i32
  }
  func.func @transform_5(%arg0: i32) -> (i32, i32) {
    %c0_i32 = arith.constant 0 : i32
    %c0_i32_0 = arith.constant 0 : i32
    %c0_i32_1 = arith.constant 0 : i32
    return %c0_i32, %c0_i32_0 : i32, i32
  }
  func.func @transform_6(%arg0: i32) -> (i32, i32) {
    %c0_i32 = arith.constant 0 : i32
    %c0_i32_0 = arith.constant 0 : i32
    %c0_i32_1 = arith.constant 0 : i32
    return %c0_i32, %c0_i32_0 : i32, i32
  }
  func.func @transform_7(%arg0: i32) -> (i32, i32) {
    %c0_i32 = arith.constant 0 : i32
    %c0_i32_0 = arith.constant 0 : i32
    return %arg0, %c0_i32 : i32, i32
  }
}

</mosaic_0001>

<bundles_post_ra>
// kernel: tpu_custom_call.1
= control target key start
LH: loop header
LB: loop body
LE: loop exit
PB: predicated region body
PF: predicated region fallthrough
CT: control target
= control target key end

     0   :  { %12 = vsyncpa [#allocation3], 0  ;;  %s11034_s0 = inlined_call_operand.vmem [shape: f32[2,128], index: 0, kind: input, shape index: {}]   ;;  %s11035_s1 = inlined_call_operand.hbm [shape: f32[4,128,128], index: 1, kind: input, shape index: {}]   ;;  %s11036_s2 = inlined_call_operand.hbm [shape: f32[4,128,128], index: 2, kind: input, shape index: {}]   ;;  %s11037_s3 = inlined_call_operand.hbm [shape: f32[4,128,256], index: 3, kind: input, shape index: {}]   ;;  %s11038_s4 = inlined_call_operand.vmem [shape: f32[4,8,256], index: 4, kind: input, shape index: {}]   ;;  %s11039_s5 = inlined_call_operand.vmem [shape: f32[136,64], index: 5, kind: input, shape index: {}]   ;;  %s11040_s6 = inlined_call_operand.vmem [shape: f32[64,64], index: 6, kind: input, shape index: {}]   ;;  %s11041_s7 = inlined_call_operand.hbm [shape: f32[2,64], index: 7, kind: output, shape index: {}]  }
   0x1   :  { %13 = vsyncpa [#allocation6], 0 }
   0x2   :  { %14 = vsyncpa [#allocation4], 0  ;;  %s34_s26 = sshll.u32 %s11036_s2, 4  ;;  %s6652_s27 = smov [#allocation5]   ;;  %s35_s26 = int_to_ptr.hbm [resolvable:$true] %s34_s26 }
   0x3   :  { %s36_s28 = sshll.u32 %s6652_s27, 4  ;;  %s21_s8 = sshll.u32 %s11035_s1, 4  ;;  %s37_s28 = int_to_ptr.vmem [resolvable:$true] %s36_s28  ;;  %s22_s8 = int_to_ptr.hbm [resolvable:$true] %s21_s8 }
   0x4   :  { %s6653_s9 = smov 128   ;;  %s6654_s10 = smov 8  }
   0x5   :  { %42 = dma.hbm_to_vmem [thread:$0]  %s35_s26, 8192, %s37_s28, [#allocation6], %s6653_s9, %s6653_s9, %s6654_s10  }
   0x6   :  { %s6655_s11 = smov [#allocation2]   ;;  %s47_s15 = sshll.u32 %s11037_s3, 4  ;;  %s48_s15 = int_to_ptr.hbm [resolvable:$true] %s47_s15 }
   0x7   :  { %s23_s12 = sshll.u32 %s6655_s11, 4  ;;  %s6656_s2 = smov [#allocation7]   ;;  %s24_s12 = int_to_ptr.vmem [resolvable:$true] %s23_s12 }
   0x8   :  { %29 = dma.hbm_to_vmem [thread:$0]  %s22_s8, 8192, %s24_s12, [#allocation3], %s6653_s9, %s6653_s9, %s6654_s10  }
   0x9   :  { %s49_s16 = sshll.u32 %s6656_s2, 4  ;;  %s6657_s17 = smov 256   ;;  %s50_s16 = int_to_ptr.vmem [resolvable:$true] %s49_s16 }
   0xa   :  { %s6658_s18 = smov 16  }
   0xb   :  { %55 = dma.hbm_to_vmem [thread:$0]  %s48_s15, 16384, %s50_s16, [#allocation6], %s6657_s17, %s6657_s17, %s6658_s18  }
   0xc   :  { %6646 = dma.done.wait [#allocation3], 8192  }
   0xd   :  { %6647 = vsyncadd [#allocation3], 4294959104 }
   0xe   :  { %6648 = dma.done.wait [#allocation6], 24576  }
   0xf   :  { %6649 = vsyncadd [#allocation6], 4294942720  ;;  %v94_v0 = vld [vmem:[#allocation2 + $0x78] sm:$0xff]  ;;  %v93_v1 = vld [vmem:[#allocation2 + $0x70] sm:$0xff]  ;;  %vm6230_vm0 = vcmask 517120   ;;  %vm6245_vm1 = vcmask 523264  }
  0x10   :  { %v92_v2 = vld [vmem:[#allocation2 + $0x68] sm:$0xff]  ;;  %v6709_v3 = vand.u32 4294901760, %v94_v0  ;;  %v6711_v4 = vand.u32 4294901760, %v93_v1  ;;  %v91_v6 = vld [vmem:[#allocation2 + $0x60] sm:$0xff]  ;;  %v90_v7 = vld [vmem:[#allocation2 + $0x58] sm:$0xff]  ;;  %s6499_s17 = sshll.u32 %s11041_s7, 4  ;;  %s6500_s17 = int_to_ptr.hbm [resolvable:$true] %s6499_s17 }
  0x11   :  { %v6713_v5 = vand.u32 4294901760, %v92_v2  ;;  %v89_v8 = vld [vmem:[#allocation2 + $0x50] sm:$0xff]  ;;  %v6715_v9 = vand.u32 4294901760, %v91_v6  ;;  %v6717_v10 = vand.u32 4294901760, %v90_v7  ;;  %v88_v12 = vld [vmem:[#allocation2 + $0x48] sm:$0xff]  ;;  %v87_v13 = vld [vmem:[#allocation2 + $0x40] sm:$0xff] }
  0x12   :  { %v6719_v11 = vand.u32 4294901760, %v89_v8  ;;  %97 = vmatpush.msra.mxu0 %v6709_v3  ;;  %v6723_v14 = vsub.f32 %v94_v0, %v6709_v3  ;;  %v6726_v15 = vsub.f32 %v93_v1, %v6711_v4  ;;  %v6731_v17 = vand.u32 4294901760, %v88_v12  ;;  %293 = vmatpush.msra.mxu3 %v6709_v3  ;;  %v86_v21 = vld [vmem:[#allocation2 + $0x38] sm:$0xff]  ;;  %v85_v34 = vld [vmem:[#allocation2 + $0x30] sm:$0xff]  ;;  %v84_v35 = vld [vmem:[#allocation2 + $0x28] sm:$0xff] }
  0x13   :  { %v6729_v16 = vsub.f32 %v92_v2, %v6713_v5  ;;  %v6735_v18 = vsub.f32 %v91_v6, %v6715_v9  ;;  %v6738_v19 = vsub.f32 %v90_v7, %v6717_v10  ;;  %v6740_v20 = vand.u32 4294901760, %v87_v13  ;;  %v83_v42 = vld [vmem:[#allocation2 + $0x20] sm:$0xff]  ;;  %v82_v47 = vld [vmem:[#allocation2 + $0x18] sm:$0xff]  ;;  %v81_v53 = vld [vmem:[#allocation2 + $0x10] sm:$0xff] }
  0x14   :  { %99 = vmatpush.msra.mxu0 %v6711_v4  ;;  %v139_v22 = vand.u32 4294901760, %v6723_v14  ;;  %v145_v23 = vand.u32 4294901760, %v6726_v15  ;;  %v6747_v25 = vsub.f32 %v89_v8, %v6719_v11  ;;  %240 = vmatpush.msra.mxu2 %v6723_v14  ;;  %v6753_v28 = vsub.f32 %v88_v12, %v6731_v17  ;;  %v80_v61 = vld [vmem:[#allocation2 + $0x8] sm:$0xff]  ;;  %v6826_v62 = vld [vmem:[%s11038_s4] sm:$0xff] }
  0x15   :  { %v151_v24 = vand.u32 4294901760, %v6729_v16  ;;  %v157_v26 = vand.u32 4294901760, %v6735_v18  ;;  %v163_v27 = vand.u32 4294901760, %v6738_v19  ;;  %295 = vmatpush.msra.mxu3 %v6711_v4  ;;  %v6766_v32 = vand.u32 4294901760, %v86_v21  ;;  %v79_v7 = vld [vmem:[#allocation2] sm:$0xff] }
  0x16   :  { %v140_v29 = vsub.f32 %v6723_v14, %v139_v22  ;;  %101 = vmatpush.msra.mxu0 %v6713_v5  ;;  %v146_v30 = vsub.f32 %v6726_v15, %v145_v23  ;;  %243 = vmatpush.msra.mxu2 %v6726_v15  ;;  %v6770_v33 = vsub.f32 %v87_v13, %v6740_v20  ;;  %v169_v39 = vand.u32 4294901760, %v6747_v25  ;;  %v74_v8 = vld [vmem:[%s11034_s0] sm:$0x3]  ;;  %v453_v14 = vld [vmem:[#allocation5 + $0x78] sm:$0xff] }
  0x17   :  { %v152_v31 = vsub.f32 %v6729_v16, %v151_v24  ;;  %297 = vmatpush.msra.mxu3 %v6713_v5  ;;  %v158_v38 = vsub.f32 %v6735_v18, %v157_v26  ;;  %v164_v40 = vsub.f32 %v6738_v19, %v163_v27  ;;  %v175_v41 = vand.u32 4294901760, %v6753_v28 }
  0x18   :  { %v141_v36 = vand.u32 4294901760, %v140_v29  ;;  %v147_v37 = vand.u32 4294901760, %v146_v30  ;;  %103 = vmatpush.msra.mxu0 %v6715_v9  ;;  %246 = vmatpush.msra.mxu2 %v6729_v16  ;;  %v6785_v44 = vand.u32 4294901760, %v85_v34  ;;  %v6788_v45 = vsub.f32 %v86_v21, %v6766_v32 }
  0x19   :  { %299 = vmatpush.msra.mxu3 %v6715_v9  ;;  %v153_v43 = vand.u32 4294901760, %v152_v31  ;;  %v6790_v46 = vand.u32 4294901760, %v84_v35  ;;  %v181_v48 = vand.u32 4294901760, %v6770_v33  ;;  %v159_v49 = vand.u32 4294901760, %v158_v38 }
  0x1a   :  { %142 = vmatpush.msra.mxu1 %v141_v36  ;;  %105 = vmatpush.msra.mxu0 %v6717_v10  ;;  %v170_v50 = vsub.f32 %v6747_v25, %v169_v39  ;;  %v6800_v51 = vsub.f32 %v85_v34, %v6785_v44  ;;  %v6802_v52 = vand.u32 4294901760, %v83_v42  ;;  %v176_v54 = vsub.f32 %v6753_v28, %v175_v41 }
  0x1b   :  { %249 = vmatpush.msra.mxu2 %v6735_v18  ;;  %301 = vmatpush.msra.mxu3 %v6717_v10  ;;  %v6807_v55 = vand.u32 4294901760, %v82_v47  ;;  %v165_v56 = vand.u32 4294901760, %v164_v40  ;;  %v187_v57 = vand.u32 4294901760, %v6788_v45  ;;  %v6814_v58 = vsub.f32 %v84_v35, %v6790_v46 }
  0x1c   :  { %148 = vmatpush.msra.mxu1 %v147_v37  ;;  %107 = vmatpush.msra.mxu0 %v6719_v11  ;;  %v182_v59 = vsub.f32 %v6770_v33, %v181_v48  ;;  %v6819_v60 = vand.u32 4294901760, %v81_v53  ;;  %v171_v63 = vand.u32 4294901760, %v170_v50  ;;  %v193_v0 = vand.u32 4294901760, %v6800_v51 }
  0x1d   :  { %252 = vmatpush.msra.mxu2 %v6738_v19  ;;  %303 = vmatpush.msra.mxu3 %v6719_v11  ;;  %v6831_v1 = vsub.f32 %v83_v42, %v6802_v52  ;;  %v177_v2 = vand.u32 4294901760, %v176_v54  ;;  %v6834_v6 = vsub.f32 %v82_v47, %v6807_v55  ;;  %v188_v12 = vsub.f32 %v6788_v45, %v187_v57  ;;  %v446_v19 = vld [vmem:[#allocation5 + $0x40] sm:$0xff] }
  0x1e   :  { %154 = vmatpush.msra.mxu1 %v153_v43  ;;  %109 = vmatpush.msra.mxu0 %v6731_v17  ;;  %v199_v13 = vand.u32 4294901760, %v6814_v58  ;;  %v6846_v21 = vand.u32 4294901760, %v80_v61  ;;  %v77_v29 = vperm.slane %v6826_v62, 3  ;;  %v183_v30 = vand.u32 4294901760, %v182_v59 }
  0x1f   :  { %255 = vmatpush.msra.mxu2 %v6747_v25  ;;  %305 = vmatpush.msra.mxu3 %v6731_v17  ;;  %v6850_v31 = vsub.f32 %v81_v53, %v6819_v60  ;;  %v194_v34 = vsub.f32 %v6800_v51, %v193_v0  ;;  %v205_v35 = vand.u32 4294901760, %v6831_v1  ;;  %v6859_v36 = vand.u32 4294901760, %v79_v7 }
  0x20   :  { %160 = vmatpush.msra.mxu1 %v159_v49  ;;  %111 = vmatpush.msra.mxu0 %v6740_v20  ;;  %v6861_v37 = vmul.f32 %v77_v29, %v74_v8  ;;  %v211_v38 = vand.u32 4294901760, %v6834_v6  ;;  %v189_v40 = vand.u32 4294901760, %v188_v12  ;;  %v200_v42 = vsub.f32 %v6814_v58, %v199_v13 }
  0x21   :  { %258 = vmatpush.msra.mxu2 %v6753_v28  ;;  %307 = vmatpush.msra.mxu3 %v6740_v20  ;;  %v6871_v43 = vsub.f32 %v80_v61, %v6846_v21  ;;  %v217_v49 = vand.u32 4294901760, %v6850_v31  ;;  %v195_v50 = vand.u32 4294901760, %v194_v34  ;;  %v206_v53 = vsub.f32 %v6831_v1, %v205_v35 }
  0x22   :  { %166 = vmatpush.msra.mxu1 %v165_v56  ;;  %113 = vmatpush.msra.mxu0 %v6766_v32  ;;  %v6874_v47 = vand.u32 4294901760, %v6861_v37  ;;  %v6884_v54 = vsub.f32 %v79_v7, %v6859_v36  ;;  %v201_v59 = vand.u32 4294901760, %v200_v42  ;;  %v212_v61 = vsub.f32 %v6834_v6, %v211_v38 }
  0x23   :  { %261 = vmatpush.msra.mxu2 %v6770_v33  ;;  %309 = vmatpush.msra.mxu3 %v6766_v32  ;;  %v207_v7 = vand.u32 4294901760, %v206_v53  ;;  %v218_v8 = vsub.f32 %v6850_v31, %v217_v49  ;;  %v6928_v15 = vand.u32 4294901760, %v453_v14  ;;  %v445_v33 = vld [vmem:[#allocation5 + $0x38] sm:$0xff] }
  0x24   :  { %172 = vmatpush.msra.mxu1 %v171_v63  ;;  %115 = vmatpush.msra.mxu0 %v6785_v44  ;;  %v129_v56 = vsub.f32 %v6861_v37, %v6874_v47  ;;  %v223_v63 = vand.u32 4294901760, %v6871_v43  ;;  %v229_v12 = vand.u32 4294901760, %v6884_v54  ;;  %v213_v29 = vand.u32 4294901760, %v212_v61  ;;  %v451_v61 = vld [vmem:[#allocation5 + $0x68] sm:$0xff] }
  0x25   :  { %264 = vmatpush.msra.mxu2 %v6788_v45  ;;  %311 = vmatpush.msra.mxu3 %v6785_v44  ;;  %v6932_v16 = vand.u32 4294901760, %v451_v61  ;;  %v7007_v45 = vand.u32 4294901760, %v445_v33 }
  0x26   :  { %178 = vmatpush.msra.mxu1 %v177_v2  ;;  %117 = vmatpush.msra.mxu0 %v6790_v46  ;;  %v130_v2 = vand.u32 4294901760, %v129_v56  ;;  %v230_v42 = vsub.f32 %v6884_v54, %v229_v12 }
  0x27   :  { %267 = vmatpush.msra.mxu2 %v6800_v51  ;;  %313 = vmatpush.msra.mxu3 %v6790_v46  ;;  %v7022_v51 = vsub.f32 %v445_v33, %v7007_v45 }
  0x28   :  { %184 = vmatpush.msra.mxu1 %v183_v30  ;;  %119 = vmatpush.msra.mxu0 %v6802_v52  ;;  %v224_v30 = vsub.f32 %v6871_v43, %v223_v63  ;;  %v131_v34 = vsub.f32 %v129_v56, %v130_v2 }
  0x29   :  { %270 = vmatpush.msra.mxu2 %v6814_v58  ;;  %315 = vmatpush.msra.mxu3 %v6802_v52 }
  0x2a   :  { %190 = vmatpush.msra.mxu1 %v189_v40  ;;  %121 = vmatpush.msra.mxu0 %v6807_v55  ;;  %v219_v40 = vand.u32 4294901760, %v218_v8  ;;  %v132_v53 = vand.u32 4294901760, %v131_v34 }
  0x2b   :  { %273 = vmatpush.msra.mxu2 %v6831_v1  ;;  %317 = vmatpush.msra.mxu3 %v6807_v55  ;;  %v439_v1 = vld [vmem:[#allocation5 + $0x8] sm:$0xff] }
  0x2c   :  { %196 = vmatpush.msra.mxu1 %v195_v50  ;;  %123 = vmatpush.msra.mxu0 %v6819_v60  ;;  %v225_v50 = vand.u32 4294901760, %v224_v30 }
  0x2d   :  { %276 = vmatpush.msra.mxu2 %v6834_v6  ;;  %319 = vmatpush.msra.mxu3 %v6819_v60  ;;  %v438_v6 = vld [vmem:[#allocation5] sm:$0xff] }
  0x2e   :  { %202 = vmatpush.msra.mxu1 %v201_v59  ;;  %125 = vmatpush.msra.mxu0 %v6846_v21  ;;  %v231_v59 = vand.u32 4294901760, %v230_v42  ;;  %v6968_v42 = vand.u32 4294901760, %v446_v19 }
  0x2f   :  { %279 = vmatpush.msra.mxu2 %v6850_v31  ;;  %321 = vmatpush.msra.mxu3 %v6846_v21 }
  0x30   :  { %208 = vmatpush.msra.mxu1 %v207_v7  ;;  %127 = vmatpush.msra.mxu0 %v6859_v36 }
  0x31   :  { %282 = vmatpush.msra.mxu2 %v6871_v43  ;;  %323 = vmatpush.msra.mxu3 %v6859_v36 }
  0x32   :  { %334 = vmatpush.msrb.mxu0 %v139_v22  ;;  %214 = vmatpush.msra.mxu1 %v213_v29  ;;  %v452_v22 = vld [vmem:[#allocation5 + $0x70] sm:$0xff]  ;;  %v6951_v29 = vsub.f32 %v451_v61, %v6932_v16  ;;  %v443_v61 = vld [vmem:[#allocation5 + $0x28] sm:$0xff] }
  0x33   :  { %285 = vmatpush.msra.mxu2 %v6884_v54  ;;  %327 = vmatmul.f32.vlgmr.msra.gmra.mxu3 %v130_v2  ;;  %v448_v2 = vld [vmem:[#allocation5 + $0x50] sm:$0xff] }
  0x34   :  { %338 = vmatpush.msrb.mxu0 %v145_v23  ;;  %220 = vmatpush.msra.mxu1 %v219_v40  ;;  %v6930_v23 = vand.u32 4294901760, %v452_v22  ;;  %v6939_v7 = vand.u32 4294901760, %v448_v2  ;;  %v510_v40 = vand.u32 4294901760, %v6951_v29 }
  0x35   :  { %288 = vmatmul.f32.vlgmr.msra.gmra.mxu2 %v129_v56  ;;  %133 = vmatmul.f32.vlgmr.msra.gmra.mxu0 %v132_v53  ;;  %v449_v56 = vld [vmem:[#allocation5 + $0x58] sm:$0xff] }
  0x36   :  { %342 = vmatpush.msrb.mxu0 %v151_v24  ;;  %226 = vmatpush.msra.mxu1 %v225_v50  ;;  %v450_v24 = vld [vmem:[#allocation5 + $0x60] sm:$0xff]  ;;  %v6948_v8 = vsub.f32 %v452_v22, %v6930_v23  ;;  %v6973_v53 = vsub.f32 %v448_v2, %v6939_v7  ;;  %v6996_v22 = vsub.f32 %v446_v19, %v6968_v42 }
  0x37   :  { %v6935_v18 = vand.u32 4294901760, %v450_v24  ;;  %456 = vmatpush.msrb.mxu2 %v6928_v15 }
  0x38   :  { %346 = vmatpush.msrb.mxu0 %v157_v26  ;;  %232 = vmatpush.msra.mxu1 %v231_v59  ;;  %v6937_v26 = vand.u32 4294901760, %v449_v56  ;;  %v511_v59 = vsub.f32 %v6951_v29, %v510_v40  ;;  %v528_v2 = vand.u32 4294901760, %v6973_v53 }
  0x39   :  { %234 = vmatmul.f32.vlgmr.msra.gmra.mxu1 %v6874_v47  ;;  %v6956_v34 = vsub.f32 %v450_v24, %v6935_v18  ;;  %458 = vmatpush.msrb.mxu2 %v6930_v23 }
  0x3a   :  { %401 = vmatpush.msrb.mxu1 %v6709_v3  ;;  %350 = vmatpush.msrb.mxu0 %v163_v27  ;;  %v447_v3 = vld [vmem:[#allocation5 + $0x48] sm:$0xff]  ;;  %v6945_v27 = vsub.f32 %v453_v14, %v6928_v15  ;;  %v512_v19 = vand.u32 4294901760, %v511_v59 }
  0x3b   :  { %v6953_v30 = vand.u32 4294901760, %v447_v3  ;;  %v516_v50 = vand.u32 4294901760, %v6956_v34  ;;  %460 = vmatpush.msrb.mxu2 %v6932_v16 }
  0x3c   :  { %403 = vmatpush.msrb.mxu1 %v6711_v4  ;;  %354 = vmatpush.msrb.mxu0 %v169_v39  ;;  %v6960_v4 = vsub.f32 %v449_v56, %v6937_v26  ;;  %v498_v25 = vand.u32 4294901760, %v6945_v27  ;;  %v504_v39 = vand.u32 4294901760, %v6948_v8 }
  0x3d   :  { %v517_v56 = vsub.f32 %v6956_v34, %v516_v50  ;;  %462 = vmatpush.msrb.mxu2 %v6935_v18 }
  0x3e   :  { %405 = vmatpush.msrb.mxu1 %v6713_v5  ;;  %358 = vmatpush.msrb.mxu0 %v175_v41  ;;  %v499_v5 = vsub.f32 %v6945_v27, %v498_v25  ;;  %v505_v28 = vsub.f32 %v6948_v8, %v504_v39  ;;  %v6985_v41 = vsub.f32 %v447_v3, %v6953_v30  ;;  %v442_v3 = vld [vmem:[#allocation5 + $0x20] sm:$0xff] }
  0x3f   :  { %464 = vmatpush.msrb.mxu2 %v6937_v26  ;;  %v518_v59 = vand.u32 4294901760, %v517_v56 }
  0x40   :  { %407 = vmatpush.msrb.mxu1 %v6715_v9  ;;  %362 = vmatpush.msrb.mxu0 %v181_v48  ;;  %v11042_v9 = vand.u32 4294901760, %v6960_v4  ;;  %v444_v48 = vld [vmem:[#allocation5 + $0x30] sm:$0xff]  ;;  %v500_v14 = vand.u32 4294901760, %v499_v5  ;;  %v506_v24 = vand.u32 4294901760, %v505_v28  ;;  %v7015_v28 = vand.u32 4294901760, %v443_v61 }
  0x41   :  { %466 = vmatpush.msrb.mxu2 %v6939_v7 }
  0x42   :  { %409 = vmatpush.msrb.mxu1 %v6717_v10  ;;  %366 = vmatpush.msrb.mxu0 %v187_v57  ;;  %v534_v10 = vand.u32 4294901760, %v6985_v41  ;;  %v7009_v57 = vand.u32 4294901760, %v444_v48  ;;  %v523_v5 = vsub.f32 %v6960_v4, %v11042_v9 }
  0x43   :  { %501 = vmatpush.msrb.mxu3 %v500_v14  ;;  %v529_v14 = vsub.f32 %v6973_v53, %v528_v2  ;;  %468 = vmatpush.msrb.mxu2 %v6953_v30 }
  0x44   :  { %411 = vmatpush.msrb.mxu1 %v6719_v11  ;;  %370 = vmatpush.msrb.mxu0 %v193_v0  ;;  %v540_v11 = vand.u32 4294901760, %v6996_v22  ;;  %v441_v0 = vld [vmem:[#allocation5 + $0x18] sm:$0xff]  ;;  %v7029_v9 = vsub.f32 %v444_v48, %v7009_v57  ;;  %v535_v58 = vsub.f32 %v6985_v41, %v534_v10  ;;  %v524_v33 = vand.u32 4294901760, %v523_v5 }
  0x45   :  { %507 = vmatpush.msrb.mxu3 %v506_v24  ;;  %v546_v24 = vand.u32 4294901760, %v7022_v51  ;;  %v7042_v48 = vsub.f32 %v443_v61, %v7015_v28  ;;  %v7044_v56 = vand.u32 4294901760, %v441_v0  ;;  %470 = vmatpush.msrb.mxu2 %v6968_v42 }
  0x46   :  { %413 = vmatpush.msrb.mxu1 %v6731_v17  ;;  %374 = vmatpush.msrb.mxu0 %v199_v13  ;;  %v7031_v17 = vand.u32 4294901760, %v442_v3  ;;  %v440_v13 = vld [vmem:[#allocation5 + $0x10] sm:$0xff] }
  0x47   :  { %513 = vmatpush.msrb.mxu3 %v512_v19  ;;  %v552_v19 = vand.u32 4294901760, %v7029_v9  ;;  %v7057_v5 = vand.u32 4294901760, %v440_v13  ;;  %472 = vmatpush.msrb.mxu2 %v7007_v45 }
  0x48   :  { %415 = vmatpush.msrb.mxu1 %v6740_v20  ;;  %378 = vmatpush.msrb.mxu0 %v205_v35  ;;  %v541_v20 = vsub.f32 %v6996_v22, %v540_v11  ;;  %v530_v35 = vand.u32 4294901760, %v529_v14  ;;  %v7055_v61 = vsub.f32 %v442_v3, %v7031_v17  ;;  %v7068_v3 = vsub.f32 %v441_v0, %v7044_v56 }
  0x49   :  { %519 = vmatpush.msrb.mxu3 %v518_v59  ;;  %v558_v59 = vand.u32 4294901760, %v7042_v48  ;;  %v7070_v14 = vand.u32 4294901760, %v439_v1  ;;  %v553_v31 = vsub.f32 %v7029_v9, %v552_v19  ;;  %474 = vmatpush.msrb.mxu2 %v7009_v57  ;;  %v7081_v0 = vsub.f32 %v440_v13, %v7057_v5 }
  0x4a   :  { %417 = vmatpush.msrb.mxu1 %v6766_v32  ;;  %382 = vmatpush.msrb.mxu0 %v211_v38  ;;  %v536_v32 = vand.u32 4294901760, %v535_v58  ;;  %v547_v38 = vsub.f32 %v7022_v51, %v546_v24  ;;  %v7083_v58 = vand.u32 4294901760, %v438_v6 }
  0x4b   :  { %525 = vmatpush.msrb.mxu3 %v524_v33  ;;  %v559_v43 = vsub.f32 %v7042_v48, %v558_v59  ;;  %v7094_v13 = vsub.f32 %v439_v1, %v7070_v14  ;;  %476 = vmatpush.msrb.mxu2 %v7015_v28 }
  0x4c   :  { %419 = vmatpush.msrb.mxu1 %v6785_v44  ;;  %386 = vmatpush.msrb.mxu0 %v217_v49  ;;  %v542_v44 = vand.u32 4294901760, %v541_v20  ;;  %v564_v49 = vand.u32 4294901760, %v7055_v61  ;;  %v7104_v33 = vsub.f32 %v438_v6, %v7083_v58 }
  0x4d   :  { %531 = vmatpush.msrb.mxu3 %v530_v35  ;;  %v582_v1 = vand.u32 4294901760, %v7094_v13  ;;  %478 = vmatpush.msrb.mxu2 %v7031_v17 }
  0x4e   :  { %421 = vmatpush.msrb.mxu1 %v6790_v46  ;;  %390 = vmatpush.msrb.mxu0 %v223_v63  ;;  %v548_v46 = vand.u32 4294901760, %v547_v38  ;;  %v570_v63 = vand.u32 4294901760, %v7068_v3  ;;  %v565_v54 = vsub.f32 %v7055_v61, %v564_v49 }
  0x4f   :  { %537 = vmatpush.msrb.mxu3 %v536_v32  ;;  %v588_v32 = vand.u32 4294901760, %v7104_v33  ;;  %480 = vmatpush.msrb.mxu2 %v7044_v56  ;;  %v583_v6 = vsub.f32 %v7094_v13, %v582_v1 }
  0x50   :  { %423 = vmatpush.msrb.mxu1 %v6802_v52  ;;  %394 = vmatpush.msrb.mxu0 %v229_v12  ;;  %v554_v52 = vand.u32 4294901760, %v553_v31  ;;  %v576_v12 = vand.u32 4294901760, %v7081_v0  ;;  %v571_v20 = vsub.f32 %v7068_v3, %v570_v63  ;;  %v566_v35 = vand.u32 4294901760, %v565_v54 }
  0x51   :  { %396 = vmatmul.f32.vlgmr.msrb.gmra.mxu0 %v6874_v47  ;;  %543 = vmatpush.msrb.mxu3 %v542_v44 }
  0x52   :  { %425 = vmatpush.msrb.mxu1 %v6807_v55  ;;  %599 = vmatpush.msra.mxu0 %v6945_v27  ;;  %v560_v55 = vand.u32 4294901760, %v559_v43  ;;  %v811_v43 = vld [vmem:[#allocation7 + $0x70] sm:$0xff] }
  0x53   :  { %549 = vmatpush.msrb.mxu3 %v548_v46  ;;  %482 = vmatpush.msrb.mxu2 %v7057_v5 }
  0x54   :  { %427 = vmatpush.msrb.mxu1 %v6819_v60  ;;  %602 = vmatpush.msra.mxu0 %v6948_v8  ;;  %v577_v60 = vsub.f32 %v7081_v0, %v576_v12 }
  0x55   :  { %555 = vmatpush.msrb.mxu3 %v554_v52  ;;  %484 = vmatpush.msrb.mxu2 %v7070_v14 }
  0x56   :  { %429 = vmatpush.msrb.mxu1 %v6846_v21  ;;  %605 = vmatpush.msra.mxu0 %v6951_v29  ;;  %v572_v21 = vand.u32 4294901760, %v571_v20  ;;  %v578_v38 = vand.u32 4294901760, %v577_v60 }
  0x57   :  { %561 = vmatpush.msrb.mxu3 %v560_v55  ;;  %486 = vmatpush.msrb.mxu2 %v7083_v58  ;;  %v807_v55 = vld [vmem:[#allocation7 + $0x50] sm:$0xff] }
  0x58   :  { %431 = vmatpush.msrb.mxu1 %v6859_v36  ;;  %608 = vmatpush.msra.mxu0 %v6956_v34  ;;  %v589_v36 = vsub.f32 %v7104_v33, %v588_v32  ;;  %v825_v34 = vld [vmem:[#allocation7 + $0xe0] sm:$0xff] }
  0x59   :  { %433 = vmatmul.f32.vlgmr.msrb.gmra.mxu1 %v6874_v47  ;;  %567 = vmatpush.msrb.mxu3 %v566_v35  ;;  %v584_v47 = vand.u32 4294901760, %v583_v6  ;;  %v805_v6 = vld [vmem:[#allocation7 + $0x40] sm:$0xff] }
  0x5a   :  { %652 = vmatpush.msra.mxu1 %v6928_v15  ;;  %611 = vmatpush.msra.mxu0 %v6960_v4  ;;  %v590_v44 = vand.u32 4294901760, %v589_v36 }
  0x5b   :  { %573 = vmatpush.msrb.mxu3 %v572_v21  ;;  %693 = vmatpush.msra.mxu2 %v498_v25 }
  0x5c   :  { %654 = vmatpush.msra.mxu1 %v6930_v23  ;;  %614 = vmatpush.msra.mxu0 %v6973_v53  ;;  %v817_v53 = vld [vmem:[#allocation7 + $0xa0] sm:$0xff] }
  0x5d   :  { %579 = vmatpush.msrb.mxu3 %v578_v38  ;;  %697 = vmatpush.msra.mxu2 %v504_v39  ;;  %v7211_v39 = vand.u32 4294901760, %v825_v34 }
  0x5e   :  { %656 = vmatpush.msra.mxu1 %v6932_v16  ;;  %617 = vmatpush.msra.mxu0 %v6985_v41 }
  0x5f   :  { %585 = vmatpush.msrb.mxu3 %v584_v47  ;;  %701 = vmatpush.msra.mxu2 %v510_v40  ;;  %v7283_v47 = vand.u32 4294901760, %v807_v55 }
  0x60   :  { %658 = vmatpush.msra.mxu1 %v6935_v18  ;;  %620 = vmatpush.msra.mxu0 %v6996_v22  ;;  %v7219_v22 = vand.u32 4294901760, %v817_v53 }
  0x61   :  { %591 = vmatpush.msrb.mxu3 %v590_v44  ;;  %705 = vmatpush.msra.mxu2 %v516_v50  ;;  %v819_v50 = vld [vmem:[#allocation7 + $0xb0] sm:$0xff] }
  0x62   :  { %660 = vmatpush.msra.mxu1 %v6937_v26  ;;  %623 = vmatpush.msra.mxu0 %v7022_v51  ;;  %v813_v51 = vld [vmem:[#allocation7 + $0x80] sm:$0xff] }
  0x63   :  { %760 = vmatpush.msra.mxu3 %v6928_v15  ;;  %v11054_v15 = vand.u32 4294901760, %v6960_v4  ;;  %v823_v4 = vld [vmem:[#allocation7 + $0xd0] sm:$0xff] }
  0x64   :  { %662 = vmatpush.msra.mxu1 %v6939_v7  ;;  %626 = vmatpush.msra.mxu0 %v7029_v9  ;;  %v7213_v40 = vand.u32 4294901760, %v823_v4  ;;  %v7217_v9 = vand.u32 4294901760, %v819_v50 }
  0x65   :  { %762 = vmatpush.msra.mxu3 %v6930_v23  ;;  %709 = vmatpush.msra.mxu2 %v11054_v15  ;;  %v95_v23 = vperm.slane %v6826_v62, 0 }
  0x66   :  { %664 = vmatpush.msra.mxu1 %v6953_v30  ;;  %629 = vmatpush.msra.mxu0 %v7042_v48  ;;  %v7240_v48 = vsub.f32 %v817_v53, %v7219_v22 }
  0x67   :  { %764 = vmatpush.msra.mxu3 %v6932_v16  ;;  %713 = vmatpush.msra.mxu2 %v528_v2  ;;  %v815_v2 = vld [vmem:[#allocation7 + $0x90] sm:$0xff] }
  0x68   :  { %666 = vmatpush.msra.mxu1 %v6968_v42  ;;  %632 = vmatpush.msra.mxu0 %v7055_v61  ;;  %v904_v46 = vand.u32 4294901760, %v7240_v48 }
  0x69   :  { %766 = vmatpush.msra.mxu3 %v6935_v18  ;;  %717 = vmatpush.msra.mxu2 %v534_v10 }
  0x6a   :  { %668 = vmatpush.msra.mxu1 %v7007_v45  ;;  %635 = vmatpush.msra.mxu0 %v7068_v3  ;;  %v905_v36 = vsub.f32 %v7240_v48, %v904_v46 }
  0x6b   :  { %768 = vmatpush.msra.mxu3 %v6937_v26  ;;  %721 = vmatpush.msra.mxu2 %v540_v11  ;;  %v7231_v11 = vand.u32 4294901760, %v815_v2 }
  0x6c   :  { %670 = vmatpush.msra.mxu1 %v7009_v57  ;;  %638 = vmatpush.msra.mxu0 %v7081_v0 }
  0x6d   :  { %770 = vmatpush.msra.mxu3 %v6939_v7  ;;  %725 = vmatpush.msra.mxu2 %v546_v24  ;;  %v7237_v24 = vsub.f32 %v819_v50, %v7217_v9  ;;  %v906_v50 = vand.u32 4294901760, %v905_v36 }
  0x6e   :  { %672 = vmatpush.msra.mxu1 %v7015_v28  ;;  %641 = vmatpush.msra.mxu0 %v7094_v13 }
  0x6f   :  { %772 = vmatpush.msra.mxu3 %v6953_v30  ;;  %729 = vmatpush.msra.mxu2 %v552_v19  ;;  %v827_v30 = vld [vmem:[#allocation7 + $0xf0] sm:$0xff] }
  0x70   :  { %674 = vmatpush.msra.mxu1 %v7031_v17  ;;  %644 = vmatpush.msra.mxu0 %v7104_v33  ;;  %v7209_v25 = vand.u32 4294901760, %v827_v30 }
  0x71   :  { %774 = vmatpush.msra.mxu3 %v6968_v42  ;;  %733 = vmatpush.msra.mxu2 %v558_v59  ;;  %v821_v42 = vld [vmem:[#allocation7 + $0xc0] sm:$0xff] }
  0x72   :  { %676 = vmatpush.msra.mxu1 %v7044_v56  ;;  %v7215_v41 = vand.u32 4294901760, %v821_v42  ;;  %832 = vmatpush.msrb.mxu0 %v7209_v25 }
  0x73   :  { %776 = vmatpush.msra.mxu3 %v7007_v45  ;;  %737 = vmatpush.msra.mxu2 %v564_v49  ;;  %v7222_v45 = vsub.f32 %v827_v30, %v7209_v25  ;;  %v801_v30 = vld [vmem:[#allocation7 + $0x20] sm:$0xff] }
  0x74   :  { %678 = vmatpush.msra.mxu1 %v7057_v5  ;;  %834 = vmatpush.msrb.mxu0 %v7211_v39 }
  0x75   :  { %778 = vmatpush.msra.mxu3 %v7009_v57  ;;  %741 = vmatpush.msra.mxu2 %v570_v63  ;;  %v7225_v57 = vsub.f32 %v825_v34, %v7211_v39  ;;  %v809_v63 = vld [vmem:[#allocation7 + $0x60] sm:$0xff] }
  0x76   :  { %680 = vmatpush.msra.mxu1 %v7070_v14  ;;  %836 = vmatpush.msrb.mxu0 %v7213_v40  ;;  %v7278_v21 = vand.u32 4294901760, %v809_v63 }
  0x77   :  { %780 = vmatpush.msra.mxu3 %v7015_v28  ;;  %745 = vmatpush.msra.mxu2 %v576_v12  ;;  %v7228_v28 = vsub.f32 %v823_v4, %v7213_v40  ;;  %v880_v19 = vand.u32 4294901760, %v7225_v57 }
  0x78   :  { %682 = vmatpush.msra.mxu1 %v7083_v58  ;;  %838 = vmatpush.msrb.mxu0 %v7215_v41 }
  0x79   :  { %782 = vmatpush.msra.mxu3 %v7031_v17  ;;  %749 = vmatpush.msra.mxu2 %v582_v1  ;;  %v7234_v17 = vsub.f32 %v821_v42, %v7215_v41  ;;  %v886_v61 = vand.u32 4294901760, %v7228_v28  ;;  %v881_v49 = vsub.f32 %v7225_v57, %v880_v19 }
  0x7a   :  { %840 = vmatpush.msrb.mxu0 %v7217_v9 }
  0x7b   :  { %784 = vmatpush.msra.mxu3 %v7044_v56  ;;  %753 = vmatpush.msra.mxu2 %v588_v32  ;;  %v874_v56 = vand.u32 4294901760, %v7222_v45  ;;  %v892_v3 = vand.u32 4294901760, %v7234_v17  ;;  %v887_v0 = vsub.f32 %v7228_v28, %v886_v61  ;;  %v882_v54 = vand.u32 4294901760, %v881_v49 }
  0x7c   :  { %v7276_v32 = vand.u32 4294901760, %v811_v43  ;;  %842 = vmatpush.msrb.mxu0 %v7219_v22 }
  0x7d   :  { %786 = vmatpush.msra.mxu3 %v7057_v5  ;;  %v7246_v5 = vand.u32 4294901760, %v813_v51  ;;  %v875_v31 = vsub.f32 %v7222_v45, %v874_v56  ;;  %v893_v12 = vsub.f32 %v7234_v17, %v892_v3  ;;  %v888_v35 = vand.u32 4294901760, %v887_v0  ;;  %v797_v0 = vld [vmem:[#allocation7] sm:$0xff] }
  0x7e   :  { %844 = vmatpush.msrb.mxu0 %v7231_v11 }
  0x7f   :  { %788 = vmatpush.msra.mxu3 %v7070_v14  ;;  %v7250_v14 = vsub.f32 %v815_v2, %v7231_v11  ;;  %v876_v52 = vand.u32 4294901760, %v875_v31  ;;  %v7269_v33 = vsub.f32 %v813_v51, %v7246_v5  ;;  %v894_v44 = vand.u32 4294901760, %v893_v12  ;;  %v799_v2 = vld [vmem:[#allocation7 + $0x10] sm:$0xff] }
  0x80   :  { %846 = vmatpush.msrb.mxu0 %v7246_v5 }
  0x81   :  { %790 = vmatpush.msra.mxu3 %v7083_v58  ;;  %v898_v58 = vand.u32 4294901760, %v7237_v24  ;;  %v910_v1 = vand.u32 4294901760, %v7250_v14  ;;  %877 = vmatpush.msrb.mxu1 %v876_v52  ;;  %v916_v15 = vand.u32 4294901760, %v7269_v33  ;;  %v7328_v52 = vand.u32 4294901760, %v799_v2 }
  0x82   :  { %848 = vmatpush.msrb.mxu0 %v7276_v32 }
  0x83   :  { %v899_v60 = vsub.f32 %v7237_v24, %v898_v58  ;;  %883 = vmatpush.msrb.mxu1 %v882_v54  ;;  %v917_v53 = vsub.f32 %v7269_v33, %v916_v15 }
  0x84   :  { %850 = vmatpush.msrb.mxu0 %v7278_v21 }
  0x85   :  { %889 = vmatpush.msrb.mxu1 %v888_v35  ;;  %v918_v54 = vand.u32 4294901760, %v917_v53 }
  0x86   :  { %852 = vmatpush.msrb.mxu0 %v7283_v47 }
  0x87   :  { %895 = vmatpush.msrb.mxu1 %v894_v44  ;;  %v7348_v44 = vsub.f32 %v799_v2, %v7328_v52 }
  0x89   :  { %v958_v53 = vand.u32 4294901760, %v7348_v44 }
  0xb2   :  { %v134_v16 = vpop.f32.mrf.mxu0 }
  0xb3   :  { %v135_v18 = vadd.f32 %v134_v16, %v95_v23  ;;  %v7287_v23 = vsub.f32 %v811_v43, %v7276_v32  ;;  %v7290_v16 = vand.u32 4294901760, %v805_v6 }
  0xb5   :  { %v922_v4 = vand.u32 4294901760, %v7287_v23  ;;  %854 = vmatpush.msrb.mxu0 %v7290_v16 }
  0xb6   :  { %v235_v26 = vpop.f32.mrf.mxu1  ;;  %v328_v29 = vpop.f32.mrf.mxu3 }
  0xb7   :  { %v236_v7 = vadd.f32 %v235_v26, %v135_v18  ;;  %v803_v18 = vld [vmem:[#allocation7 + $0x30] sm:$0xff] }
  0xb8   :  { %v289_v27 = vpop.f32.mrf.mxu2  ;;  %v7307_v42 = vand.u32 4294901760, %v803_v18 }
  0xb9   :  { %v290_v8 = vadd.f32 %v289_v27, %v236_v7  ;;  %v7295_v7 = vsub.f32 %v809_v63, %v7278_v21  ;;  %v900_v27 = vand.u32 4294901760, %v899_v60  ;;  %v923_v63 = vsub.f32 %v7287_v23, %v922_v4 }
  0xba   :  { %v7339_v60 = vand.u32 4294901760, %v797_v0  ;;  %856 = vmatpush.msrb.mxu0 %v7307_v42 }
  0xbb   :  { %v329_v62 = vadd.f32 %v328_v29, %v290_v8  ;;  %v911_v8 = vsub.f32 %v7250_v14, %v910_v1  ;;  %v7302_v29 = vsub.f32 %v807_v55, %v7283_v47  ;;  %v928_v51 = vand.u32 4294901760, %v7295_v7  ;;  %901 = vmatpush.msrb.mxu1 %v900_v27 }
  0xbd   :  { %v912_v31 = vand.u32 4294901760, %v911_v8  ;;  %v934_v49 = vand.u32 4294901760, %v7302_v29  ;;  %907 = vmatpush.msrb.mxu1 %v906_v50 }
  0xbf   :  { %913 = vmatpush.msrb.mxu1 %v912_v31 }
  0xc1   :  { %919 = vmatpush.msrb.mxu1 %v918_v54 }
  0xce   :  { %v397_v10 = vpop.f32.mrf.mxu0 }
  0xcf   :  { %v398_v59 = vadd.f32 %v397_v10, %v329_v62  ;;  %v7314_v62 = vsub.f32 %v805_v6, %v7290_v16  ;;  %v924_v6 = vand.u32 4294901760, %v923_v63 }
  0xd1   :  { %v940_v12 = vand.u32 4294901760, %v7314_v62  ;;  %925 = vmatpush.msrb.mxu1 %v924_v6 }
  0xd3   :  { %v941_v27 = vsub.f32 %v7314_v62, %v940_v12 }
  0xd5   :  { %v942_v2 = vand.u32 4294901760, %v941_v27 }
  0xd6   :  { %v434_v13 = vpop.f32.mrf.mxu1 }
  0xd7   :  { %v435_v20 = vadd.f32 %v434_v13, %v398_v59  ;;  %v7317_v59 = vand.u32 4294901760, %v801_v30  ;;  %v7326_v13 = vsub.f32 %v803_v18, %v7307_v42 }
  0xd9   :  { %v437_v38 = vmax.f32 %v435_v20, 0.0  ;;  %v929_v20 = vsub.f32 %v7295_v7, %v928_v51  ;;  %v7337_v35 = vsub.f32 %v801_v30, %v7317_v59  ;;  %v946_v36 = vand.u32 4294901760, %v7326_v13  ;;  %858 = vmatpush.msrb.mxu0 %v7317_v59 }
  0xda   :  { %v7358_v30 = vsub.f32 %v797_v0, %v7339_v60 }
  0xdb   :  { %v7292_v26 = vand.u32 4294901760, %v437_v38  ;;  %v930_v18 = vand.u32 4294901760, %v929_v20  ;;  %v952_v8 = vand.u32 4294901760, %v7337_v35  ;;  %v947_v50 = vsub.f32 %v7326_v13, %v946_v36  ;;  %860 = vmatpush.msrb.mxu0 %v7328_v52 }
  0xdc   :  { %v964_v31 = vand.u32 4294901760, %v7358_v30 }
  0xdd   :  { %v488_v34 = vsub.f32 %v437_v38, %v7292_v26  ;;  %593 = vmatmul.f32.vlgmr.msrb.gmra.mxu3 %v7292_v26  ;;  %v935_v38 = vsub.f32 %v7302_v29, %v934_v49  ;;  %931 = vmatpush.msrb.mxu1 %v930_v18  ;;  %v948_v0 = vand.u32 4294901760, %v947_v50 }
  0xde   :  { %1028 = vmatpush.msrb.mxu3 %v7209_v25  ;;  %v965_v54 = vsub.f32 %v7358_v30, %v964_v31  ;;  %862 = vmatpush.msrb.mxu0 %v7339_v60 }
  0xdf   :  { %647 = vmatmul.f32.vlgmr.msra.gmra.mxu0 %v488_v34  ;;  %v489_v10 = vand.u32 4294901760, %v488_v34 }
  0xe0   :  { %1030 = vmatpush.msrb.mxu3 %v7211_v39  ;;  %1069 = vmatpush.msra.mxu0 %v874_v56 }
  0xe1   :  { %686 = vmatmul.f32.vlgmr.msra.gmra.mxu1 %v489_v10  ;;  %v490_v43 = vsub.f32 %v488_v34, %v489_v10  ;;  %v936_v34 = vand.u32 4294901760, %v935_v38  ;;  %v953_v10 = vsub.f32 %v7337_v35, %v952_v8  ;;  %v810_v38 = vld [vmem:[#allocation7 + $0x68] sm:$0xff] }
  0xe2   :  { %1032 = vmatpush.msrb.mxu3 %v7213_v40  ;;  %1073 = vmatpush.msra.mxu0 %v880_v19  ;;  %v820_v19 = vld [vmem:[#allocation7 + $0xb8] sm:$0xff]  ;;  %v7535_v18 = vand.u32 4294901760, %v810_v38 }
  0xe3   :  { %v491_v55 = vand.u32 4294901760, %v490_v43  ;;  %937 = vmatpush.msrb.mxu1 %v936_v34  ;;  %v959_v43 = vsub.f32 %v7348_v44, %v958_v53  ;;  %v954_v63 = vand.u32 4294901760, %v953_v10 }
  0xe4   :  { %1034 = vmatpush.msrb.mxu3 %v7215_v41  ;;  %1077 = vmatpush.msra.mxu0 %v886_v61  ;;  %v7548_v10 = vsub.f32 %v810_v38, %v7535_v18 }
  0xe5   :  { %492 = vmatmul.f32.vlgmr.msrb.gmra.mxu2 %v491_v55  ;;  %792 = vmatmul.f32.vlgmr.msra.gmra.mxu3 %v7292_v26  ;;  %v966_v55 = vand.u32 4294901760, %v965_v54 }
  0xe6   :  { %975 = vmatpush.msrb.mxu2 %v7222_v45  ;;  %1036 = vmatpush.msrb.mxu3 %v7217_v9 }
  0xe7   :  { %943 = vmatpush.msrb.mxu1 %v942_v2  ;;  %1081 = vmatpush.msra.mxu0 %v892_v3 }
  0xe8   :  { %978 = vmatpush.msrb.mxu2 %v7225_v57  ;;  %1038 = vmatpush.msrb.mxu3 %v7219_v22 }
  0xe9   :  { %949 = vmatpush.msrb.mxu1 %v948_v0  ;;  %1085 = vmatpush.msra.mxu0 %v898_v58 }
  0xea   :  { %981 = vmatpush.msrb.mxu2 %v7228_v28  ;;  %1040 = vmatpush.msrb.mxu3 %v7231_v11 }
  0xeb   :  { %955 = vmatpush.msrb.mxu1 %v954_v63  ;;  %1089 = vmatpush.msra.mxu0 %v904_v46  ;;  %v818_v46 = vld [vmem:[#allocation7 + $0xa8] sm:$0xff] }
  0xec   :  { %984 = vmatpush.msrb.mxu2 %v7234_v17  ;;  %1042 = vmatpush.msrb.mxu3 %v7246_v5 }
  0xed   :  { %755 = vmatmul.f32.vlgmr.msra.gmra.mxu2 %v7292_v26  ;;  %v960_v26 = vand.u32 4294901760, %v959_v43  ;;  %1093 = vmatpush.msra.mxu0 %v910_v1 }
  0xee   :  { %987 = vmatpush.msrb.mxu2 %v7237_v24  ;;  %1044 = vmatpush.msrb.mxu3 %v7276_v32 }
  0xef   :  { %961 = vmatpush.msrb.mxu1 %v960_v26  ;;  %1097 = vmatpush.msra.mxu0 %v916_v15  ;;  %v816_v15 = vld [vmem:[#allocation7 + $0x98] sm:$0xff]  ;;  %v1269_v26 = vand.u32 4294901760, %v7548_v10 }
  0xf0   :  { %990 = vmatpush.msrb.mxu2 %v7240_v48  ;;  %1046 = vmatpush.msrb.mxu3 %v7278_v21 }
  0xf1   :  { %967 = vmatpush.msrb.mxu1 %v966_v55  ;;  %1101 = vmatpush.msra.mxu0 %v922_v4  ;;  %v804_v55 = vld [vmem:[#allocation7 + $0x38] sm:$0xff] }
  0xf2   :  { %993 = vmatpush.msrb.mxu2 %v7250_v14  ;;  %1048 = vmatpush.msrb.mxu3 %v7283_v47  ;;  %v7485_v14 = vand.u32 4294901760, %v820_v19 }
  0xf3   :  { %1136 = vmatpush.msra.mxu1 %v7209_v25  ;;  %1105 = vmatpush.msra.mxu0 %v928_v51  ;;  %v828_v25 = vld [vmem:[#allocation7 + $0xf8] sm:$0xff] }
  0xf4   :  { %996 = vmatpush.msrb.mxu2 %v7269_v33  ;;  %1050 = vmatpush.msrb.mxu3 %v7290_v16 }
  0xf5   :  { %1138 = vmatpush.msra.mxu1 %v7211_v39  ;;  %1109 = vmatpush.msra.mxu0 %v934_v49  ;;  %v7455_v39 = vand.u32 4294901760, %v828_v25 }
  0xf6   :  { %999 = vmatpush.msrb.mxu2 %v7287_v23  ;;  %1052 = vmatpush.msrb.mxu3 %v7307_v42 }
  0xf7   :  { %1140 = vmatpush.msra.mxu1 %v7213_v40  ;;  %1113 = vmatpush.msra.mxu0 %v940_v12  ;;  %v826_v40 = vld [vmem:[#allocation7 + $0xe8] sm:$0xff] }
  0xf8   :  { %1002 = vmatpush.msrb.mxu2 %v7295_v7  ;;  %1054 = vmatpush.msrb.mxu3 %v7317_v59  ;;  %v7502_v7 = vand.u32 4294901760, %v816_v15 }
  0xf9   :  { %1142 = vmatpush.msra.mxu1 %v7215_v41  ;;  %1117 = vmatpush.msra.mxu0 %v946_v36  ;;  %v7459_v41 = vsub.f32 %v828_v25, %v7455_v39 }
  0xfa   :  { %1005 = vmatpush.msrb.mxu2 %v7302_v29  ;;  %1056 = vmatpush.msrb.mxu3 %v7328_v52 }
  0xfb   :  { %1144 = vmatpush.msra.mxu1 %v7217_v9  ;;  %1121 = vmatpush.msra.mxu0 %v952_v8  ;;  %v7461_v9 = vand.u32 4294901760, %v826_v40  ;;  %v1215_v45 = vand.u32 4294901760, %v7459_v41 }
  0xfc   :  { %1008 = vmatpush.msrb.mxu2 %v7314_v62  ;;  %1058 = vmatpush.msrb.mxu3 %v7339_v60 }
  0xfd   :  { %1146 = vmatpush.msra.mxu1 %v7219_v22  ;;  %1125 = vmatpush.msra.mxu0 %v958_v53  ;;  %v824_v22 = vld [vmem:[#allocation7 + $0xd8] sm:$0xff]  ;;  %v7468_v28 = vsub.f32 %v826_v40, %v7461_v9  ;;  %v1216_v17 = vsub.f32 %v7459_v41, %v1215_v45 }
  0xfe   :  { %1011 = vmatpush.msrb.mxu2 %v7326_v13  ;;  %v7465_v57 = vand.u32 4294901760, %v824_v22 }
  0xff   :  { %1148 = vmatpush.msra.mxu1 %v7231_v11  ;;  %1129 = vmatpush.msra.mxu0 %v964_v31  ;;  %v822_v11 = vld [vmem:[#allocation7 + $0xc8] sm:$0xff]  ;;  %v1221_v24 = vand.u32 4294901760, %v7468_v28  ;;  %v1217_v61 = vand.u32 4294901760, %v1216_v17  ;;  %v1270_v17 = vsub.f32 %v7548_v10, %v1269_v26 }
 0x100   :  { %1014 = vmatpush.msrb.mxu2 %v7337_v35  ;;  %v7475_v48 = vand.u32 4294901760, %v822_v11  ;;  %v7478_v56 = vsub.f32 %v824_v22, %v7465_v57  ;;  %v806_v31 = vld [vmem:[#allocation7 + $0x48] sm:$0xff]  ;;  %v7562_v22 = vand.u32 4294901760, %v804_v55 }
 0x101   :  { %1150 = vmatpush.msra.mxu1 %v7246_v5  ;;  %v1222_v5 = vsub.f32 %v7468_v28, %v1221_v24  ;;  %1218 = vmatpush.msra.mxu3 %v1217_v61  ;;  %v7554_v63 = vand.u32 4294901760, %v806_v31 }
 0x102   :  { %1017 = vmatpush.msrb.mxu2 %v7348_v44  ;;  %v1227_v3 = vand.u32 4294901760, %v7478_v56  ;;  %v7488_v58 = vsub.f32 %v822_v11, %v7475_v48 }
 0x103   :  { %1152 = vmatpush.msra.mxu1 %v7276_v32  ;;  %v1223_v33 = vand.u32 4294901760, %v1222_v5  ;;  %v7494_v32 = vand.u32 4294901760, %v818_v46  ;;  %v7565_v11 = vsub.f32 %v806_v31, %v7554_v63 }
 0x104   :  { %1020 = vmatpush.msrb.mxu2 %v7358_v30  ;;  %v1228_v1 = vsub.f32 %v7478_v56, %v1227_v3  ;;  %v808_v30 = vld [vmem:[#allocation7 + $0x58] sm:$0xff] }
 0x105   :  { %1154 = vmatpush.msra.mxu1 %v7278_v21  ;;  %v7497_v21 = vsub.f32 %v820_v19, %v7485_v14  ;;  %1224 = vmatpush.msra.mxu3 %v1223_v33  ;;  %v7508_v4 = vsub.f32 %v818_v46, %v7494_v32  ;;  %v7545_v2 = vand.u32 4294901760, %v808_v30  ;;  %v802_v19 = vld [vmem:[#allocation7 + $0x28] sm:$0xff]  ;;  %v1281_v5 = vand.u32 4294901760, %v7565_v11 }
 0x106   :  { %1173 = vmatpush.msra.mxu2 %v7455_v39  ;;  %v1229_v23 = vand.u32 4294901760, %v1228_v1  ;;  %v7575_v46 = vand.u32 4294901760, %v802_v19  ;;  %v7578_v33 = vsub.f32 %v804_v55, %v7562_v22  ;;  %v1271_v1 = vand.u32 4294901760, %v1270_v17 }
 0x107   :  { %1156 = vmatpush.msra.mxu1 %v7283_v47  ;;  %v1233_v47 = vand.u32 4294901760, %v7488_v58  ;;  %v1245_v13 = vand.u32 4294901760, %v7508_v4  ;;  %v7557_v54 = vsub.f32 %v808_v30, %v7545_v2 }
 0x108   :  { %1175 = vmatpush.msra.mxu2 %v7461_v9  ;;  %1230 = vmatpush.msra.mxu3 %v1229_v23 }
 0x109   :  { %1158 = vmatpush.msra.mxu1 %v7290_v16  ;;  %v1239_v16 = vand.u32 4294901760, %v7497_v21  ;;  %v1234_v29 = vsub.f32 %v7488_v58, %v1233_v47  ;;  %v1246_v6 = vsub.f32 %v7508_v4, %v1245_v13  ;;  %v1275_v40 = vand.u32 4294901760, %v7557_v54 }
 0x10a   :  { %1177 = vmatpush.msra.mxu2 %v7465_v57 }
 0x10b   :  { %1160 = vmatpush.msra.mxu1 %v7307_v42  ;;  %v814_v42 = vld [vmem:[#allocation7 + $0x88] sm:$0xff]  ;;  %v1240_v62 = vsub.f32 %v7497_v21, %v1239_v16  ;;  %v1235_v49 = vand.u32 4294901760, %v1234_v29  ;;  %v1247_v8 = vand.u32 4294901760, %v1246_v6  ;;  %v1276_v61 = vsub.f32 %v7557_v54, %v1275_v40 }
 0x10c   :  { %1179 = vmatpush.msra.mxu2 %v7475_v48  ;;  %v7514_v51 = vand.u32 4294901760, %v814_v42  ;;  %v1282_v29 = vsub.f32 %v7565_v11, %v1281_v5  ;;  %v798_v6 = vld [vmem:[#allocation7 + $0x8] sm:$0xff] }
 0x10d   :  { %1162 = vmatpush.msra.mxu1 %v7317_v59  ;;  %v7517_v59 = vsub.f32 %v816_v15, %v7502_v7  ;;  %v1241_v12 = vand.u32 4294901760, %v1240_v62  ;;  %1236 = vmatpush.msra.mxu3 %v1235_v49  ;;  %v800_v15 = vld [vmem:[#allocation7 + $0x18] sm:$0xff]  ;;  %v1277_v23 = vand.u32 4294901760, %v1276_v61  ;;  %v7588_v49 = vsub.f32 %v802_v19, %v7575_v46  ;;  %v7618_v61 = vld [vmem:[%s11038_s4] sm:$0xff] }
 0x10e   :  { %1181 = vmatpush.msra.mxu2 %v7485_v14  ;;  %v7585_v62 = vand.u32 4294901760, %v800_v15 }
 0x10f   :  { %1164 = vmatpush.msra.mxu1 %v7328_v52  ;;  %v812_v52 = vld [vmem:[#allocation7 + $0x78] sm:$0xff]  ;;  %v1251_v20 = vand.u32 4294901760, %v7517_v59  ;;  %1242 = vmatpush.msra.mxu3 %v1241_v12  ;;  %v1293_v38 = vand.u32 4294901760, %v7588_v49 }
 0x110   :  { %1183 = vmatpush.msra.mxu2 %v7494_v32  ;;  %v7522_v35 = vand.u32 4294901760, %v812_v52 }
 0x111   :  { %1166 = vmatpush.msra.mxu1 %v7339_v60  ;;  %v7525_v60 = vsub.f32 %v814_v42, %v7514_v51  ;;  %v1252_v36 = vsub.f32 %v7517_v59, %v1251_v20  ;;  %1248 = vmatpush.msra.mxu3 %v1247_v8  ;;  %v1287_v42 = vand.u32 4294901760, %v7578_v33  ;;  %v7598_v8 = vsub.f32 %v800_v15, %v7585_v62 }
 0x112   :  { %1185 = vmatpush.msra.mxu2 %v7502_v7  ;;  %v7538_v27 = vsub.f32 %v812_v52, %v7522_v35  ;;  %v1283_v52 = vand.u32 4294901760, %v1282_v29 }
 0x113   :  { %v1257_v44 = vand.u32 4294901760, %v7525_v60  ;;  %v1253_v34 = vand.u32 4294901760, %v1252_v36  ;;  %v1288_v12 = vsub.f32 %v7578_v33, %v1287_v42  ;;  %v7595_v36 = vand.u32 4294901760, %v798_v6 }
 0x114   :  { %1187 = vmatpush.msra.mxu2 %v7514_v51  ;;  %v1263_v53 = vand.u32 4294901760, %v7538_v27 }
 0x115   :  { %v1258_v50 = vsub.f32 %v7525_v60, %v1257_v44  ;;  %1254 = vmatpush.msra.mxu3 %v1253_v34  ;;  %v1289_v30 = vand.u32 4294901760, %v1288_v12  ;;  %v1294_v34 = vsub.f32 %v7588_v49, %v1293_v38  ;;  %v7606_v31 = vsub.f32 %v798_v6, %v7595_v36 }
 0x116   :  { %1189 = vmatpush.msra.mxu2 %v7522_v35  ;;  %v1264_v43 = vsub.f32 %v7538_v27, %v1263_v53 }
 0x117   :  { %v1259_v0 = vand.u32 4294901760, %v1258_v50  ;;  %v11044_v50 = vand.u32 4294901760, %v7598_v8  ;;  %v11043_v55 = vand.u32 4294901760, %v7606_v31 }
 0x118   :  { %1191 = vmatpush.msra.mxu2 %v7535_v18  ;;  %v1265_v25 = vand.u32 4294901760, %v1264_v43 }
 0x119   :  { %1260 = vmatpush.msra.mxu3 %v1259_v0  ;;  %v1295_v0 = vand.u32 4294901760, %v1294_v34  ;;  %v1300_v43 = vsub.f32 %v7598_v8, %v11044_v50  ;;  %v1306_v17 = vsub.f32 %v7606_v31, %v11043_v55 }
 0x11a   :  { %1193 = vmatpush.msra.mxu2 %v7545_v2 }
 0x11b   :  { %1266 = vmatpush.msra.mxu3 %v1265_v25  ;;  %v1301_v25 = vand.u32 4294901760, %v1300_v43  ;;  %v1307_v19 = vand.u32 4294901760, %v1306_v17 }
 0x11c   :  { %1195 = vmatpush.msra.mxu2 %v7554_v63 }
 0x11d   :  { %1272 = vmatpush.msra.mxu3 %v1271_v1  ;;  %v454_v1 = vperm.slane %v7618_v61, 1 }
 0x11e   :  { %1197 = vmatpush.msra.mxu2 %v7562_v22 }
 0x11f   :  { %1278 = vmatpush.msra.mxu3 %v1277_v23 }
 0x120   :  { %1199 = vmatpush.msra.mxu2 %v7575_v46 }
 0x121   :  { %1284 = vmatpush.msra.mxu3 %v1283_v52 }
 0x122   :  { %1201 = vmatpush.msra.mxu2 %v7585_v62 }
 0x123   :  { %1290 = vmatpush.msra.mxu3 %v1289_v30 }
 0x124   :  { %1203 = vmatpush.msra.mxu2 %v7595_v36 }
 0x125   :  { %1296 = vmatpush.msra.mxu3 %v1295_v0 }
 0x127   :  { %1302 = vmatpush.msra.mxu3 %v1301_v25 }
 0x129   :  { %1308 = vmatpush.msra.mxu3 %v1307_v19 }
 0x15c   :  { %v648_v12 = vpop.f32.mrf.mxu0 }
 0x15e   :  { %v687_v30 = vpop.f32.mrf.mxu1 }
 0x160   :  { %v594_v15 = vpop.f32.mrf.mxu3 }
 0x168   :  { %v493_v23 = vpop.f32.mrf.mxu2  ;;  %v793_v25 = vpop.f32.mrf.mxu3 }
 0x169   :  { %v494_v29 = vadd.f32 %v493_v23, %v454_v1 }
 0x16b   :  { %v595_v52 = vadd.f32 %v594_v15, %v494_v29 }
 0x16d   :  { %v649_v6 = vadd.f32 %v648_v12, %v595_v52 }
 0x16f   :  { %v688_v34 = vadd.f32 %v687_v30, %v649_v6  ;;  %v1532_v30 = vld [vmem:[#allocation2 + $0xa8] sm:$0xff] }
 0x170   :  { %v756_v0 = vpop.f32.mrf.mxu2 }
 0x171   :  { %v757_v43 = vadd.f32 %v756_v0, %v688_v34 }
 0x173   :  { %v794_v17 = vadd.f32 %v793_v25, %v757_v43  ;;  %v7825_v25 = vand.u32 4294901760, %v1532_v30 }
 0x175   :  { %v796_v19 = vmax.f32 %v794_v17, 0.0 }
 0x177   :  { %v7621_v55 = vand.u32 4294901760, %v796_v19 }
 0x179   :  { %v7624_v50 = vsub.f32 %v796_v19, %v7621_v55  ;;  %969 = vmatmul.f32.vlgmr.msrb.gmra.mxu1 %v7621_v55  ;;  %v1531_v19 = vld [vmem:[#allocation2 + $0xa0] sm:$0xff] }
 0x17a   :  { %1369 = vmatpush.msrb.mxu1 %v7455_v39 }
 0x17b   :  { %1023 = vmatmul.f32.vlgmr.msrb.gmra.mxu2 %v7624_v50  ;;  %v7630_v1 = vand.u32 4294901760, %v7624_v50 }
 0x17c   :  { %1371 = vmatpush.msrb.mxu1 %v7461_v9  ;;  %1410 = vmatpush.msrb.mxu2 %v1215_v45 }
 0x17d   :  { %1062 = vmatmul.f32.vlgmr.msrb.gmra.mxu3 %v7630_v1  ;;  %v866_v15 = vsub.f32 %v7624_v50, %v7630_v1 }
 0x17e   :  { %1373 = vmatpush.msrb.mxu1 %v7465_v57  ;;  %1414 = vmatpush.msrb.mxu2 %v1221_v24 }
 0x17f   :  { %1477 = vmatpush.msrb.mxu3 %v7455_v39  ;;  %v867_v23 = vand.u32 4294901760, %v866_v15  ;;  %v11055_v39 = vand.u32 4294901760, %v7598_v8 }
 0x180   :  { %1375 = vmatpush.msrb.mxu1 %v7475_v48  ;;  %1418 = vmatpush.msrb.mxu2 %v1227_v3 }
 0x181   :  { %1479 = vmatpush.msrb.mxu3 %v7461_v9  ;;  %868 = vmatmul.f32.vlgmr.msrb.gmra.mxu0 %v867_v23  ;;  %v1542_v9 = vld [vmem:[#allocation2 + $0xf8] sm:$0xff] }
 0x182   :  { %1168 = vmatmul.f32.vlgmr.msra.gmra.mxu1 %v7621_v55  ;;  %1316 = vmatpush.msrb.mxu0 %v7459_v41  ;;  %v11056_v41 = vand.u32 4294901760, %v7606_v31  ;;  %v7721_v45 = vand.u32 4294901760, %v1542_v9 }
 0x183   :  { %1377 = vmatpush.msrb.mxu1 %v7485_v14  ;;  %1422 = vmatpush.msrb.mxu2 %v1233_v47 }
 0x184   :  { %1481 = vmatpush.msrb.mxu3 %v7465_v57  ;;  %1209 = vmatmul.f32.vlgmr.msra.gmra.mxu2 %v867_v23  ;;  %v1541_v57 = vld [vmem:[#allocation2 + $0xf0] sm:$0xff]  ;;  %v7837_v23 = vsub.f32 %v1532_v30, %v7825_v25 }
 0x185   :  { %1319 = vmatpush.msrb.mxu0 %v7468_v28  ;;  %1379 = vmatpush.msrb.mxu1 %v7494_v32  ;;  %v7724_v28 = vsub.f32 %v1542_v9, %v7721_v45  ;;  %v7726_v24 = vand.u32 4294901760, %v1541_v57  ;;  %v1530_v9 = vld [vmem:[#allocation2 + $0x98] sm:$0xff] }
 0x186   :  { %1426 = vmatpush.msrb.mxu2 %v1239_v16  ;;  %1483 = vmatpush.msrb.mxu3 %v7475_v48  ;;  %v1540_v48 = vld [vmem:[#allocation2 + $0xe8] sm:$0xff] }
 0x187   :  { %1310 = vmatmul.f32.vlgmr.msra.gmra.mxu3 %v7621_v55  ;;  %1322 = vmatpush.msrb.mxu0 %v7478_v56  ;;  %v1587_v56 = vand.u32 4294901760, %v7724_v28  ;;  %v7732_v3 = vsub.f32 %v1541_v57, %v7726_v24 }
 0x188   :  { %1381 = vmatpush.msrb.mxu1 %v7502_v7  ;;  %1430 = vmatpush.msrb.mxu2 %v1245_v13 }
 0x189   :  { %1485 = vmatpush.msrb.mxu3 %v7485_v14  ;;  %1325 = vmatpush.msrb.mxu0 %v7488_v58  ;;  %v7734_v14 = vand.u32 4294901760, %v1540_v48  ;;  %v1539_v58 = vld [vmem:[#allocation2 + $0xe0] sm:$0xff] }
 0x18a   :  { %1383 = vmatpush.msrb.mxu1 %v7514_v51  ;;  %1434 = vmatpush.msrb.mxu2 %v1251_v20  ;;  %v7746_v16 = vand.u32 4294901760, %v1539_v58 }
 0x18b   :  { %1487 = vmatpush.msrb.mxu3 %v7494_v32  ;;  %1131 = vmatmul.f32.vlgmr.msra.gmra.mxu0 %v7621_v55  ;;  %v1588_v32 = vsub.f32 %v7724_v28, %v1587_v56  ;;  %v7744_v47 = vsub.f32 %v1540_v48, %v7734_v14  ;;  %v1647_v48 = vand.u32 4294901760, %v7837_v23 }
 0x18c   :  { %1328 = vmatpush.msrb.mxu0 %v7497_v21  ;;  %1385 = vmatpush.msrb.mxu1 %v7522_v35  ;;  %v1593_v21 = vand.u32 4294901760, %v7732_v3  ;;  %v7756_v13 = vsub.f32 %v1539_v58, %v7746_v16 }
 0x18d   :  { %1438 = vmatpush.msrb.mxu2 %v1257_v44  ;;  %1489 = vmatpush.msrb.mxu3 %v7502_v7  ;;  %v1538_v7 = vld [vmem:[#allocation2 + $0xd8] sm:$0xff] }
 0x18e   :  { %1331 = vmatpush.msrb.mxu0 %v7508_v4  ;;  %1387 = vmatpush.msrb.mxu1 %v7535_v18  ;;  %v1589_v4 = vand.u32 4294901760, %v1588_v32  ;;  %v7760_v20 = vand.u32 4294901760, %v1538_v7  ;;  %v7849_v32 = vand.u32 4294901760, %v1530_v9 }
 0x18f   :  { %1442 = vmatpush.msrb.mxu2 %v1263_v53  ;;  %1491 = vmatpush.msrb.mxu3 %v7514_v51  ;;  %v1594_v51 = vsub.f32 %v7732_v3, %v1593_v21 }
 0x190   :  { %1334 = vmatpush.msrb.mxu0 %v7517_v59  ;;  %1389 = vmatpush.msrb.mxu1 %v7545_v2  ;;  %v1599_v59 = vand.u32 4294901760, %v7744_v47  ;;  %v7771_v53 = vsub.f32 %v1538_v7, %v7760_v20 }
 0x191   :  { %1446 = vmatpush.msrb.mxu2 %v1269_v26  ;;  %1493 = vmatpush.msrb.mxu3 %v7522_v35  ;;  %v1537_v35 = vld [vmem:[#allocation2 + $0xd0] sm:$0xff] }
 0x192   :  { %1337 = vmatpush.msrb.mxu0 %v7525_v60  ;;  %1391 = vmatpush.msrb.mxu1 %v7554_v63  ;;  %v1595_v60 = vand.u32 4294901760, %v1594_v51  ;;  %v1600_v44 = vsub.f32 %v7744_v47, %v1599_v59  ;;  %v1648_v51 = vsub.f32 %v7837_v23, %v1647_v48 }
 0x193   :  { %1450 = vmatpush.msrb.mxu2 %v1275_v40  ;;  %1495 = vmatpush.msrb.mxu3 %v7535_v18  ;;  %v1605_v18 = vand.u32 4294901760, %v7756_v13  ;;  %v1611_v40 = vand.u32 4294901760, %v7771_v53 }
 0x194   :  { %1340 = vmatpush.msrb.mxu0 %v7538_v27  ;;  %1393 = vmatpush.msrb.mxu1 %v7562_v22  ;;  %v7767_v27 = vand.u32 4294901760, %v1537_v35 }
 0x195   :  { %1454 = vmatpush.msrb.mxu2 %v1281_v5  ;;  %1497 = vmatpush.msrb.mxu3 %v7545_v2  ;;  %v1536_v2 = vld [vmem:[#allocation2 + $0xc8] sm:$0xff] }
 0x196   :  { %1343 = vmatpush.msrb.mxu0 %v7548_v10  ;;  %1395 = vmatpush.msrb.mxu1 %v7575_v46  ;;  %v1601_v10 = vand.u32 4294901760, %v1600_v44  ;;  %v7781_v26 = vand.u32 4294901760, %v1536_v2 }
 0x197   :  { %1458 = vmatpush.msrb.mxu2 %v1287_v42  ;;  %1499 = vmatpush.msrb.mxu3 %v7554_v63  ;;  %v1606_v63 = vsub.f32 %v7756_v13, %v1605_v18  ;;  %v1612_v42 = vsub.f32 %v7771_v53, %v1611_v40 }
 0x198   :  { %1346 = vmatpush.msrb.mxu0 %v7557_v54  ;;  %1397 = vmatpush.msrb.mxu1 %v7585_v62  ;;  %v7779_v54 = vsub.f32 %v1537_v35, %v7767_v27 }
 0x199   :  { %1462 = vmatpush.msrb.mxu2 %v1293_v38  ;;  %1501 = vmatpush.msrb.mxu3 %v7562_v22  ;;  %v1535_v22 = vld [vmem:[#allocation2 + $0xc0] sm:$0xff] }
 0x19a   :  { %1349 = vmatpush.msrb.mxu0 %v7565_v11  ;;  %1399 = vmatpush.msrb.mxu1 %v7595_v36  ;;  %v1607_v11 = vand.u32 4294901760, %v1606_v63  ;;  %v1617_v5 = vand.u32 4294901760, %v7779_v54  ;;  %v1649_v63 = vand.u32 4294901760, %v1648_v51 }
 0x19b   :  { %1466 = vmatpush.msrb.mxu2 %v11055_v39  ;;  %1503 = vmatpush.msrb.mxu3 %v7575_v46  ;;  %v7788_v46 = vsub.f32 %v1536_v2, %v7781_v26  ;;  %v7839_v39 = vand.u32 4294901760, %v1531_v19 }
 0x19c   :  { %1403 = vmatmul.f32.vlgmr.msrb.gmra.mxu1 %v7630_v1  ;;  %1352 = vmatpush.msrb.mxu0 %v7578_v33  ;;  %v7790_v33 = vand.u32 4294901760, %v1535_v22 }
 0x19d   :  { %1470 = vmatpush.msrb.mxu2 %v11056_v41  ;;  %1505 = vmatpush.msrb.mxu3 %v7585_v62  ;;  %v1534_v62 = vld [vmem:[#allocation2 + $0xb8] sm:$0xff]  ;;  %v1623_v38 = vand.u32 4294901760, %v7788_v46  ;;  %v7847_v58 = vsub.f32 %v1531_v19, %v7839_v39 }
 0x19e   :  { %1472 = vmatmul.f32.vlgmr.msrb.gmra.mxu2 %v7621_v55  ;;  %1355 = vmatpush.msrb.mxu0 %v7588_v49  ;;  %v1618_v49 = vsub.f32 %v7779_v54, %v1617_v5 }
 0x19f   :  { %1507 = vmatpush.msrb.mxu3 %v7595_v36  ;;  %1688 = vmatpush.msra.mxu2 %v7724_v28  ;;  %v7803_v36 = vsub.f32 %v1535_v22, %v7790_v33  ;;  %v1624_v29 = vsub.f32 %v7788_v46, %v1623_v38  ;;  %v1653_v35 = vand.u32 4294901760, %v7847_v58 }
 0x1a0   :  { %1509 = vmatmul.f32.vlgmr.msrb.gmra.mxu3 %v7621_v55  ;;  %1358 = vmatpush.msrb.mxu0 %v7598_v8  ;;  %v7805_v8 = vand.u32 4294901760, %v1534_v62  ;;  %v1619_v55 = vand.u32 4294901760, %v1618_v49  ;;  %v1527_v49 = vld [vmem:[#allocation2 + $0x80] sm:$0xff] }
 0x1a1   :  { %1741 = vmatpush.msra.mxu3 %v7721_v45  ;;  %1691 = vmatpush.msra.mxu2 %v7732_v3  ;;  %v1629_v52 = vand.u32 4294901760, %v7803_v36  ;;  %v1625_v34 = vand.u32 4294901760, %v1624_v29  ;;  %v1654_v22 = vsub.f32 %v7847_v58, %v1653_v35  ;;  %v7885_v29 = vand.u32 4294901760, %v1527_v49 }
 0x1a2   :  { %1361 = vmatpush.msrb.mxu0 %v7606_v31  ;;  %1590 = vmatpush.msra.mxu1 %v1589_v4  ;;  %v1533_v31 = vld [vmem:[#allocation2 + $0xb0] sm:$0xff]  ;;  %v7815_v12 = vsub.f32 %v1534_v62, %v7805_v8 }
 0x1a3   :  { %1364 = vmatmul.f32.vlgmr.msrb.gmra.mxu0 %v7624_v50  ;;  %1743 = vmatpush.msra.mxu3 %v7726_v24  ;;  %v1613_v50 = vand.u32 4294901760, %v1612_v42  ;;  %v7818_v6 = vand.u32 4294901760, %v1533_v31  ;;  %v1630_v0 = vsub.f32 %v7803_v36, %v1629_v52  ;;  %v1529_v4 = vld [vmem:[#allocation2 + $0x90] sm:$0xff]  ;;  %v1676_v19 = vsub.f32 %v1527_v49, %v7885_v29 }
 0x1a4   :  { %1545 = vmatpush.msra.mxu0 %v7721_v45  ;;  %1694 = vmatpush.msra.mxu2 %v7744_v47  ;;  %v1635_v43 = vand.u32 4294901760, %v7815_v12  ;;  %v7864_v44 = vand.u32 4294901760, %v1529_v4 }
 0x1a5   :  { %1745 = vmatpush.msra.mxu3 %v7734_v14  ;;  %1596 = vmatpush.msra.mxu1 %v1595_v60  ;;  %v7830_v17 = vsub.f32 %v1533_v31, %v7818_v6  ;;  %v1631_v1 = vand.u32 4294901760, %v1630_v0  ;;  %v7862_v60 = vsub.f32 %v1530_v9, %v7849_v32  ;;  %v1677_v9 = vand.u32 4294901760, %v1676_v19 }
 0x1a6   :  { %1547 = vmatpush.msra.mxu0 %v7726_v24  ;;  %1697 = vmatpush.msra.mxu2 %v7756_v13  ;;  %v1636_v15 = vsub.f32 %v7815_v12, %v1635_v43  ;;  %v7874_v42 = vsub.f32 %v1529_v4, %v7864_v44 }
 0x1a7   :  { %1747 = vmatpush.msra.mxu3 %v7746_v16  ;;  %1602 = vmatpush.msra.mxu1 %v1601_v10  ;;  %v1641_v41 = vand.u32 4294901760, %v7830_v17  ;;  %v1528_v10 = vld [vmem:[#allocation2 + $0x88] sm:$0xff] }
 0x1a8   :  { %1549 = vmatpush.msra.mxu0 %v7734_v14  ;;  %1700 = vmatpush.msra.mxu2 %v7771_v53  ;;  %v1637_v57 = vand.u32 4294901760, %v1636_v15  ;;  %v7878_v62 = vand.u32 4294901760, %v1528_v10 }
 0x1a9   :  { %1749 = vmatpush.msra.mxu3 %v7760_v20  ;;  %1608 = vmatpush.msra.mxu1 %v1607_v11  ;;  %v1642_v7 = vsub.f32 %v7830_v17, %v1641_v41  ;;  %v1659_v11 = vand.u32 4294901760, %v7862_v60 }
 0x1aa   :  { %1551 = vmatpush.msra.mxu0 %v7746_v16  ;;  %1703 = vmatpush.msra.mxu2 %v7779_v54  ;;  %v1670_v30 = vsub.f32 %v1528_v10, %v7878_v62 }
 0x1ab   :  { %1751 = vmatpush.msra.mxu3 %v7767_v27  ;;  %1614 = vmatpush.msra.mxu1 %v1613_v50  ;;  %v1643_v2 = vand.u32 4294901760, %v1642_v7  ;;  %v1655_v50 = vand.u32 4294901760, %v1654_v22  ;;  %v1660_v31 = vsub.f32 %v7862_v60, %v1659_v11  ;;  %v1678_v7 = vsub.f32 %v1676_v19, %v1677_v9  ;;  %v1896_v22 = vld [vmem:[#allocation5 + $0xc8] sm:$0xff] }
 0x1ac   :  { %1553 = vmatpush.msra.mxu0 %v7760_v20  ;;  %1706 = vmatpush.msra.mxu2 %v7788_v46 }
 0x1ad   :  { %1753 = vmatpush.msra.mxu3 %v7781_v26  ;;  %1620 = vmatpush.msra.mxu1 %v1619_v55  ;;  %v1665_v55 = vand.u32 4294901760, %v7874_v42  ;;  %v1679_v51 = vand.u32 4294901760, %v1678_v7 }
 0x1ae   :  { %1555 = vmatpush.msra.mxu0 %v7767_v27  ;;  %1709 = vmatpush.msra.mxu2 %v7803_v36 }
 0x1af   :  { %1755 = vmatpush.msra.mxu3 %v7790_v33  ;;  %1626 = vmatpush.msra.mxu1 %v1625_v34  ;;  %v1661_v34 = vand.u32 4294901760, %v1660_v31  ;;  %v1666_v0 = vsub.f32 %v7874_v42, %v1665_v55 }
 0x1b0   :  { %1557 = vmatpush.msra.mxu0 %v7781_v26  ;;  %1712 = vmatpush.msra.mxu2 %v7815_v12  ;;  %v1518_v12 = vperm.slane %v7618_v61, 4 }
 0x1b1   :  { %1757 = vmatpush.msra.mxu3 %v7805_v8  ;;  %1632 = vmatpush.msra.mxu1 %v1631_v1  ;;  %v1671_v1 = vand.u32 4294901760, %v1670_v30  ;;  %v1667_v15 = vand.u32 4294901760, %v1666_v0 }
 0x1b2   :  { %1559 = vmatpush.msra.mxu0 %v7790_v33  ;;  %1715 = vmatpush.msra.mxu2 %v7830_v17 }
 0x1b3   :  { %1759 = vmatpush.msra.mxu3 %v7818_v6  ;;  %1638 = vmatpush.msra.mxu1 %v1637_v57  ;;  %v1672_v57 = vsub.f32 %v1670_v30, %v1671_v1 }
 0x1b4   :  { %1561 = vmatpush.msra.mxu0 %v7805_v8  ;;  %1718 = vmatpush.msra.mxu2 %v7837_v23  ;;  %v6546_v23 = vld [vmem:[%s11034_s0] sm:$0x3] }
 0x1b5   :  { %1761 = vmatpush.msra.mxu3 %v7825_v25  ;;  %1644 = vmatpush.msra.mxu1 %v1643_v2  ;;  %v1673_v4 = vand.u32 4294901760, %v1672_v57  ;;  %v829_v2 = vperm.slane %v7618_v61, 2 }
 0x1b6   :  { %1563 = vmatpush.msra.mxu0 %v7818_v6  ;;  %1721 = vmatpush.msra.mxu2 %v7847_v58 }
 0x1b7   :  { %1763 = vmatpush.msra.mxu3 %v7839_v39  ;;  %1650 = vmatpush.msra.mxu1 %v1649_v63 }
 0x1b8   :  { %1565 = vmatpush.msra.mxu0 %v7825_v25  ;;  %1724 = vmatpush.msra.mxu2 %v7862_v60  ;;  %v1897_v60 = vld [vmem:[#allocation5 + $0xd0] sm:$0xff] }
 0x1b9   :  { %1765 = vmatpush.msra.mxu3 %v7849_v32  ;;  %1656 = vmatpush.msra.mxu1 %v1655_v50  ;;  %v7961_v63 = vand.u32 4294901760, %v1897_v60  ;;  %v7973_v50 = vand.u32 4294901760, %v1896_v22 }
 0x1ba   :  { %1567 = vmatpush.msra.mxu0 %v7839_v39  ;;  %1727 = vmatpush.msra.mxu2 %v7874_v42 }
 0x1bb   :  { %1767 = vmatpush.msra.mxu3 %v7864_v44  ;;  %1662 = vmatpush.msra.mxu1 %v1661_v34  ;;  %v7987_v34 = vld [vmem:[%s11038_s4 + $0x10] sm:$0xff]  ;;  %v7996_v7 = vsub.f32 %v1896_v22, %v7973_v50 }
 0x1bc   :  { %1569 = vmatpush.msra.mxu0 %v7849_v32  ;;  %1730 = vmatpush.msra.mxu2 %v1670_v30  ;;  %v7982_v30 = vsub.f32 %v1897_v60, %v7961_v63 }
 0x1bd   :  { %1769 = vmatpush.msra.mxu3 %v7878_v62  ;;  %1668 = vmatpush.msra.mxu1 %v1667_v15 }
 0x1be   :  { %1571 = vmatpush.msra.mxu0 %v7864_v44  ;;  %1733 = vmatpush.msra.mxu2 %v1676_v19 }
 0x1bf   :  { %1771 = vmatpush.msra.mxu3 %v7885_v29  ;;  %1674 = vmatpush.msra.mxu1 %v1673_v4 }
 0x1c0   :  { %1573 = vmatpush.msra.mxu0 %v7878_v62 }
 0x1c1   :  { %1680 = vmatpush.msra.mxu1 %v1679_v51 }
 0x1c2   :  { %1575 = vmatpush.msra.mxu0 %v7885_v29 }
 0x1c3   :  { %1849 = vmatpush.msrb.mxu1 %v7721_v45 }
 0x1c4   :  { %1782 = vmatpush.msrb.mxu0 %v1587_v56 }
 0x1c5   :  { %1851 = vmatpush.msrb.mxu1 %v7726_v24 }
 0x1c6   :  { %1786 = vmatpush.msrb.mxu0 %v1593_v21 }
 0x1c7   :  { %1853 = vmatpush.msrb.mxu1 %v7734_v14 }
 0x1c8   :  { %1790 = vmatpush.msrb.mxu0 %v1599_v59 }
 0x1c9   :  { %1855 = vmatpush.msrb.mxu1 %v7746_v16 }
 0x1ca   :  { %1794 = vmatpush.msrb.mxu0 %v1605_v18 }
 0x1cb   :  { %1857 = vmatpush.msrb.mxu1 %v7760_v20 }
 0x1cc   :  { %1798 = vmatpush.msrb.mxu0 %v1611_v40 }
 0x1cd   :  { %1859 = vmatpush.msrb.mxu1 %v7767_v27  ;;  %v76_v27 = vld [vmem:[%s11038_s4 + $0x8] sm:$0xff] }
 0x1ce   :  { %1802 = vmatpush.msrb.mxu0 %v1617_v5  ;;  %v830_v54 = vperm.slane %v76_v27, 2  ;;  %v1891_v27 = vld [vmem:[#allocation5 + $0xa0] sm:$0xff] }
 0x1cf   :  { %1861 = vmatpush.msrb.mxu1 %v7781_v26 }
 0x1d0   :  { %1806 = vmatpush.msrb.mxu0 %v1623_v38 }
 0x1d1   :  { %1863 = vmatpush.msrb.mxu1 %v7790_v33 }
 0x1d2   :  { %1810 = vmatpush.msrb.mxu0 %v1629_v52 }
 0x1d3   :  { %1865 = vmatpush.msrb.mxu1 %v7805_v8 }
 0x1d4   :  { %1814 = vmatpush.msrb.mxu0 %v1635_v43  ;;  %v1901_v43 = vld [vmem:[#allocation5 + $0xf0] sm:$0xff] }
 0x1d5   :  { %1867 = vmatpush.msrb.mxu1 %v7818_v6  ;;  %v1902_v6 = vld [vmem:[#allocation5 + $0xf8] sm:$0xff] }
 0x1d6   :  { %1818 = vmatpush.msrb.mxu0 %v1641_v41  ;;  %v7951_v41 = vand.u32 4294901760, %v1902_v6 }
 0x1d7   :  { %1869 = vmatpush.msrb.mxu1 %v7825_v25  ;;  %v1900_v25 = vld [vmem:[#allocation5 + $0xe8] sm:$0xff] }
 0x1d8   :  { %1822 = vmatpush.msrb.mxu0 %v1647_v48  ;;  %v7953_v48 = vand.u32 4294901760, %v1901_v43  ;;  %v7955_v58 = vand.u32 4294901760, %v1900_v25  ;;  %v7964_v42 = vsub.f32 %v1902_v6, %v7951_v41  ;;  %1905 = vmatpush.msrb.mxu2 %v7951_v41  ;;  %v1889_v6 = vld [vmem:[#allocation5 + $0x90] sm:$0xff] }
 0x1d9   :  { %1871 = vmatpush.msrb.mxu1 %v7839_v39 }
 0x1da   :  { %1826 = vmatpush.msrb.mxu0 %v1653_v35  ;;  %v1898_v35 = vld [vmem:[#allocation5 + $0xd8] sm:$0xff]  ;;  %v7970_v49 = vsub.f32 %v1900_v25, %v7955_v58  ;;  %v1947_v0 = vand.u32 4294901760, %v7964_v42  ;;  %1907 = vmatpush.msrb.mxu2 %v7953_v48 }
 0x1db   :  { %1873 = vmatpush.msrb.mxu1 %v7849_v32  ;;  %v1899_v32 = vld [vmem:[#allocation5 + $0xe0] sm:$0xff]  ;;  %v7959_v10 = vand.u32 4294901760, %v1898_v35 }
 0x1dc   :  { %1830 = vmatpush.msrb.mxu0 %v1659_v11  ;;  %v7957_v61 = vand.u32 4294901760, %v1899_v32  ;;  %v1948_v4 = vsub.f32 %v7964_v42, %v1947_v0  ;;  %1909 = vmatpush.msrb.mxu2 %v7955_v58 }
 0x1dd   :  { %1875 = vmatpush.msrb.mxu1 %v7864_v44 }
 0x1de   :  { %1834 = vmatpush.msrb.mxu0 %v1665_v55  ;;  %v7976_v55 = vsub.f32 %v1899_v32, %v7957_v61  ;;  %1911 = vmatpush.msrb.mxu2 %v7957_v61 }
 0x1df   :  { %1877 = vmatpush.msrb.mxu1 %v7878_v62  ;;  %v7967_v62 = vsub.f32 %v1901_v43, %v7953_v48 }
 0x1e0   :  { %1838 = vmatpush.msrb.mxu0 %v1671_v1  ;;  %v1959_v1 = vand.u32 4294901760, %v7970_v49  ;;  %1913 = vmatpush.msrb.mxu2 %v7959_v10 }
 0x1e1   :  { %1879 = vmatpush.msrb.mxu1 %v7885_v29  ;;  %v7979_v29 = vsub.f32 %v1898_v35, %v7959_v10  ;;  %v1953_v19 = vand.u32 4294901760, %v7967_v62 }
 0x1e2   :  { %1842 = vmatpush.msrb.mxu0 %v1677_v9  ;;  %v1965_v9 = vand.u32 4294901760, %v7976_v55  ;;  %1915 = vmatpush.msrb.mxu2 %v7961_v63 }
 0x1e3   :  { %v1971_v57 = vand.u32 4294901760, %v7979_v29  ;;  %v1954_v51 = vsub.f32 %v7967_v62, %v1953_v19 }
 0x1e4   :  { %1917 = vmatpush.msrb.mxu2 %v7973_v50 }
 0x1f6   :  { %v970_v3 = vpop.f32.mrf.mxu1 }
 0x1fe   :  { %v869_v28 = vpop.f32.mrf.mxu0  ;;  %v1024_v47 = vpop.f32.mrf.mxu2 }
 0x1ff   :  { %v870_v56 = vadd.f32 %v869_v28, %v829_v2  ;;  %v1169_v18 = vpop.f32.mrf.mxu1  ;;  %v1960_v2 = vsub.f32 %v7970_v49, %v1959_v1 }
 0x200   :  { %v1063_v13 = vpop.f32.mrf.mxu3 }
 0x201   :  { %v971_v21 = vadd.f32 %v970_v3, %v870_v56  ;;  %v1524_v56 = vperm.slane %v7987_v34, 3  ;;  %v1966_v3 = vsub.f32 %v7976_v55, %v1965_v9 }
 0x203   :  { %v1025_v59 = vadd.f32 %v1024_v47, %v971_v21  ;;  %v1977_v21 = vand.u32 4294901760, %v7982_v30  ;;  %v1895_v47 = vld [vmem:[#allocation5 + $0xc0] sm:$0xff] }
 0x205   :  { %v1064_v45 = vadd.f32 %v1063_v13, %v1025_v59  ;;  %v1894_v59 = vld [vmem:[#allocation5 + $0xb8] sm:$0xff]  ;;  %v1893_v13 = vld [vmem:[#allocation5 + $0xb0] sm:$0xff] }
 0x207   :  { %v1210_v26 = vpop.f32.mrf.mxu2 }
 0x208   :  { %v1132_v24 = vpop.f32.mrf.mxu0  ;;  %v1211_v40 = vadd.f32 %v1210_v26, %v830_v54  ;;  %v8021_v54 = vand.u32 4294901760, %v1895_v47  ;;  %v8024_v26 = vand.u32 4294901760, %v1894_v59 }
 0x209   :  { %v1133_v14 = vadd.f32 %v1132_v24, %v1064_v45  ;;  %v1949_v45 = vand.u32 4294901760, %v1948_v4  ;;  %v1955_v24 = vand.u32 4294901760, %v1954_v51  ;;  %v1888_v51 = vld [vmem:[#allocation5 + $0x88] sm:$0xff] }
 0x20a   :  { %v1311_v5 = vpop.f32.mrf.mxu3  ;;  %1919 = vmatpush.msrb.mxu2 %v8021_v54 }
 0x20b   :  { %v1170_v16 = vadd.f32 %v1169_v18, %v1133_v14  ;;  %v1312_v46 = vadd.f32 %v1311_v5, %v1211_v40  ;;  %v1892_v14 = vld [vmem:[#allocation5 + $0xa8] sm:$0xff]  ;;  %1950 = vmatpush.msrb.mxu3 %v1949_v45  ;;  %v8026_v40 = vand.u32 4294901760, %v1893_v13  ;;  %v1967_v5 = vand.u32 4294901760, %v1966_v3 }
 0x20c   :  { %1921 = vmatpush.msrb.mxu2 %v8024_v26 }
 0x20d   :  { %6525 = vtanh.f32 %v1170_v16  ;;  %v1972_v16 = vsub.f32 %v7979_v29, %v1971_v57  ;;  %1956 = vmatpush.msrb.mxu3 %v1955_v24 }
 0x20e   :  { %1923 = vmatpush.msrb.mxu2 %v8026_v40 }
 0x20f   :  { %v1973_v25 = vand.u32 4294901760, %v1972_v16 }
 0x213   :  { %v6526_v20 = vpop.eup %6525 }
 0x214   :  { %v1514_v53 = vmul.f32 1.442695, %v6526_v20  ;;  %v1983_v20 = vand.u32 4294901760, %v7996_v7 }
 0x216   :  { %6527 = vpow2.f32 %v1514_v53  ;;  %v1961_v53 = vand.u32 4294901760, %v1960_v2 }
 0x218   :  { %1962 = vmatpush.msrb.mxu3 %v1961_v53 }
 0x219   :  { %v1404_v8 = vpop.f32.mrf.mxu1 }
 0x21a   :  { %1968 = vmatpush.msrb.mxu3 %v1967_v5 }
 0x21c   :  { %v6528_v38 = vpop.eup %6527  ;;  %1974 = vmatpush.msrb.mxu3 %v1973_v25 }
 0x21d   :  { %v1516_v39 = vmul.f32 %v6546_v23, %v6528_v38  ;;  %v1890_v38 = vld [vmem:[#allocation5 + $0x98] sm:$0xff] }
 0x21e   :  { %v8060_v35 = vand.u32 4294901760, %v1890_v38 }
 0x220   :  { %v1365_v33 = vpop.f32.mrf.mxu0  ;;  %v8082_v3 = vsub.f32 %v1890_v38, %v8060_v35 }
 0x221   :  { %v1366_v36 = vadd.f32 %v1365_v33, %v1312_v46  ;;  %v1473_v17 = vpop.f32.mrf.mxu2  ;;  %v1978_v46 = vsub.f32 %v7982_v30, %v1977_v21  ;;  %v8034_v33 = vand.u32 4294901760, %v1892_v14 }
 0x222   :  { %v2019_v5 = vand.u32 4294901760, %v8082_v3 }
 0x223   :  { %v1405_v52 = vadd.f32 %v1404_v8, %v1366_v36  ;;  %v1510_v11 = vpop.f32.mrf.mxu3  ;;  %v8037_v36 = vsub.f32 %v1895_v47, %v8021_v54  ;;  %v8040_v8 = vsub.f32 %v1894_v59, %v8024_v26  ;;  %v8058_v32 = vsub.f32 %v1892_v14, %v8034_v33  ;;  %1925 = vmatpush.msrb.mxu2 %v8034_v33 }
 0x224   :  { %v1979_v22 = vand.u32 4294901760, %v1978_v46  ;;  %v8093_v14 = vand.u32 4294901760, %v1888_v51 }
 0x225   :  { %v1474_v44 = vadd.f32 %v1473_v17, %v1405_v52  ;;  %v8044_v52 = vsub.f32 %v1893_v13, %v8026_v40  ;;  %v1984_v17 = vsub.f32 %v7996_v7, %v1983_v20  ;;  %v1989_v23 = vand.u32 4294901760, %v8037_v36 }
 0x226   :  { %1980 = vmatpush.msrb.mxu3 %v1979_v22  ;;  %v8102_v46 = vsub.f32 %v1888_v51, %v8093_v14 }
 0x227   :  { %v1511_v31 = vadd.f32 %v1510_v11, %v1474_v44  ;;  %v8065_v44 = vand.u32 4294901760, %v1889_v6  ;;  %v1990_v11 = vsub.f32 %v8037_v36, %v1989_v23  ;;  %v1985_v2 = vand.u32 4294901760, %v1984_v17 }
 0x228   :  { %v2031_v22 = vand.u32 4294901760, %v8102_v46 }
 0x229   :  { %v1517_v15 = vadd.f32 %v1516_v39, %v1511_v31  ;;  %v1995_v39 = vand.u32 4294901760, %v8040_v8  ;;  %v2001_v31 = vand.u32 4294901760, %v8044_v52  ;;  %v8085_v59 = vsub.f32 %v1889_v6, %v8065_v44  ;;  %1986 = vmatpush.msrb.mxu3 %v1985_v2 }
 0x22a   :  { %v1991_v13 = vand.u32 4294901760, %v1990_v11  ;;  %v2032_v2 = vsub.f32 %v8102_v46, %v2031_v22 }
 0x22b   :  { %v1519_v28 = vmul.f32 %v1518_v12, %v1517_v15  ;;  %v8046_v12 = vand.u32 4294901760, %v1891_v27  ;;  %v2002_v45 = vsub.f32 %v8044_v52, %v2001_v31  ;;  %v2025_v25 = vand.u32 4294901760, %v8085_v59 }
 0x22c   :  { %1992 = vmatpush.msrb.mxu3 %v1991_v13 }
 0x22d   :  { %v8015_v18 = vadd.f32 %v1519_v28, %v6861_v37  ;;  %v8073_v15 = vsub.f32 %v1891_v27, %v8046_v12  ;;  %v1996_v28 = vsub.f32 %v8040_v8, %v1995_v39  ;;  %v2003_v38 = vand.u32 4294901760, %v2002_v45  ;;  %1927 = vmatpush.msrb.mxu2 %v8046_v12 }
 0x22f   :  { %v8029_v37 = vmul.f32 %v1524_v56, %v8015_v18  ;;  %v2007_v56 = vand.u32 4294901760, %v8058_v32  ;;  %v2013_v24 = vand.u32 4294901760, %v8073_v15  ;;  %v1997_v27 = vand.u32 4294901760, %v1996_v28  ;;  %1929 = vmatpush.msrb.mxu2 %v8060_v35 }
 0x231   :  { %v8049_v43 = vand.u32 4294901760, %v8029_v37  ;;  %v2008_v53 = vsub.f32 %v8058_v32, %v2007_v56  ;;  %v2014_v6 = vsub.f32 %v8073_v15, %v2013_v24  ;;  %1998 = vmatpush.msrb.mxu3 %v1997_v27  ;;  %1931 = vmatpush.msrb.mxu2 %v8065_v44 }
 0x233   :  { %1682 = vmatmul.f32.vlgmr.msra.gmra.mxu1 %v8049_v43  ;;  %v1577_v60 = vsub.f32 %v8029_v37, %v8049_v43  ;;  %v2009_v17 = vand.u32 4294901760, %v2008_v53  ;;  %2004 = vmatpush.msrb.mxu3 %v2003_v38  ;;  %v2015_v11 = vand.u32 4294901760, %v2014_v6  ;;  %v2259_v38 = vld [vmem:[#allocation7 + $0x160] sm:$0xff] }
 0x234   :  { %2101 = vmatpush.msra.mxu1 %v7951_v41  ;;  %1933 = vmatpush.msrb.mxu2 %v8093_v14 }
 0x235   :  { %1736 = vmatmul.f32.vlgmr.msra.gmra.mxu2 %v1577_v60  ;;  %v1578_v4 = vand.u32 4294901760, %v1577_v60  ;;  %2010 = vmatpush.msrb.mxu3 %v2009_v17 }
 0x236   :  { %2103 = vmatpush.msra.mxu1 %v7953_v48 }
 0x237   :  { %1775 = vmatmul.f32.vlgmr.msra.gmra.mxu3 %v1578_v4  ;;  %v1579_v47 = vsub.f32 %v1577_v60, %v1578_v4  ;;  %v2020_v60 = vsub.f32 %v8082_v3, %v2019_v5  ;;  %v2026_v4 = vsub.f32 %v8085_v59, %v2025_v25 }
 0x238   :  { %2105 = vmatpush.msra.mxu1 %v7955_v58  ;;  %2016 = vmatpush.msrb.mxu3 %v2015_v11 }
 0x239   :  { %v1580_v16 = vand.u32 4294901760, %v1579_v47  ;;  %v2021_v51 = vand.u32 4294901760, %v2020_v60  ;;  %v2027_v28 = vand.u32 4294901760, %v2026_v4  ;;  %v2033_v47 = vand.u32 4294901760, %v2032_v2  ;;  %v2257_v60 = vld [vmem:[#allocation7 + $0x150] sm:$0xff] }
 0x23a   :  { %2107 = vmatpush.msra.mxu1 %v7957_v61 }
 0x23b   :  { %1581 = vmatmul.f32.vlgmr.msra.gmra.mxu0 %v1580_v16  ;;  %1881 = vmatmul.f32.vlgmr.msrb.gmra.mxu1 %v8049_v43 }
 0x23c   :  { %2048 = vmatpush.msra.mxu0 %v7964_v42  ;;  %2109 = vmatpush.msra.mxu1 %v7959_v10  ;;  %v2273_v42 = vld [vmem:[#allocation7 + $0x1d0] sm:$0xff] }
 0x23d   :  { %2022 = vmatpush.msrb.mxu3 %v2021_v51 }
 0x23e   :  { %2051 = vmatpush.msra.mxu0 %v7967_v62  ;;  %2111 = vmatpush.msra.mxu1 %v7961_v63 }
 0x23f   :  { %2028 = vmatpush.msrb.mxu3 %v2027_v28 }
 0x240   :  { %2054 = vmatpush.msra.mxu0 %v7970_v49  ;;  %2113 = vmatpush.msra.mxu1 %v7973_v50 }
 0x241   :  { %2034 = vmatpush.msrb.mxu3 %v2033_v47  ;;  %v8263_v47 = vand.u32 4294901760, %v2259_v38 }
 0x242   :  { %2057 = vmatpush.msra.mxu0 %v7976_v55  ;;  %2115 = vmatpush.msra.mxu1 %v8021_v54  ;;  %v2271_v55 = vld [vmem:[#allocation7 + $0x1c0] sm:$0xff] }
 0x243   :  { %1844 = vmatmul.f32.vlgmr.msrb.gmra.mxu0 %v8049_v43  ;;  %v1887_v43 = vld [vmem:[#allocation5 + $0x80] sm:$0xff] }
 0x244   :  { %2060 = vmatpush.msra.mxu0 %v7979_v29  ;;  %2117 = vmatpush.msra.mxu1 %v8024_v26  ;;  %v1934_v13 = vand.u32 4294901760, %v1887_v43  ;;  %v2269_v29 = vld [vmem:[#allocation7 + $0x1b0] sm:$0xff] }
 0x246   :  { %2063 = vmatpush.msra.mxu0 %v7982_v30  ;;  %2119 = vmatpush.msra.mxu1 %v8026_v40  ;;  %v2036_v45 = vsub.f32 %v1887_v43, %v1934_v13  ;;  %v2267_v30 = vld [vmem:[#allocation7 + $0x1a0] sm:$0xff] }
 0x247   :  { %1935 = vmatpush.msrb.mxu2 %v1934_v13  ;;  %v2255_v43 = vld [vmem:[#allocation7 + $0x140] sm:$0xff] }
 0x248   :  { %2066 = vmatpush.msra.mxu0 %v7996_v7  ;;  %2121 = vmatpush.msra.mxu1 %v8034_v33  ;;  %v2037_v16 = vand.u32 4294901760, %v2036_v45 }
 0x249   :  { %2142 = vmatpush.msra.mxu2 %v1947_v0 }
 0x24a   :  { %2069 = vmatpush.msra.mxu0 %v8037_v36  ;;  %2123 = vmatpush.msra.mxu1 %v8046_v12  ;;  %v2038_v27 = vsub.f32 %v2036_v45, %v2037_v16 }
 0x24b   :  { %2146 = vmatpush.msra.mxu2 %v1953_v19  ;;  %v8203_v19 = vand.u32 4294901760, %v2271_v55 }
 0x24c   :  { %2072 = vmatpush.msra.mxu0 %v8040_v8  ;;  %2125 = vmatpush.msra.mxu1 %v8060_v35  ;;  %v2039_v53 = vand.u32 4294901760, %v2038_v27  ;;  %v8268_v27 = vand.u32 4294901760, %v2257_v60 }
 0x24d   :  { %2150 = vmatpush.msra.mxu2 %v1959_v1  ;;  %v8205_v1 = vand.u32 4294901760, %v2269_v29 }
 0x24e   :  { %2075 = vmatpush.msra.mxu0 %v8044_v52  ;;  %2127 = vmatpush.msra.mxu1 %v8065_v44 }
 0x24f   :  { %2154 = vmatpush.msra.mxu2 %v1965_v9  ;;  %2040 = vmatpush.msrb.mxu3 %v2039_v53  ;;  %v2265_v9 = vld [vmem:[#allocation7 + $0x190] sm:$0xff] }
 0x250   :  { %2078 = vmatpush.msra.mxu0 %v8058_v32  ;;  %2129 = vmatpush.msra.mxu1 %v8093_v14 }
 0x251   :  { %2209 = vmatpush.msra.mxu3 %v7951_v41  ;;  %2158 = vmatpush.msra.mxu2 %v1971_v57  ;;  %v1543_v41 = vperm.slane %v7987_v34, 0  ;;  %v8207_v34 = vand.u32 4294901760, %v2267_v30 }
 0x252   :  { %2081 = vmatpush.msra.mxu0 %v8073_v15  ;;  %2131 = vmatpush.msra.mxu1 %v1934_v13 }
 0x253   :  { %2211 = vmatpush.msra.mxu3 %v7953_v48  ;;  %2162 = vmatpush.msra.mxu2 %v1977_v21  ;;  %v8228_v36 = vsub.f32 %v2267_v30, %v8207_v34 }
 0x254   :  { %2084 = vmatpush.msra.mxu0 %v8082_v3 }
 0x255   :  { %2213 = vmatpush.msra.mxu3 %v7955_v58  ;;  %2166 = vmatpush.msra.mxu2 %v1983_v20 }
 0x256   :  { %2087 = vmatpush.msra.mxu0 %v8085_v59 }
 0x257   :  { %2215 = vmatpush.msra.mxu3 %v7957_v61  ;;  %2170 = vmatpush.msra.mxu2 %v1989_v23 }
 0x258   :  { %2090 = vmatpush.msra.mxu0 %v8102_v46  ;;  %v2261_v46 = vld [vmem:[#allocation7 + $0x170] sm:$0xff] }
 0x259   :  { %2217 = vmatpush.msra.mxu3 %v7959_v10  ;;  %2174 = vmatpush.msra.mxu2 %v1995_v39  ;;  %v2277_v10 = vld [vmem:[#allocation7 + $0x1f0] sm:$0xff]  ;;  %v8261_v28 = vand.u32 4294901760, %v2261_v46 }
 0x25a   :  { %2093 = vmatpush.msra.mxu0 %v2036_v45  ;;  %v8197_v62 = vand.u32 4294901760, %v2277_v10 }
 0x25b   :  { %2219 = vmatpush.msra.mxu3 %v7961_v63  ;;  %2178 = vmatpush.msra.mxu2 %v2001_v31  ;;  %v2275_v63 = vld [vmem:[#allocation7 + $0x1e0] sm:$0xff] }
 0x25c   :  { %v8199_v49 = vand.u32 4294901760, %v2275_v63  ;;  %v8210_v7 = vsub.f32 %v2277_v10, %v8197_v62  ;;  %2282 = vmatpush.msrb.mxu0 %v8197_v62 }
 0x25d   :  { %2221 = vmatpush.msra.mxu3 %v7973_v50  ;;  %2182 = vmatpush.msra.mxu2 %v2007_v56  ;;  %v8201_v50 = vand.u32 4294901760, %v2273_v42 }
 0x25e   :  { %v8213_v21 = vsub.f32 %v2275_v63, %v8199_v49  ;;  %v2324_v52 = vand.u32 4294901760, %v8210_v7  ;;  %2284 = vmatpush.msrb.mxu0 %v8199_v49 }
 0x25f   :  { %2223 = vmatpush.msra.mxu3 %v8021_v54  ;;  %2186 = vmatpush.msra.mxu2 %v2013_v24  ;;  %v8216_v20 = vsub.f32 %v2273_v42, %v8201_v50  ;;  %v8219_v54 = vand.u32 4294901760, %v2265_v9 }
 0x260   :  { %v2325_v15 = vsub.f32 %v8210_v7, %v2324_v52  ;;  %2286 = vmatpush.msrb.mxu0 %v8201_v50 }
 0x261   :  { %2225 = vmatpush.msra.mxu3 %v8024_v26  ;;  %2190 = vmatpush.msra.mxu2 %v2019_v5  ;;  %v2336_v23 = vand.u32 4294901760, %v8216_v20  ;;  %v2263_v5 = vld [vmem:[#allocation7 + $0x180] sm:$0xff] }
 0x262   :  { %2288 = vmatpush.msrb.mxu0 %v8203_v19  ;;  %v8258_v2 = vand.u32 4294901760, %v2263_v5 }
 0x263   :  { %2227 = vmatpush.msra.mxu3 %v8026_v40  ;;  %2194 = vmatpush.msra.mxu2 %v2025_v25  ;;  %v8222_v40 = vsub.f32 %v2271_v55, %v8203_v19  ;;  %v2337_v3 = vsub.f32 %v8216_v20, %v2336_v23  ;;  %v2326_v25 = vand.u32 4294901760, %v2325_v15 }
 0x264   :  { %2290 = vmatpush.msrb.mxu0 %v8205_v1  ;;  %v8271_v53 = vsub.f32 %v2263_v5, %v8258_v2 }
 0x265   :  { %2229 = vmatpush.msra.mxu3 %v8034_v33  ;;  %2198 = vmatpush.msra.mxu2 %v2031_v22  ;;  %v8225_v33 = vsub.f32 %v2269_v29, %v8205_v1  ;;  %v2342_v32 = vand.u32 4294901760, %v8222_v40  ;;  %v2338_v51 = vand.u32 4294901760, %v2337_v3  ;;  %v2251_v29 = vld [vmem:[#allocation7 + $0x120] sm:$0xff]  ;;  %v2249_v3 = vld [vmem:[#allocation7 + $0x110] sm:$0xff] }
 0x266   :  { %2327 = vmatpush.msrb.mxu1 %v2326_v25  ;;  %2292 = vmatpush.msrb.mxu0 %v8207_v34  ;;  %v2366_v55 = vand.u32 4294901760, %v8271_v53 }
 0x267   :  { %2231 = vmatpush.msra.mxu3 %v8046_v12  ;;  %2202 = vmatpush.msra.mxu2 %v2037_v16  ;;  %v2330_v12 = vand.u32 4294901760, %v8213_v21  ;;  %v2343_v24 = vsub.f32 %v8222_v40, %v2342_v32 }
 0x268   :  { %2294 = vmatpush.msrb.mxu0 %v8219_v54  ;;  %v2367_v15 = vsub.f32 %v8271_v53, %v2366_v55 }
 0x269   :  { %2233 = vmatpush.msra.mxu3 %v8060_v35  ;;  %v2348_v35 = vand.u32 4294901760, %v8225_v33  ;;  %v2331_v56 = vsub.f32 %v8213_v21, %v2330_v12  ;;  %v2344_v45 = vand.u32 4294901760, %v2343_v24  ;;  %v2247_v24 = vld [vmem:[#allocation7 + $0x100] sm:$0xff] }
 0x26a   :  { %2296 = vmatpush.msrb.mxu0 %v8258_v2 }
 0x26b   :  { %2235 = vmatpush.msra.mxu3 %v8065_v44  ;;  %v8237_v44 = vsub.f32 %v2265_v9, %v8219_v54  ;;  %v2332_v17 = vand.u32 4294901760, %v2331_v56  ;;  %v2349_v11 = vsub.f32 %v8225_v33, %v2348_v35  ;;  %v8293_v9 = vsub.f32 %v2257_v60, %v8268_v27 }
 0x26c   :  { %v8305_v56 = vand.u32 4294901760, %v2251_v29  ;;  %v8321_v60 = vand.u32 4294901760, %v2249_v3  ;;  %2298 = vmatpush.msrb.mxu0 %v8261_v28 }
 0x26d   :  { %2237 = vmatpush.msra.mxu3 %v8093_v14  ;;  %v2354_v14 = vand.u32 4294901760, %v8228_v36  ;;  %v2360_v4 = vand.u32 4294901760, %v8237_v44  ;;  %2333 = vmatpush.msrb.mxu1 %v2332_v17  ;;  %v2350_v63 = vand.u32 4294901760, %v2349_v11  ;;  %v2368_v11 = vand.u32 4294901760, %v2367_v15 }
 0x26e   :  { %2300 = vmatpush.msrb.mxu0 %v8263_v47 }
 0x26f   :  { %2239 = vmatpush.msra.mxu3 %v1934_v13  ;;  %v2355_v16 = vsub.f32 %v8228_v36, %v2354_v14  ;;  %2339 = vmatpush.msrb.mxu1 %v2338_v51  ;;  %v2361_v42 = vsub.f32 %v8237_v44, %v2360_v4  ;;  %v8325_v51 = vsub.f32 %v2251_v29, %v8305_v56 }
 0x270   :  { %2302 = vmatpush.msrb.mxu0 %v8268_v27 }
 0x271   :  { %2345 = vmatpush.msrb.mxu1 %v2344_v45  ;;  %v2402_v29 = vand.u32 4294901760, %v8325_v51 }
 0x273   :  { %2351 = vmatpush.msrb.mxu1 %v2350_v63 }
 0x2b0   :  { %v1683_v48 = vpop.f32.mrf.mxu1 }
 0x2b8   :  { %v1582_v58 = vpop.f32.mrf.mxu0  ;;  %v1737_v57 = vpop.f32.mrf.mxu2 }
 0x2b9   :  { %v1583_v61 = vadd.f32 %v1582_v58, %v1543_v41  ;;  %v1882_v6 = vpop.f32.mrf.mxu1  ;;  %v8274_v41 = vsub.f32 %v2261_v46, %v8261_v28  ;;  %v8280_v58 = vand.u32 4294901760, %v2255_v43 }
 0x2ba   :  { %v1776_v8 = vpop.f32.mrf.mxu3 }
 0x2bb   :  { %v1684_v0 = vadd.f32 %v1683_v48, %v1583_v61  ;;  %v8278_v48 = vsub.f32 %v2259_v38, %v8263_v47  ;;  %v2253_v61 = vld [vmem:[#allocation7 + $0x130] sm:$0xff]  ;;  %v2384_v38 = vand.u32 4294901760, %v8293_v9  ;;  %2304 = vmatpush.msrb.mxu0 %v8280_v58 }
 0x2bd   :  { %v1738_v26 = vadd.f32 %v1737_v57, %v1684_v0  ;;  %v2372_v0 = vand.u32 4294901760, %v8274_v41  ;;  %v8295_v57 = vand.u32 4294901760, %v2253_v61  ;;  %v2385_v45 = vsub.f32 %v8293_v9, %v2384_v38 }
 0x2bf   :  { %v1777_v39 = vadd.f32 %v1776_v8, %v1738_v26  ;;  %v2356_v26 = vand.u32 4294901760, %v2355_v16  ;;  %v2378_v8 = vand.u32 4294901760, %v8278_v48  ;;  %v2373_v46 = vsub.f32 %v8274_v41, %v2372_v0  ;;  %2306 = vmatpush.msrb.mxu0 %v8295_v57 }
 0x2c0   :  { %v1845_v31 = vpop.f32.mrf.mxu0 }
 0x2c1   :  { %v1846_v59 = vadd.f32 %v1845_v31, %v1777_v39  ;;  %v8300_v39 = vsub.f32 %v2255_v43, %v8280_v58  ;;  %2357 = vmatpush.msrb.mxu1 %v2356_v26  ;;  %v2379_v25 = vsub.f32 %v8278_v48, %v2378_v8  ;;  %v8327_v43 = vand.u32 4294901760, %v2247_v24  ;;  %2308 = vmatpush.msrb.mxu0 %v8305_v56 }
 0x2c2   :  { %v2386_v26 = vand.u32 4294901760, %v2385_v45 }
 0x2c3   :  { %v1883_v22 = vadd.f32 %v1882_v6, %v1846_v59  ;;  %v2362_v59 = vand.u32 4294901760, %v2361_v42  ;;  %v8314_v6 = vsub.f32 %v2253_v61, %v8295_v57  ;;  %v2390_v17 = vand.u32 4294901760, %v8300_v39  ;;  %2310 = vmatpush.msrb.mxu0 %v8321_v60 }
 0x2c4   :  { %v8336_v61 = vsub.f32 %v2249_v3, %v8321_v60  ;;  %v2380_v63 = vand.u32 4294901760, %v2379_v25 }
 0x2c5   :  { %v1885_v13 = vmax.f32 %v1883_v22, 0.0  ;;  %2363 = vmatpush.msrb.mxu1 %v2362_v59  ;;  %v2396_v16 = vand.u32 4294901760, %v8314_v6  ;;  %v2391_v42 = vsub.f32 %v8300_v39, %v2390_v17  ;;  %v2403_v59 = vsub.f32 %v8325_v51, %v2402_v29  ;;  %2312 = vmatpush.msrb.mxu0 %v8327_v43 }
 0x2c6   :  { %v2408_v15 = vand.u32 4294901760, %v8336_v61 }
 0x2c7   :  { %v8282_v10 = vand.u32 4294901760, %v1885_v13  ;;  %2369 = vmatpush.msrb.mxu1 %v2368_v11  ;;  %v2392_v3 = vand.u32 4294901760, %v2391_v42  ;;  %v2404_v25 = vand.u32 4294901760, %v2403_v59 }
 0x2c9   :  { %v1937_v30 = vsub.f32 %v1885_v13, %v8282_v10  ;;  %2042 = vmatmul.f32.vlgmr.msrb.gmra.mxu3 %v8282_v10  ;;  %v2374_v13 = vand.u32 4294901760, %v2373_v46  ;;  %v2409_v46 = vsub.f32 %v8336_v61, %v2408_v15 }
 0x2ca   :  { %2478 = vmatpush.msrb.mxu3 %v8197_v62 }
 0x2cb   :  { %2096 = vmatmul.f32.vlgmr.msra.gmra.mxu0 %v1937_v30  ;;  %v1938_v31 = vand.u32 4294901760, %v1937_v30  ;;  %2375 = vmatpush.msrb.mxu1 %v2374_v13 }
 0x2cc   :  { %2480 = vmatpush.msrb.mxu3 %v8199_v49  ;;  %2519 = vmatpush.msra.mxu0 %v2324_v52 }
 0x2cd   :  { %2135 = vmatmul.f32.vlgmr.msra.gmra.mxu1 %v1938_v31  ;;  %v1939_v5 = vsub.f32 %v1937_v30, %v1938_v31  ;;  %v8346_v30 = vsub.f32 %v2247_v24, %v8327_v43  ;;  %v2397_v31 = vsub.f32 %v8314_v6, %v2396_v16 }
 0x2ce   :  { %2482 = vmatpush.msrb.mxu3 %v8201_v50  ;;  %2381 = vmatpush.msrb.mxu1 %v2380_v63 }
 0x2cf   :  { %v1940_v22 = vand.u32 4294901760, %v1939_v5  ;;  %v2414_v24 = vand.u32 4294901760, %v8346_v30  ;;  %v2398_v5 = vand.u32 4294901760, %v2397_v31  ;;  %2523 = vmatpush.msra.mxu0 %v2330_v12  ;;  %v2270_v12 = vld [vmem:[#allocation7 + $0x1b8] sm:$0xff] }
 0x2d0   :  { %2484 = vmatpush.msrb.mxu3 %v8203_v19  ;;  %2387 = vmatpush.msrb.mxu1 %v2386_v26  ;;  %v2258_v26 = vld [vmem:[#allocation7 + $0x158] sm:$0xff] }
 0x2d1   :  { %1941 = vmatmul.f32.vlgmr.msrb.gmra.mxu2 %v1940_v22  ;;  %2241 = vmatmul.f32.vlgmr.msra.gmra.mxu3 %v8282_v10  ;;  %v2415_v22 = vsub.f32 %v8346_v30, %v2414_v24 }
 0x2d2   :  { %2425 = vmatpush.msrb.mxu2 %v8210_v7  ;;  %2486 = vmatpush.msrb.mxu3 %v8205_v1 }
 0x2d3   :  { %2393 = vmatpush.msrb.mxu1 %v2392_v3  ;;  %v2416_v11 = vand.u32 4294901760, %v2415_v22  ;;  %2527 = vmatpush.msra.mxu0 %v2336_v23  ;;  %v8530_v3 = vand.u32 4294901760, %v2258_v26 }
 0x2d4   :  { %2428 = vmatpush.msrb.mxu2 %v8213_v21  ;;  %2488 = vmatpush.msrb.mxu3 %v8207_v34 }
 0x2d5   :  { %2399 = vmatpush.msrb.mxu1 %v2398_v5  ;;  %2531 = vmatpush.msra.mxu0 %v2342_v32  ;;  %v2256_v5 = vld [vmem:[#allocation7 + $0x148] sm:$0xff] }
 0x2d6   :  { %2431 = vmatpush.msrb.mxu2 %v8216_v20  ;;  %2490 = vmatpush.msrb.mxu3 %v8219_v54  ;;  %v8543_v22 = vand.u32 4294901760, %v2256_v5 }
 0x2d7   :  { %2405 = vmatpush.msrb.mxu1 %v2404_v25  ;;  %2535 = vmatpush.msra.mxu0 %v2348_v35 }
 0x2d8   :  { %2434 = vmatpush.msrb.mxu2 %v8222_v40  ;;  %2492 = vmatpush.msrb.mxu3 %v8258_v2 }
 0x2d9   :  { %2204 = vmatmul.f32.vlgmr.msra.gmra.mxu2 %v8282_v10  ;;  %v2410_v10 = vand.u32 4294901760, %v2409_v46  ;;  %2539 = vmatpush.msra.mxu0 %v2354_v14 }
 0x2da   :  { %2437 = vmatpush.msrb.mxu2 %v8225_v33  ;;  %2494 = vmatpush.msrb.mxu3 %v8261_v28 }
 0x2db   :  { %2411 = vmatpush.msrb.mxu1 %v2410_v10  ;;  %2543 = vmatpush.msra.mxu0 %v2360_v4  ;;  %v2268_v4 = vld [vmem:[#allocation7 + $0x1a8] sm:$0xff]  ;;  %v8546_v10 = vsub.f32 %v2258_v26, %v8530_v3 }
 0x2dc   :  { %2440 = vmatpush.msrb.mxu2 %v8228_v36  ;;  %2496 = vmatpush.msrb.mxu3 %v8263_v47 }
 0x2dd   :  { %2417 = vmatpush.msrb.mxu1 %v2416_v11  ;;  %2547 = vmatpush.msra.mxu0 %v2366_v55 }
 0x2de   :  { %2443 = vmatpush.msrb.mxu2 %v8237_v44  ;;  %2498 = vmatpush.msrb.mxu3 %v8268_v27  ;;  %v8473_v44 = vand.u32 4294901760, %v2270_v12 }
 0x2df   :  { %2586 = vmatpush.msra.mxu1 %v8197_v62  ;;  %2551 = vmatpush.msra.mxu0 %v2372_v0  ;;  %v2278_v62 = vld [vmem:[#allocation7 + $0x1f8] sm:$0xff] }
 0x2e0   :  { %2446 = vmatpush.msrb.mxu2 %v8271_v53  ;;  %2500 = vmatpush.msrb.mxu3 %v8280_v58 }
 0x2e1   :  { %2588 = vmatpush.msra.mxu1 %v8199_v49  ;;  %2555 = vmatpush.msra.mxu0 %v2378_v8  ;;  %v8443_v49 = vand.u32 4294901760, %v2278_v62 }
 0x2e2   :  { %2449 = vmatpush.msrb.mxu2 %v8274_v41  ;;  %2502 = vmatpush.msrb.mxu3 %v8295_v57  ;;  %v2266_v41 = vld [vmem:[#allocation7 + $0x198] sm:$0xff] }
 0x2e3   :  { %2590 = vmatpush.msra.mxu1 %v8201_v50  ;;  %2559 = vmatpush.msra.mxu0 %v2384_v38  ;;  %v2276_v50 = vld [vmem:[#allocation7 + $0x1e8] sm:$0xff]  ;;  %v8490_v55 = vand.u32 4294901760, %v2266_v41 }
 0x2e4   :  { %2452 = vmatpush.msrb.mxu2 %v8278_v48  ;;  %2504 = vmatpush.msrb.mxu3 %v8305_v56 }
 0x2e5   :  { %2592 = vmatpush.msra.mxu1 %v8203_v19  ;;  %2563 = vmatpush.msra.mxu0 %v2390_v17  ;;  %v8447_v19 = vsub.f32 %v2278_v62, %v8443_v49  ;;  %v8506_v38 = vsub.f32 %v2266_v41, %v8490_v55  ;;  %v2262_v17 = vld [vmem:[#allocation7 + $0x178] sm:$0xff] }
 0x2e6   :  { %2455 = vmatpush.msrb.mxu2 %v8293_v9  ;;  %2506 = vmatpush.msrb.mxu3 %v8321_v60  ;;  %v8513_v13 = vand.u32 4294901760, %v2262_v17  ;;  %v2254_v62 = vld [vmem:[#allocation7 + $0x138] sm:$0xff] }
 0x2e7   :  { %2594 = vmatpush.msra.mxu1 %v8205_v1  ;;  %2567 = vmatpush.msra.mxu0 %v2396_v16  ;;  %v8449_v1 = vand.u32 4294901760, %v2276_v50  ;;  %v2665_v7 = vand.u32 4294901760, %v8447_v19  ;;  %v2260_v16 = vld [vmem:[#allocation7 + $0x168] sm:$0xff] }
 0x2e8   :  { %2458 = vmatpush.msrb.mxu2 %v8300_v39  ;;  %2508 = vmatpush.msrb.mxu3 %v8327_v43  ;;  %v8522_v42 = vand.u32 4294901760, %v2260_v16 }
 0x2e9   :  { %2596 = vmatpush.msra.mxu1 %v8207_v34  ;;  %2571 = vmatpush.msra.mxu0 %v2402_v29  ;;  %v2274_v34 = vld [vmem:[#allocation7 + $0x1d8] sm:$0xff]  ;;  %v8456_v20 = vsub.f32 %v2276_v50, %v8449_v1  ;;  %v2666_v40 = vsub.f32 %v8447_v19, %v2665_v7  ;;  %v8525_v29 = vsub.f32 %v2262_v17, %v8513_v13 }
 0x2ea   :  { %2461 = vmatpush.msrb.mxu2 %v8314_v6  ;;  %v8453_v21 = vand.u32 4294901760, %v2274_v34  ;;  %v8533_v59 = vsub.f32 %v2260_v16, %v8522_v42 }
 0x2eb   :  { %2598 = vmatpush.msra.mxu1 %v8219_v54  ;;  %2575 = vmatpush.msra.mxu0 %v2408_v15  ;;  %v2272_v54 = vld [vmem:[#allocation7 + $0x1c8] sm:$0xff]  ;;  %v2671_v33 = vand.u32 4294901760, %v8456_v20  ;;  %v2667_v23 = vand.u32 4294901760, %v2666_v40  ;;  %v2713_v15 = vand.u32 4294901760, %v8525_v29  ;;  %v8553_v40 = vand.u32 4294901760, %v2254_v62 }
 0x2ec   :  { %2464 = vmatpush.msrb.mxu2 %v8325_v51  ;;  %v8463_v36 = vand.u32 4294901760, %v2272_v54  ;;  %v8466_v52 = vsub.f32 %v2274_v34, %v8453_v21  ;;  %v2719_v25 = vand.u32 4294901760, %v8533_v59 }
 0x2ed   :  { %2600 = vmatpush.msra.mxu1 %v8258_v2  ;;  %2579 = vmatpush.msra.mxu0 %v2414_v24  ;;  %v2672_v32 = vsub.f32 %v8456_v20, %v2671_v33  ;;  %v2714_v46 = vsub.f32 %v8525_v29, %v2713_v15 }
 0x2ee   :  { %2467 = vmatpush.msrb.mxu2 %v8336_v61  ;;  %v2677_v35 = vand.u32 4294901760, %v8466_v52  ;;  %v8476_v14 = vsub.f32 %v2272_v54, %v8463_v36  ;;  %2668 = vmatpush.msra.mxu3 %v2667_v23  ;;  %v2720_v34 = vsub.f32 %v8533_v59, %v2719_v25  ;;  %v2725_v54 = vand.u32 4294901760, %v8546_v10  ;;  %v2252_v23 = vld [vmem:[#allocation7 + $0x128] sm:$0xff] }
 0x2ef   :  { %2602 = vmatpush.msra.mxu1 %v8261_v28  ;;  %v2673_v2 = vand.u32 4294901760, %v2672_v32  ;;  %v2715_v50 = vand.u32 4294901760, %v2714_v46 }
 0x2f0   :  { %2470 = vmatpush.msrb.mxu2 %v8346_v30  ;;  %v2678_v28 = vsub.f32 %v8466_v52, %v2677_v35  ;;  %v2683_v53 = vand.u32 4294901760, %v8476_v14  ;;  %v2721_v32 = vand.u32 4294901760, %v2720_v34 }
 0x2f1   :  { %2604 = vmatpush.msra.mxu1 %v8263_v47  ;;  %v8482_v47 = vand.u32 4294901760, %v2268_v4  ;;  %2674 = vmatpush.msra.mxu3 %v2673_v2  ;;  %v8562_v2 = vand.u32 4294901760, %v2252_v23 }
 0x2f2   :  { %2623 = vmatpush.msra.mxu2 %v8443_v49  ;;  %v2679_v48 = vand.u32 4294901760, %v2678_v28  ;;  %v2684_v9 = vsub.f32 %v8476_v14, %v2683_v53  ;;  %v8565_v28 = vsub.f32 %v2254_v62, %v8553_v40 }
 0x2f3   :  { %2606 = vmatpush.msra.mxu1 %v8268_v27  ;;  %v8485_v27 = vsub.f32 %v2270_v12, %v8473_v44  ;;  %v8493_v0 = vsub.f32 %v2268_v4, %v8482_v47  ;;  %v8556_v12 = vsub.f32 %v2256_v5, %v8543_v22  ;;  %v2726_v4 = vsub.f32 %v8546_v10, %v2725_v54 }
 0x2f4   :  { %2625 = vmatpush.msra.mxu2 %v8449_v1  ;;  %2680 = vmatpush.msra.mxu3 %v2679_v48  ;;  %v2685_v6 = vand.u32 4294901760, %v2684_v9  ;;  %v2250_v48 = vld [vmem:[#allocation7 + $0x118] sm:$0xff] }
 0x2f5   :  { %2608 = vmatpush.msra.mxu1 %v8280_v58  ;;  %v2689_v58 = vand.u32 4294901760, %v8485_v27  ;;  %v2695_v39 = vand.u32 4294901760, %v8493_v0  ;;  %v2731_v41 = vand.u32 4294901760, %v8556_v12  ;;  %v2727_v9 = vand.u32 4294901760, %v2726_v4  ;;  %v8606_v4 = vld [vmem:[%s11038_s4 + $0x10] sm:$0xff] }
 0x2f6   :  { %2627 = vmatpush.msra.mxu2 %v8453_v21  ;;  %2686 = vmatpush.msra.mxu3 %v2685_v6  ;;  %v8573_v6 = vsub.f32 %v2252_v23, %v8562_v2 }
 0x2f7   :  { %2610 = vmatpush.msra.mxu1 %v8295_v57  ;;  %v2264_v57 = vld [vmem:[#allocation7 + $0x188] sm:$0xff]  ;;  %v2690_v8 = vsub.f32 %v8485_v27, %v2689_v58  ;;  %v2696_v51 = vsub.f32 %v8493_v0, %v2695_v39  ;;  %v2732_v17 = vsub.f32 %v8556_v12, %v2731_v41 }
 0x2f8   :  { %2629 = vmatpush.msra.mxu2 %v8463_v36  ;;  %v11047_v16 = vand.u32 4294901760, %v8573_v6 }
 0x2f9   :  { %2612 = vmatpush.msra.mxu1 %v8305_v56  ;;  %v8503_v56 = vand.u32 4294901760, %v2264_v57  ;;  %v2697_v61 = vand.u32 4294901760, %v2696_v51  ;;  %v2733_v26 = vand.u32 4294901760, %v2732_v17 }
 0x2fa   :  { %2631 = vmatpush.msra.mxu2 %v8473_v44 }
 0x2fb   :  { %2614 = vmatpush.msra.mxu1 %v8321_v60  ;;  %v2691_v60 = vand.u32 4294901760, %v2690_v8  ;;  %v8516_v45 = vsub.f32 %v2264_v57, %v8503_v56  ;;  %v2737_v57 = vand.u32 4294901760, %v8565_v28  ;;  %v8570_v8 = vand.u32 4294901760, %v2250_v48 }
 0x2fc   :  { %2633 = vmatpush.msra.mxu2 %v8482_v47 }
 0x2fd   :  { %2616 = vmatpush.msra.mxu1 %v8327_v43  ;;  %v2701_v43 = vand.u32 4294901760, %v8506_v38  ;;  %2692 = vmatpush.msra.mxu3 %v2691_v60  ;;  %v2707_v30 = vand.u32 4294901760, %v8516_v45  ;;  %v2248_v60 = vld [vmem:[#allocation7 + $0x108] sm:$0xff]  ;;  %v2738_v51 = vsub.f32 %v8565_v28, %v2737_v57 }
 0x2fe   :  { %2635 = vmatpush.msra.mxu2 %v8490_v55 }
 0x2ff   :  { %v2702_v63 = vsub.f32 %v8506_v38, %v2701_v43  ;;  %2698 = vmatpush.msra.mxu3 %v2697_v61  ;;  %v2708_v24 = vsub.f32 %v8516_v45, %v2707_v30  ;;  %v8583_v61 = vand.u32 4294901760, %v2248_v60 }
 0x300   :  { %2637 = vmatpush.msra.mxu2 %v8503_v56 }
 0x301   :  { %v2703_v31 = vand.u32 4294901760, %v2702_v63  ;;  %v2709_v11 = vand.u32 4294901760, %v2708_v24  ;;  %v8586_v63 = vsub.f32 %v2250_v48, %v8570_v8  ;;  %v2744_v24 = vsub.f32 %v8573_v6, %v11047_v16 }
 0x302   :  { %2639 = vmatpush.msra.mxu2 %v8513_v13  ;;  %v8594_v46 = vsub.f32 %v2248_v60, %v8583_v61  ;;  %v1903_v48 = vperm.slane %v8606_v4, 1 }
 0x303   :  { %2704 = vmatpush.msra.mxu3 %v2703_v31  ;;  %v2739_v31 = vand.u32 4294901760, %v2738_v51  ;;  %v11046_v5 = vand.u32 4294901760, %v8586_v63 }
 0x304   :  { %2641 = vmatpush.msra.mxu2 %v8522_v42 }
 0x305   :  { %2710 = vmatpush.msra.mxu3 %v2709_v11  ;;  %v2745_v11 = vand.u32 4294901760, %v2744_v24  ;;  %v2750_v62 = vsub.f32 %v8586_v63, %v11046_v5 }
 0x306   :  { %2643 = vmatpush.msra.mxu2 %v8530_v3 }
 0x307   :  { %2716 = vmatpush.msra.mxu3 %v2715_v50  ;;  %v11045_v50 = vand.u32 4294901760, %v8594_v46  ;;  %v2751_v34 = vand.u32 4294901760, %v2750_v62 }
 0x308   :  { %2645 = vmatpush.msra.mxu2 %v8543_v22 }
 0x309   :  { %2722 = vmatpush.msra.mxu3 %v2721_v32  ;;  %v2756_v23 = vsub.f32 %v8594_v46, %v11045_v50 }
 0x30a   :  { %2647 = vmatpush.msra.mxu2 %v8553_v40 }
 0x30b   :  { %2728 = vmatpush.msra.mxu3 %v2727_v9  ;;  %v2757_v32 = vand.u32 4294901760, %v2756_v23 }
 0x30c   :  { %2649 = vmatpush.msra.mxu2 %v8562_v2 }
 0x30d   :  { %2734 = vmatpush.msra.mxu3 %v2733_v26 }
 0x30e   :  { %2651 = vmatpush.msra.mxu2 %v8570_v8 }
 0x30f   :  { %2740 = vmatpush.msra.mxu3 %v2739_v31 }
 0x310   :  { %2653 = vmatpush.msra.mxu2 %v8583_v61 }
 0x311   :  { %2746 = vmatpush.msra.mxu3 %v2745_v11 }
 0x313   :  { %2752 = vmatpush.msra.mxu3 %v2751_v34 }
 0x315   :  { %2758 = vmatpush.msra.mxu3 %v2757_v32 }
 0x348   :  { %v2097_v26 = vpop.f32.mrf.mxu0 }
 0x34a   :  { %v2136_v24 = vpop.f32.mrf.mxu1 }
 0x34c   :  { %v2043_v9 = vpop.f32.mrf.mxu3 }
 0x354   :  { %v1942_v17 = vpop.f32.mrf.mxu2  ;;  %v2242_v23 = vpop.f32.mrf.mxu3 }
 0x355   :  { %v1943_v60 = vadd.f32 %v1942_v17, %v1903_v48  ;;  %v2983_v17 = vld [vmem:[#allocation2 + $0x130] sm:$0xff] }
 0x357   :  { %v2044_v51 = vadd.f32 %v2043_v9, %v1943_v60 }
 0x359   :  { %v2098_v31 = vadd.f32 %v2097_v26, %v2044_v51 }
 0x35b   :  { %v2137_v62 = vadd.f32 %v2136_v24, %v2098_v31  ;;  %v8806_v24 = vand.u32 4294901760, %v2983_v17 }
 0x35c   :  { %v2205_v50 = vpop.f32.mrf.mxu2 }
 0x35d   :  { %v2206_v11 = vadd.f32 %v2205_v50, %v2137_v62  ;;  %v2982_v62 = vld [vmem:[#allocation2 + $0x128] sm:$0xff] }
 0x35f   :  { %v2243_v34 = vadd.f32 %v2242_v23, %v2206_v11 }
 0x361   :  { %v2245_v32 = vmax.f32 %v2243_v34, 0.0 }
 0x363   :  { %v8609_v5 = vand.u32 4294901760, %v2245_v32 }
 0x365   :  { %v8612_v16 = vsub.f32 %v2245_v32, %v8609_v5  ;;  %2419 = vmatmul.f32.vlgmr.msrb.gmra.mxu1 %v8609_v5  ;;  %v8813_v32 = vand.u32 4294901760, %v2982_v62 }
 0x366   :  { %2819 = vmatpush.msrb.mxu1 %v8443_v49 }
 0x367   :  { %2473 = vmatmul.f32.vlgmr.msrb.gmra.mxu2 %v8612_v16  ;;  %v8618_v48 = vand.u32 4294901760, %v8612_v16 }
 0x368   :  { %2821 = vmatpush.msrb.mxu1 %v8449_v1  ;;  %2860 = vmatpush.msrb.mxu2 %v2665_v7  ;;  %v2992_v7 = vld [vmem:[#allocation2 + $0x178] sm:$0xff] }
 0x369   :  { %2512 = vmatmul.f32.vlgmr.msrb.gmra.mxu3 %v8618_v48  ;;  %v2316_v50 = vsub.f32 %v8612_v16, %v8618_v48 }
 0x36a   :  { %2823 = vmatpush.msrb.mxu1 %v8453_v21  ;;  %2864 = vmatpush.msrb.mxu2 %v2671_v33 }
 0x36b   :  { %2927 = vmatpush.msrb.mxu3 %v8443_v49  ;;  %v2317_v9 = vand.u32 4294901760, %v2316_v50  ;;  %v11057_v49 = vand.u32 4294901760, %v8573_v6  ;;  %v2981_v50 = vld [vmem:[#allocation2 + $0x120] sm:$0xff] }
 0x36c   :  { %2825 = vmatpush.msrb.mxu1 %v8463_v36  ;;  %2868 = vmatpush.msrb.mxu2 %v2677_v35 }
 0x36d   :  { %2929 = vmatpush.msrb.mxu3 %v8449_v1  ;;  %2318 = vmatmul.f32.vlgmr.msrb.gmra.mxu0 %v2317_v9  ;;  %v11059_v1 = vand.u32 4294901760, %v8594_v46 }
 0x36e   :  { %2618 = vmatmul.f32.vlgmr.msra.gmra.mxu1 %v8609_v5  ;;  %2766 = vmatpush.msrb.mxu0 %v8447_v19  ;;  %v11058_v19 = vand.u32 4294901760, %v8586_v63 }
 0x36f   :  { %2827 = vmatpush.msrb.mxu1 %v8473_v44  ;;  %2872 = vmatpush.msrb.mxu2 %v2683_v53 }
 0x370   :  { %2931 = vmatpush.msrb.mxu3 %v8453_v21  ;;  %2659 = vmatmul.f32.vlgmr.msra.gmra.mxu2 %v2317_v9  ;;  %v8709_v21 = vand.u32 4294901760, %v2992_v7 }
 0x371   :  { %2769 = vmatpush.msrb.mxu0 %v8456_v20  ;;  %2829 = vmatpush.msrb.mxu1 %v8482_v47  ;;  %v2991_v20 = vld [vmem:[#allocation2 + $0x170] sm:$0xff] }
 0x372   :  { %2876 = vmatpush.msrb.mxu2 %v2689_v58  ;;  %2933 = vmatpush.msrb.mxu3 %v8463_v36  ;;  %v8712_v33 = vsub.f32 %v2992_v7, %v8709_v21  ;;  %v8714_v36 = vand.u32 4294901760, %v2991_v20 }
 0x373   :  { %2760 = vmatmul.f32.vlgmr.msra.gmra.mxu3 %v8609_v5  ;;  %2772 = vmatpush.msrb.mxu0 %v8466_v52  ;;  %v2990_v52 = vld [vmem:[#allocation2 + $0x168] sm:$0xff] }
 0x374   :  { %2831 = vmatpush.msrb.mxu1 %v8490_v55  ;;  %2880 = vmatpush.msrb.mxu2 %v2695_v39  ;;  %v3037_v35 = vand.u32 4294901760, %v8712_v33 }
 0x375   :  { %2935 = vmatpush.msrb.mxu3 %v8473_v44  ;;  %2775 = vmatpush.msrb.mxu0 %v8476_v14  ;;  %v8720_v44 = vsub.f32 %v2991_v20, %v8714_v36  ;;  %v8722_v14 = vand.u32 4294901760, %v2990_v52  ;;  %v2980_v20 = vld [vmem:[#allocation2 + $0x118] sm:$0xff] }
 0x376   :  { %2833 = vmatpush.msrb.mxu1 %v8503_v56  ;;  %2884 = vmatpush.msrb.mxu2 %v2701_v43 }
 0x377   :  { %2937 = vmatpush.msrb.mxu3 %v8482_v47  ;;  %2581 = vmatmul.f32.vlgmr.msra.gmra.mxu0 %v8609_v5  ;;  %v2989_v47 = vld [vmem:[#allocation2 + $0x160] sm:$0xff]  ;;  %v3043_v53 = vand.u32 4294901760, %v8720_v44  ;;  %v8732_v58 = vsub.f32 %v2990_v52, %v8722_v14 }
 0x378   :  { %2778 = vmatpush.msrb.mxu0 %v8485_v27  ;;  %2835 = vmatpush.msrb.mxu1 %v8513_v13  ;;  %v3038_v27 = vsub.f32 %v8712_v33, %v3037_v35 }
 0x379   :  { %2888 = vmatpush.msrb.mxu2 %v2707_v30  ;;  %2939 = vmatpush.msrb.mxu3 %v8490_v55  ;;  %v8734_v55 = vand.u32 4294901760, %v2989_v47 }
 0x37a   :  { %2781 = vmatpush.msrb.mxu0 %v8493_v0  ;;  %2837 = vmatpush.msrb.mxu1 %v8522_v42  ;;  %v2988_v0 = vld [vmem:[#allocation2 + $0x158] sm:$0xff]  ;;  %v3039_v39 = vand.u32 4294901760, %v3038_v27 }
 0x37b   :  { %2892 = vmatpush.msrb.mxu2 %v2713_v15  ;;  %2941 = vmatpush.msrb.mxu3 %v8503_v56  ;;  %v3044_v56 = vsub.f32 %v8720_v44, %v3043_v53  ;;  %v8744_v43 = vsub.f32 %v2989_v47, %v8734_v55 }
 0x37c   :  { %2784 = vmatpush.msrb.mxu0 %v8506_v38  ;;  %2839 = vmatpush.msrb.mxu1 %v8530_v3  ;;  %v3049_v38 = vand.u32 4294901760, %v8732_v58 }
 0x37d   :  { %2896 = vmatpush.msrb.mxu2 %v2719_v25  ;;  %2943 = vmatpush.msrb.mxu3 %v8513_v13  ;;  %v8748_v13 = vand.u32 4294901760, %v2988_v0  ;;  %v3055_v30 = vand.u32 4294901760, %v8744_v43 }
 0x37e   :  { %2787 = vmatpush.msrb.mxu0 %v8516_v45  ;;  %2841 = vmatpush.msrb.mxu1 %v8543_v22  ;;  %v2987_v45 = vld [vmem:[#allocation2 + $0x150] sm:$0xff] }
 0x37f   :  { %2900 = vmatpush.msrb.mxu2 %v2725_v54  ;;  %2945 = vmatpush.msrb.mxu3 %v8522_v42  ;;  %v3045_v42 = vand.u32 4294901760, %v3044_v56  ;;  %v8755_v15 = vand.u32 4294901760, %v2987_v45  ;;  %v2979_v56 = vld [vmem:[#allocation2 + $0x110] sm:$0xff] }
 0x380   :  { %2790 = vmatpush.msrb.mxu0 %v8525_v29  ;;  %2843 = vmatpush.msrb.mxu1 %v8553_v40  ;;  %v3050_v29 = vsub.f32 %v8732_v58, %v3049_v38 }
 0x381   :  { %2904 = vmatpush.msrb.mxu2 %v2731_v41  ;;  %2947 = vmatpush.msrb.mxu3 %v8530_v3  ;;  %v8759_v3 = vsub.f32 %v2988_v0, %v8748_v13  ;;  %v8837_v0 = vand.u32 4294901760, %v2980_v20 }
 0x382   :  { %2793 = vmatpush.msrb.mxu0 %v8533_v59  ;;  %2845 = vmatpush.msrb.mxu1 %v8562_v2  ;;  %v2986_v59 = vld [vmem:[#allocation2 + $0x148] sm:$0xff]  ;;  %v3051_v25 = vand.u32 4294901760, %v3050_v29 }
 0x383   :  { %2908 = vmatpush.msrb.mxu2 %v2737_v57  ;;  %2949 = vmatpush.msrb.mxu3 %v8543_v22  ;;  %v3056_v22 = vsub.f32 %v8744_v43, %v3055_v30  ;;  %v8769_v54 = vand.u32 4294901760, %v2986_v59  ;;  %v8850_v29 = vsub.f32 %v2980_v20, %v8837_v0 }
 0x384   :  { %2796 = vmatpush.msrb.mxu0 %v8546_v10  ;;  %2847 = vmatpush.msrb.mxu1 %v8570_v8  ;;  %v8767_v10 = vsub.f32 %v2987_v45, %v8755_v15 }
 0x385   :  { %2912 = vmatpush.msrb.mxu2 %v11057_v49  ;;  %2951 = vmatpush.msrb.mxu3 %v8553_v40  ;;  %v3061_v40 = vand.u32 4294901760, %v8759_v3  ;;  %v8776_v41 = vsub.f32 %v2986_v59, %v8769_v54  ;;  %v8852_v59 = vand.u32 4294901760, %v2979_v56 }
 0x386   :  { %2799 = vmatpush.msrb.mxu0 %v8556_v12  ;;  %2849 = vmatpush.msrb.mxu1 %v8583_v61  ;;  %v2985_v12 = vld [vmem:[#allocation2 + $0x140] sm:$0xff] }
 0x387   :  { %2916 = vmatpush.msrb.mxu2 %v11058_v19  ;;  %2953 = vmatpush.msrb.mxu3 %v8562_v2  ;;  %v3057_v2 = vand.u32 4294901760, %v3056_v22  ;;  %v8778_v57 = vand.u32 4294901760, %v2985_v12  ;;  %v8825_v19 = vsub.f32 %v2982_v62, %v8813_v32  ;;  %v2978_v22 = vld [vmem:[#allocation2 + $0x108] sm:$0xff] }
 0x388   :  { %2853 = vmatmul.f32.vlgmr.msrb.gmra.mxu1 %v8618_v48  ;;  %2802 = vmatpush.msrb.mxu0 %v8565_v28  ;;  %v3067_v28 = vand.u32 4294901760, %v8767_v10  ;;  %v8818_v48 = vsub.f32 %v2983_v17, %v8806_v24 }
 0x389   :  { %2920 = vmatpush.msrb.mxu2 %v11059_v1  ;;  %2955 = vmatpush.msrb.mxu3 %v8570_v8  ;;  %v3062_v8 = vsub.f32 %v8759_v3, %v3061_v40  ;;  %v8827_v1 = vand.u32 4294901760, %v2981_v50  ;;  %v3097_v47 = vand.u32 4294901760, %v8825_v19 }
 0x38a   :  { %2922 = vmatmul.f32.vlgmr.msrb.gmra.mxu2 %v8609_v5  ;;  %2805 = vmatpush.msrb.mxu0 %v8573_v6  ;;  %v2984_v6 = vld [vmem:[#allocation2 + $0x138] sm:$0xff]  ;;  %v3091_v7 = vand.u32 4294901760, %v8818_v48 }
 0x38b   :  { %2957 = vmatpush.msrb.mxu3 %v8583_v61  ;;  %3138 = vmatpush.msra.mxu2 %v8712_v33  ;;  %v3073_v61 = vand.u32 4294901760, %v8776_v41  ;;  %v8835_v27 = vsub.f32 %v2981_v50, %v8827_v1  ;;  %v3098_v45 = vsub.f32 %v8825_v19, %v3097_v47 }
 0x38c   :  { %2959 = vmatmul.f32.vlgmr.msrb.gmra.mxu3 %v8609_v5  ;;  %2808 = vmatpush.msrb.mxu0 %v8586_v63  ;;  %v8791_v63 = vsub.f32 %v2985_v12, %v8778_v57  ;;  %v8793_v5 = vand.u32 4294901760, %v2984_v6 }
 0x38d   :  { %3191 = vmatpush.msra.mxu3 %v8709_v21  ;;  %3141 = vmatpush.msra.mxu2 %v8720_v44  ;;  %v3074_v51 = vsub.f32 %v8776_v41, %v3073_v61  ;;  %v3099_v12 = vand.u32 4294901760, %v3098_v45 }
 0x38e   :  { %2811 = vmatpush.msrb.mxu0 %v8594_v46  ;;  %3040 = vmatpush.msra.mxu1 %v3039_v39  ;;  %v3063_v46 = vand.u32 4294901760, %v3062_v8  ;;  %v3079_v26 = vand.u32 4294901760, %v8791_v63  ;;  %v8803_v31 = vsub.f32 %v2984_v6, %v8793_v5  ;;  %v3092_v39 = vsub.f32 %v8818_v48, %v3091_v7 }
 0x38f   :  { %2814 = vmatmul.f32.vlgmr.msrb.gmra.mxu0 %v8612_v16  ;;  %3193 = vmatpush.msra.mxu3 %v8714_v36  ;;  %v3068_v16 = vsub.f32 %v8767_v10, %v3067_v28  ;;  %v3075_v11 = vand.u32 4294901760, %v3074_v51  ;;  %v3109_v8 = vand.u32 4294901760, %v8850_v29  ;;  %v8862_v6 = vsub.f32 %v2979_v56, %v8852_v59 }
 0x390   :  { %2995 = vmatpush.msra.mxu0 %v8709_v21  ;;  %3144 = vmatpush.msra.mxu2 %v8732_v58  ;;  %v3080_v23 = vsub.f32 %v8791_v63, %v3079_v26  ;;  %v3085_v34 = vand.u32 4294901760, %v8803_v31 }
 0x391   :  { %3195 = vmatpush.msra.mxu3 %v8722_v14  ;;  %3046 = vmatpush.msra.mxu1 %v3045_v42  ;;  %v3069_v60 = vand.u32 4294901760, %v3068_v16  ;;  %v3103_v42 = vand.u32 4294901760, %v8835_v27  ;;  %v8866_v16 = vand.u32 4294901760, %v2978_v22  ;;  %v3115_v51 = vand.u32 4294901760, %v8862_v6 }
 0x392   :  { %2997 = vmatpush.msra.mxu0 %v8714_v36  ;;  %3147 = vmatpush.msra.mxu2 %v8744_v43  ;;  %v3081_v9 = vand.u32 4294901760, %v3080_v23  ;;  %v3086_v49 = vsub.f32 %v8803_v31, %v3085_v34 }
 0x393   :  { %3197 = vmatpush.msra.mxu3 %v8734_v55  ;;  %3052 = vmatpush.msra.mxu1 %v3051_v25  ;;  %v3093_v25 = vand.u32 4294901760, %v3092_v39  ;;  %v3116_v50 = vsub.f32 %v8862_v6, %v3115_v51 }
 0x394   :  { %2999 = vmatpush.msra.mxu0 %v8722_v14  ;;  %3150 = vmatpush.msra.mxu2 %v8759_v3  ;;  %v3087_v52 = vand.u32 4294901760, %v3086_v49 }
 0x395   :  { %3199 = vmatpush.msra.mxu3 %v8748_v13  ;;  %3058 = vmatpush.msra.mxu1 %v3057_v2  ;;  %v3104_v2 = vsub.f32 %v8835_v27, %v3103_v42  ;;  %v3117_v20 = vand.u32 4294901760, %v3116_v50 }
 0x396   :  { %3001 = vmatpush.msra.mxu0 %v8734_v55  ;;  %3153 = vmatpush.msra.mxu2 %v8767_v10 }
 0x397   :  { %3201 = vmatpush.msra.mxu3 %v8755_v15  ;;  %3064 = vmatpush.msra.mxu1 %v3063_v46  ;;  %v2977_v46 = vld [vmem:[#allocation2 + $0x100] sm:$0xff]  ;;  %v3105_v17 = vand.u32 4294901760, %v3104_v2  ;;  %v3346_v2 = vld [vmem:[#allocation5 + $0x148] sm:$0xff] }
 0x398   :  { %3003 = vmatpush.msra.mxu0 %v8748_v13  ;;  %3156 = vmatpush.msra.mxu2 %v8776_v41  ;;  %v8873_v62 = vand.u32 4294901760, %v2977_v46 }
 0x399   :  { %3203 = vmatpush.msra.mxu3 %v8769_v54  ;;  %3070 = vmatpush.msra.mxu1 %v3069_v60  ;;  %v3110_v60 = vsub.f32 %v8850_v29, %v3109_v8 }
 0x39a   :  { %3005 = vmatpush.msra.mxu0 %v8755_v15  ;;  %3159 = vmatpush.msra.mxu2 %v8791_v63 }
 0x39b   :  { %3205 = vmatpush.msra.mxu3 %v8778_v57  ;;  %3076 = vmatpush.msra.mxu1 %v3075_v11  ;;  %v3120_v11 = vsub.f32 %v2978_v22, %v8866_v16  ;;  %v3111_v23 = vand.u32 4294901760, %v3110_v60  ;;  %v2279_v22 = vperm.slane %v8606_v4, 2 }
 0x39c   :  { %3007 = vmatpush.msra.mxu0 %v8769_v54  ;;  %3162 = vmatpush.msra.mxu2 %v8803_v31  ;;  %v2968_v31 = vperm.slane %v8606_v4, 4 }
 0x39d   :  { %3207 = vmatpush.msra.mxu3 %v8793_v5  ;;  %3082 = vmatpush.msra.mxu1 %v3081_v9  ;;  %v3126_v9 = vsub.f32 %v2977_v46, %v8873_v62  ;;  %v3121_v49 = vand.u32 4294901760, %v3120_v11  ;;  %v8959_v46 = vand.u32 4294901760, %v3346_v2 }
 0x39e   :  { %3009 = vmatpush.msra.mxu0 %v8778_v57  ;;  %3165 = vmatpush.msra.mxu2 %v8818_v48 }
 0x39f   :  { %3209 = vmatpush.msra.mxu3 %v8806_v24  ;;  %3088 = vmatpush.msra.mxu1 %v3087_v52  ;;  %v3127_v52 = vand.u32 4294901760, %v3126_v9  ;;  %v3122_v39 = vsub.f32 %v3120_v11, %v3121_v49 }
 0x3a0   :  { %3011 = vmatpush.msra.mxu0 %v8793_v5  ;;  %3168 = vmatpush.msra.mxu2 %v8825_v19 }
 0x3a1   :  { %3211 = vmatpush.msra.mxu3 %v8813_v32  ;;  %3094 = vmatpush.msra.mxu1 %v3093_v25  ;;  %v3128_v56 = vsub.f32 %v3126_v9, %v3127_v52  ;;  %v3123_v45 = vand.u32 4294901760, %v3122_v39  ;;  %v8982_v39 = vsub.f32 %v3346_v2, %v8959_v46 }
 0x3a2   :  { %3013 = vmatpush.msra.mxu0 %v8806_v24  ;;  %3171 = vmatpush.msra.mxu2 %v8835_v27  ;;  %v3349_v27 = vld [vmem:[#allocation5 + $0x160] sm:$0xff] }
 0x3a3   :  { %3213 = vmatpush.msra.mxu3 %v8827_v1  ;;  %3100 = vmatpush.msra.mxu1 %v3099_v12  ;;  %v3129_v25 = vand.u32 4294901760, %v3128_v56 }
 0x3a4   :  { %3015 = vmatpush.msra.mxu0 %v8813_v32  ;;  %3174 = vmatpush.msra.mxu2 %v8850_v29 }
 0x3a5   :  { %3215 = vmatpush.msra.mxu3 %v8837_v0  ;;  %3106 = vmatpush.msra.mxu1 %v3105_v17 }
 0x3a6   :  { %3017 = vmatpush.msra.mxu0 %v8827_v1  ;;  %3177 = vmatpush.msra.mxu2 %v8862_v6 }
 0x3a7   :  { %3217 = vmatpush.msra.mxu3 %v8852_v59  ;;  %3112 = vmatpush.msra.mxu1 %v3111_v23 }
 0x3a8   :  { %3019 = vmatpush.msra.mxu0 %v8837_v0  ;;  %3180 = vmatpush.msra.mxu2 %v3120_v11  ;;  %v8973_v11 = vld [vmem:[%s11038_s4 + $0x20] sm:$0xff] }
 0x3a9   :  { %3219 = vmatpush.msra.mxu3 %v8866_v16  ;;  %3118 = vmatpush.msra.mxu1 %v3117_v20 }
 0x3aa   :  { %3021 = vmatpush.msra.mxu0 %v8852_v59  ;;  %3183 = vmatpush.msra.mxu2 %v3126_v9 }
 0x3ab   :  { %3221 = vmatpush.msra.mxu3 %v8873_v62  ;;  %3124 = vmatpush.msra.mxu1 %v3123_v45 }
 0x3ac   :  { %3023 = vmatpush.msra.mxu0 %v8866_v16 }
 0x3ad   :  { %3130 = vmatpush.msra.mxu1 %v3129_v25 }
 0x3ae   :  { %3025 = vmatpush.msra.mxu0 %v8873_v62 }
 0x3af   :  { %3299 = vmatpush.msrb.mxu1 %v8709_v21 }
 0x3b0   :  { %3232 = vmatpush.msrb.mxu0 %v3037_v35 }
 0x3b1   :  { %3301 = vmatpush.msrb.mxu1 %v8714_v36 }
 0x3b2   :  { %3236 = vmatpush.msrb.mxu0 %v3043_v53 }
 0x3b3   :  { %3303 = vmatpush.msrb.mxu1 %v8722_v14 }
 0x3b4   :  { %3240 = vmatpush.msrb.mxu0 %v3049_v38 }
 0x3b5   :  { %3305 = vmatpush.msrb.mxu1 %v8734_v55 }
 0x3b6   :  { %3244 = vmatpush.msrb.mxu0 %v3055_v30 }
 0x3b7   :  { %3307 = vmatpush.msrb.mxu1 %v8748_v13 }
 0x3b8   :  { %3248 = vmatpush.msrb.mxu0 %v3061_v40 }
 0x3b9   :  { %3309 = vmatpush.msrb.mxu1 %v8755_v15  ;;  %v6511_v15 = vld [vmem:[%s11038_s4 + $0x18] sm:$0xff] }
 0x3ba   :  { %3252 = vmatpush.msrb.mxu0 %v3067_v28  ;;  %v2280_v10 = vperm.slane %v6511_v15, 2 }
 0x3bb   :  { %3311 = vmatpush.msrb.mxu1 %v8769_v54 }
 0x3bc   :  { %3256 = vmatpush.msrb.mxu0 %v3073_v61 }
 0x3bd   :  { %3313 = vmatpush.msrb.mxu1 %v8778_v57 }
 0x3be   :  { %3260 = vmatpush.msrb.mxu0 %v3079_v26 }
 0x3bf   :  { %3315 = vmatpush.msrb.mxu1 %v8793_v5 }
 0x3c0   :  { %3264 = vmatpush.msrb.mxu0 %v3085_v34  ;;  %v3351_v34 = vld [vmem:[#allocation5 + $0x170] sm:$0xff] }
 0x3c1   :  { %3317 = vmatpush.msrb.mxu1 %v8806_v24  ;;  %v3352_v24 = vld [vmem:[#allocation5 + $0x178] sm:$0xff] }
 0x3c2   :  { %3268 = vmatpush.msrb.mxu0 %v3091_v7  ;;  %v8939_v7 = vand.u32 4294901760, %v3351_v34 }
 0x3c3   :  { %3319 = vmatpush.msrb.mxu1 %v8813_v32  ;;  %v3350_v32 = vld [vmem:[#allocation5 + $0x168] sm:$0xff] }
 0x3c4   :  { %3272 = vmatpush.msrb.mxu0 %v3097_v47  ;;  %v8941_v47 = vand.u32 4294901760, %v3350_v32  ;;  %v8953_v6 = vsub.f32 %v3351_v34, %v8939_v7 }
 0x3c5   :  { %3321 = vmatpush.msrb.mxu1 %v8827_v1  ;;  %v8937_v1 = vand.u32 4294901760, %v3352_v24 }
 0x3c6   :  { %3276 = vmatpush.msrb.mxu0 %v3103_v42  ;;  %v3347_v42 = vld [vmem:[#allocation5 + $0x150] sm:$0xff]  ;;  %v3403_v50 = vand.u32 4294901760, %v8953_v6 }
 0x3c7   :  { %3323 = vmatpush.msrb.mxu1 %v8837_v0  ;;  %v3348_v0 = vld [vmem:[#allocation5 + $0x158] sm:$0xff]  ;;  %v8947_v4 = vand.u32 4294901760, %v3347_v42  ;;  %3355 = vmatpush.msrb.mxu2 %v8937_v1 }
 0x3c8   :  { %3280 = vmatpush.msrb.mxu0 %v3109_v8  ;;  %v8945_v12 = vand.u32 4294901760, %v3348_v0  ;;  %v3404_v45 = vsub.f32 %v8953_v6, %v3403_v50 }
 0x3c9   :  { %3325 = vmatpush.msrb.mxu1 %v8852_v59  ;;  %v8943_v59 = vand.u32 4294901760, %v3349_v27  ;;  %3357 = vmatpush.msrb.mxu2 %v8939_v7 }
 0x3ca   :  { %3284 = vmatpush.msrb.mxu0 %v3115_v51  ;;  %v8965_v51 = vsub.f32 %v3348_v0, %v8945_v12 }
 0x3cb   :  { %3327 = vmatpush.msrb.mxu1 %v8866_v16  ;;  %v8956_v16 = vsub.f32 %v3350_v32, %v8941_v47  ;;  %v8962_v60 = vsub.f32 %v3349_v27, %v8943_v59  ;;  %3359 = vmatpush.msrb.mxu2 %v8941_v47 }
 0x3cc   :  { %3288 = vmatpush.msrb.mxu0 %v3121_v49 }
 0x3cd   :  { %3329 = vmatpush.msrb.mxu1 %v8873_v62  ;;  %v8968_v62 = vsub.f32 %v3347_v42, %v8947_v4  ;;  %v3409_v9 = vand.u32 4294901760, %v8956_v16  ;;  %v3415_v20 = vand.u32 4294901760, %v8962_v60  ;;  %3361 = vmatpush.msrb.mxu2 %v8943_v59 }
 0x3ce   :  { %3292 = vmatpush.msrb.mxu0 %v3127_v52  ;;  %v3421_v52 = vand.u32 4294901760, %v8965_v51 }
 0x3cf   :  { %v3410_v25 = vsub.f32 %v8956_v16, %v3409_v9  ;;  %3363 = vmatpush.msrb.mxu2 %v8945_v12 }
 0x3d1   :  { %v3411_v15 = vand.u32 4294901760, %v3410_v25  ;;  %3365 = vmatpush.msrb.mxu2 %v8947_v4 }
 0x3d3   :  { %3367 = vmatpush.msrb.mxu2 %v8959_v46 }
 0x3e2   :  { %v2420_v44 = vpop.f32.mrf.mxu1 }
 0x3ea   :  { %v2319_v33 = vpop.f32.mrf.mxu0  ;;  %v2474_v58 = vpop.f32.mrf.mxu2 }
 0x3eb   :  { %v2320_v35 = vadd.f32 %v2319_v33, %v2279_v22  ;;  %v2619_v30 = vpop.f32.mrf.mxu1  ;;  %v2974_v33 = vperm.slane %v8973_v11, 3 }
 0x3ec   :  { %v2513_v43 = vpop.f32.mrf.mxu3 }
 0x3ed   :  { %v2421_v53 = vadd.f32 %v2420_v44, %v2320_v35  ;;  %v3416_v35 = vsub.f32 %v8962_v60, %v3415_v20  ;;  %v3427_v44 = vand.u32 4294901760, %v8968_v62 }
 0x3ef   :  { %v2475_v38 = vadd.f32 %v2474_v58, %v2421_v53  ;;  %v3345_v53 = vld [vmem:[#allocation5 + $0x140] sm:$0xff]  ;;  %v3344_v58 = vld [vmem:[#allocation5 + $0x138] sm:$0xff] }
 0x3f1   :  { %v2514_v21 = vadd.f32 %v2513_v43, %v2475_v38  ;;  %v3343_v38 = vld [vmem:[#allocation5 + $0x130] sm:$0xff] }
 0x3f3   :  { %v2660_v54 = vpop.f32.mrf.mxu2 }
 0x3f4   :  { %v2582_v36 = vpop.f32.mrf.mxu0  ;;  %v2661_v40 = vadd.f32 %v2660_v54, %v2280_v10  ;;  %v9010_v10 = vand.u32 4294901760, %v3344_v58  ;;  %v9012_v54 = vand.u32 4294901760, %v3343_v38 }
 0x3f5   :  { %v2583_v14 = vadd.f32 %v2582_v36, %v2514_v21  ;;  %v3405_v21 = vand.u32 4294901760, %v3404_v45  ;;  %v3342_v36 = vld [vmem:[#allocation5 + $0x128] sm:$0xff] }
 0x3f6   :  { %v2761_v28 = vpop.f32.mrf.mxu3  ;;  %v3338_v45 = vld [vmem:[#allocation5 + $0x108] sm:$0xff] }
 0x3f7   :  { %v2620_v55 = vadd.f32 %v2619_v30, %v2583_v14  ;;  %v2762_v41 = vadd.f32 %v2761_v28, %v2661_v40  ;;  %v3422_v30 = vsub.f32 %v8965_v51, %v3421_v52  ;;  %v3417_v40 = vand.u32 4294901760, %v3416_v35 }
 0x3f8   :  { %v3428_v28 = vsub.f32 %v8968_v62, %v3427_v44 }
 0x3f9   :  { %6529 = vtanh.f32 %v2620_v55  ;;  %v3433_v55 = vand.u32 4294901760, %v8982_v39  ;;  %v3423_v34 = vand.u32 4294901760, %v3422_v30 }
 0x3fa   :  { %v3429_v2 = vand.u32 4294901760, %v3428_v28 }
 0x3fb   :  { %v3434_v32 = vsub.f32 %v8982_v39, %v3433_v55 }
 0x3fd   :  { %v3435_v25 = vand.u32 4294901760, %v3434_v32 }
 0x3ff   :  { %v6530_v13 = vpop.eup %6529 }
 0x400   :  { %v2964_v3 = vmul.f32 1.442695, %v6530_v13  ;;  %v3341_v13 = vld [vmem:[#allocation5 + $0x120] sm:$0xff] }
 0x402   :  { %6531 = vpow2.f32 %v2964_v3  ;;  %v9007_v3 = vand.u32 4294901760, %v3345_v53 }
 0x404   :  { %3369 = vmatpush.msrb.mxu2 %v9007_v3 }
 0x405   :  { %v2854_v5 = vpop.f32.mrf.mxu1 }
 0x406   :  { %3371 = vmatpush.msrb.mxu2 %v9010_v10 }
 0x408   :  { %v6532_v61 = vpop.eup %6531  ;;  %3373 = vmatpush.msrb.mxu2 %v9012_v54 }
 0x409   :  { %v2966_v19 = vmul.f32 %v6532_v61, %v8015_v18  ;;  %v8950_v18 = vsub.f32 %v3352_v24, %v8937_v1  ;;  %v9023_v61 = vsub.f32 %v3345_v53, %v9007_v3 }
 0x40b   :  { %v3397_v23 = vand.u32 4294901760, %v8950_v18 }
 0x40c   :  { %v2815_v57 = vpop.f32.mrf.mxu0 }
 0x40d   :  { %v2816_v63 = vadd.f32 %v2815_v57, %v2762_v41  ;;  %v2923_v48 = vpop.f32.mrf.mxu2  ;;  %v3398_v56 = vsub.f32 %v8950_v18, %v3397_v23  ;;  %v9020_v41 = vand.u32 4294901760, %v3342_v36  ;;  %v3340_v57 = vld [vmem:[#allocation5 + $0x118] sm:$0xff] }
 0x40e   :  { %v9046_v0 = vand.u32 4294901760, %v3340_v57 }
 0x40f   :  { %v2855_v26 = vadd.f32 %v2854_v5, %v2816_v63  ;;  %v2960_v8 = vpop.f32.mrf.mxu3  ;;  %v3399_v43 = vand.u32 4294901760, %v3398_v56  ;;  %v9026_v63 = vsub.f32 %v3344_v58, %v9010_v10  ;;  %v9030_v5 = vsub.f32 %v3343_v38, %v9012_v54  ;;  %3375 = vmatpush.msrb.mxu2 %v9020_v41 }
 0x410   :  { %v9044_v27 = vsub.f32 %v3342_v36, %v9020_v41  ;;  %v9068_v35 = vsub.f32 %v3340_v57, %v9046_v0  ;;  %v9079_v36 = vand.u32 4294901760, %v3338_v45 }
 0x411   :  { %v2924_v29 = vadd.f32 %v2923_v48, %v2855_v26  ;;  %3400 = vmatpush.msrb.mxu3 %v3399_v43  ;;  %v9032_v26 = vand.u32 4294901760, %v3341_v13  ;;  %v3439_v48 = vand.u32 4294901760, %v9023_v61 }
 0x412   :  { %v9088_v28 = vsub.f32 %v3338_v45, %v9079_v36 }
 0x413   :  { %v2961_v17 = vadd.f32 %v2960_v8, %v2924_v29  ;;  %3406 = vmatpush.msrb.mxu3 %v3405_v21  ;;  %v3440_v8 = vsub.f32 %v9023_v61, %v3439_v48  ;;  %3377 = vmatpush.msrb.mxu2 %v9032_v26 }
 0x415   :  { %v2967_v49 = vadd.f32 %v2966_v19, %v2961_v17  ;;  %3412 = vmatpush.msrb.mxu3 %v3411_v15  ;;  %v3445_v19 = vand.u32 4294901760, %v9026_v63  ;;  %v3451_v17 = vand.u32 4294901760, %v9030_v5  ;;  %v3441_v38 = vand.u32 4294901760, %v3440_v8  ;;  %3379 = vmatpush.msrb.mxu2 %v9046_v0 }
 0x417   :  { %v2969_v22 = vmul.f32 %v2968_v31, %v2967_v49  ;;  %v3339_v31 = vld [vmem:[#allocation5 + $0x110] sm:$0xff]  ;;  %3418 = vmatpush.msrb.mxu3 %v3417_v40  ;;  %v9059_v49 = vsub.f32 %v3341_v13, %v9032_v26  ;;  %v3452_v43 = vsub.f32 %v9030_v5, %v3451_v17  ;;  %v3469_v40 = vand.u32 4294901760, %v9068_v35 }
 0x418   :  { %v9051_v29 = vand.u32 4294901760, %v3339_v31 }
 0x419   :  { %v9001_v14 = vadd.f32 %v2969_v22, %v8029_v37  ;;  %3424 = vmatpush.msrb.mxu3 %v3423_v34  ;;  %v3446_v22 = vsub.f32 %v9026_v63, %v3445_v19  ;;  %v3463_v21 = vand.u32 4294901760, %v9059_v49  ;;  %v3453_v57 = vand.u32 4294901760, %v3452_v43 }
 0x41a   :  { %v9071_v58 = vsub.f32 %v3339_v31, %v9051_v29  ;;  %3381 = vmatpush.msrb.mxu2 %v9051_v29 }
 0x41b   :  { %v9015_v37 = vmul.f32 %v2974_v33, %v9001_v14  ;;  %v3457_v33 = vand.u32 4294901760, %v9044_v27  ;;  %3430 = vmatpush.msrb.mxu3 %v3429_v2  ;;  %v3447_v13 = vand.u32 4294901760, %v3446_v22  ;;  %v3464_v31 = vsub.f32 %v9059_v49, %v3463_v21 }
 0x41c   :  { %v3475_v34 = vand.u32 4294901760, %v9071_v58  ;;  %v3481_v2 = vand.u32 4294901760, %v9088_v28  ;;  %3383 = vmatpush.msrb.mxu2 %v9079_v36 }
 0x41d   :  { %v9035_v24 = vand.u32 4294901760, %v9015_v37  ;;  %3436 = vmatpush.msrb.mxu3 %v3435_v25  ;;  %v3458_v15 = vsub.f32 %v9044_v27, %v3457_v33  ;;  %v3465_v8 = vand.u32 4294901760, %v3464_v31 }
 0x41e   :  { %v3482_v25 = vsub.f32 %v9088_v28, %v3481_v2 }
 0x41f   :  { %3132 = vmatmul.f32.vlgmr.msra.gmra.mxu1 %v9035_v24  ;;  %v3027_v42 = vsub.f32 %v9015_v37, %v9035_v24  ;;  %3442 = vmatpush.msrb.mxu3 %v3441_v38  ;;  %v3459_v32 = vand.u32 4294901760, %v3458_v15 }
 0x420   :  { %3551 = vmatpush.msra.mxu1 %v8937_v1 }
 0x421   :  { %3186 = vmatmul.f32.vlgmr.msra.gmra.mxu2 %v3027_v42  ;;  %v3028_v56 = vand.u32 4294901760, %v3027_v42  ;;  %3448 = vmatpush.msrb.mxu3 %v3447_v13 }
 0x422   :  { %3553 = vmatpush.msra.mxu1 %v8939_v7 }
 0x423   :  { %3225 = vmatmul.f32.vlgmr.msra.gmra.mxu3 %v3028_v56  ;;  %v3029_v53 = vsub.f32 %v3027_v42, %v3028_v56  ;;  %v3470_v42 = vsub.f32 %v9068_v35, %v3469_v40  ;;  %v3476_v56 = vsub.f32 %v9071_v58, %v3475_v34 }
 0x424   :  { %3555 = vmatpush.msra.mxu1 %v8941_v47  ;;  %3454 = vmatpush.msrb.mxu3 %v3453_v57  ;;  %v3709_v57 = vld [vmem:[#allocation7 + $0x260] sm:$0xff] }
 0x425   :  { %v3030_v30 = vand.u32 4294901760, %v3029_v53  ;;  %v3471_v45 = vand.u32 4294901760, %v3470_v42  ;;  %v3477_v22 = vand.u32 4294901760, %v3476_v56  ;;  %v3483_v53 = vand.u32 4294901760, %v3482_v25  ;;  %v3707_v42 = vld [vmem:[#allocation7 + $0x250] sm:$0xff] }
 0x426   :  { %3557 = vmatpush.msra.mxu1 %v8943_v59  ;;  %3460 = vmatpush.msrb.mxu3 %v3459_v32 }
 0x427   :  { %3031 = vmatmul.f32.vlgmr.msra.gmra.mxu0 %v3030_v30  ;;  %3331 = vmatmul.f32.vlgmr.msrb.gmra.mxu1 %v9035_v24 }
 0x428   :  { %3498 = vmatpush.msra.mxu0 %v8950_v18  ;;  %3559 = vmatpush.msra.mxu1 %v8945_v12  ;;  %v3723_v18 = vld [vmem:[#allocation7 + $0x2d0] sm:$0xff] }
 0x429   :  { %3466 = vmatpush.msrb.mxu3 %v3465_v8 }
 0x42a   :  { %3501 = vmatpush.msra.mxu0 %v8953_v6  ;;  %3561 = vmatpush.msra.mxu1 %v8947_v4 }
 0x42b   :  { %3472 = vmatpush.msrb.mxu3 %v3471_v45 }
 0x42c   :  { %3504 = vmatpush.msra.mxu0 %v8956_v16  ;;  %3563 = vmatpush.msra.mxu1 %v8959_v46 }
 0x42d   :  { %3478 = vmatpush.msrb.mxu3 %v3477_v22 }
 0x42e   :  { %3507 = vmatpush.msra.mxu0 %v8962_v60  ;;  %3565 = vmatpush.msra.mxu1 %v9007_v3  ;;  %v3721_v60 = vld [vmem:[#allocation7 + $0x2c0] sm:$0xff] }
 0x42f   :  { %3294 = vmatmul.f32.vlgmr.msrb.gmra.mxu0 %v9035_v24  ;;  %3484 = vmatpush.msrb.mxu3 %v3483_v53  ;;  %v3337_v24 = vld [vmem:[#allocation5 + $0x100] sm:$0xff]  ;;  %v9249_v53 = vand.u32 4294901760, %v3709_v57 }
 0x430   :  { %3510 = vmatpush.msra.mxu0 %v8965_v51  ;;  %3567 = vmatpush.msra.mxu1 %v9010_v10  ;;  %v3384_v38 = vand.u32 4294901760, %v3337_v24  ;;  %v3719_v51 = vld [vmem:[#allocation7 + $0x2b0] sm:$0xff] }
 0x432   :  { %3513 = vmatpush.msra.mxu0 %v8968_v62  ;;  %3569 = vmatpush.msra.mxu1 %v9012_v54  ;;  %v3486_v43 = vsub.f32 %v3337_v24, %v3384_v38  ;;  %v3717_v62 = vld [vmem:[#allocation7 + $0x2a0] sm:$0xff] }
 0x433   :  { %3385 = vmatpush.msrb.mxu2 %v3384_v38  ;;  %v3705_v24 = vld [vmem:[#allocation7 + $0x240] sm:$0xff] }
 0x434   :  { %3516 = vmatpush.msra.mxu0 %v8982_v39  ;;  %3571 = vmatpush.msra.mxu1 %v9020_v41  ;;  %v3487_v30 = vand.u32 4294901760, %v3486_v43 }
 0x435   :  { %3592 = vmatpush.msra.mxu2 %v3397_v23 }
 0x436   :  { %3519 = vmatpush.msra.mxu0 %v9023_v61  ;;  %3573 = vmatpush.msra.mxu1 %v9032_v26  ;;  %v3488_v13 = vsub.f32 %v3486_v43, %v3487_v30 }
 0x437   :  { %3596 = vmatpush.msra.mxu2 %v3403_v50  ;;  %v9189_v50 = vand.u32 4294901760, %v3721_v60 }
 0x438   :  { %3522 = vmatpush.msra.mxu0 %v9026_v63  ;;  %3575 = vmatpush.msra.mxu1 %v9046_v0  ;;  %v3489_v15 = vand.u32 4294901760, %v3488_v13  ;;  %v9254_v13 = vand.u32 4294901760, %v3707_v42 }
 0x439   :  { %3600 = vmatpush.msra.mxu2 %v3409_v9  ;;  %v9191_v9 = vand.u32 4294901760, %v3719_v51 }
 0x43a   :  { %3525 = vmatpush.msra.mxu0 %v9030_v5  ;;  %3577 = vmatpush.msra.mxu1 %v9051_v29 }
 0x43b   :  { %3604 = vmatpush.msra.mxu2 %v3415_v20  ;;  %3490 = vmatpush.msrb.mxu3 %v3489_v15  ;;  %v3715_v20 = vld [vmem:[#allocation7 + $0x290] sm:$0xff] }
 0x43c   :  { %3528 = vmatpush.msra.mxu0 %v9044_v27  ;;  %3579 = vmatpush.msra.mxu1 %v9079_v36 }
 0x43d   :  { %3659 = vmatpush.msra.mxu3 %v8937_v1  ;;  %3608 = vmatpush.msra.mxu2 %v3421_v52  ;;  %v2993_v1 = vperm.slane %v8973_v11, 0  ;;  %v9193_v11 = vand.u32 4294901760, %v3717_v62 }
 0x43e   :  { %3531 = vmatpush.msra.mxu0 %v9059_v49  ;;  %3581 = vmatpush.msra.mxu1 %v3384_v38 }
 0x43f   :  { %3661 = vmatpush.msra.mxu3 %v8939_v7  ;;  %3612 = vmatpush.msra.mxu2 %v3427_v44  ;;  %v9214_v61 = vsub.f32 %v3717_v62, %v9193_v11 }
 0x440   :  { %3534 = vmatpush.msra.mxu0 %v9068_v35 }
 0x441   :  { %3663 = vmatpush.msra.mxu3 %v8941_v47  ;;  %3616 = vmatpush.msra.mxu2 %v3433_v55 }
 0x442   :  { %3537 = vmatpush.msra.mxu0 %v9071_v58 }
 0x443   :  { %3665 = vmatpush.msra.mxu3 %v8943_v59  ;;  %3620 = vmatpush.msra.mxu2 %v3439_v48 }
 0x444   :  { %3540 = vmatpush.msra.mxu0 %v9088_v28  ;;  %v3711_v28 = vld [vmem:[#allocation7 + $0x270] sm:$0xff] }
 0x445   :  { %3667 = vmatpush.msra.mxu3 %v8945_v12  ;;  %3624 = vmatpush.msra.mxu2 %v3445_v19  ;;  %v3727_v12 = vld [vmem:[#allocation7 + $0x2f0] sm:$0xff]  ;;  %v9247_v22 = vand.u32 4294901760, %v3711_v28 }
 0x446   :  { %3543 = vmatpush.msra.mxu0 %v3486_v43  ;;  %v9183_v6 = vand.u32 4294901760, %v3727_v12 }
 0x447   :  { %3669 = vmatpush.msra.mxu3 %v8947_v4  ;;  %3628 = vmatpush.msra.mxu2 %v3451_v17  ;;  %v3725_v4 = vld [vmem:[#allocation7 + $0x2e0] sm:$0xff] }
 0x448   :  { %v9185_v16 = vand.u32 4294901760, %v3725_v4  ;;  %v9196_v39 = vsub.f32 %v3727_v12, %v9183_v6  ;;  %3732 = vmatpush.msrb.mxu0 %v9183_v6 }
 0x449   :  { %3671 = vmatpush.msra.mxu3 %v8959_v46  ;;  %3632 = vmatpush.msra.mxu2 %v3457_v33  ;;  %v9187_v46 = vand.u32 4294901760, %v3723_v18 }
 0x44a   :  { %v9199_v44 = vsub.f32 %v3725_v4, %v9185_v16  ;;  %v3774_v5 = vand.u32 4294901760, %v9196_v39  ;;  %3734 = vmatpush.msrb.mxu0 %v9185_v16 }
 0x44b   :  { %3673 = vmatpush.msra.mxu3 %v9007_v3  ;;  %3636 = vmatpush.msra.mxu2 %v3463_v21  ;;  %v9202_v55 = vsub.f32 %v3723_v18, %v9187_v46  ;;  %v9205_v3 = vand.u32 4294901760, %v3715_v20 }
 0x44c   :  { %v3775_v49 = vsub.f32 %v9196_v39, %v3774_v5  ;;  %3736 = vmatpush.msrb.mxu0 %v9187_v46 }
 0x44d   :  { %3675 = vmatpush.msra.mxu3 %v9010_v10  ;;  %3640 = vmatpush.msra.mxu2 %v3469_v40  ;;  %v3786_v48 = vand.u32 4294901760, %v9202_v55  ;;  %v3713_v40 = vld [vmem:[#allocation7 + $0x280] sm:$0xff] }
 0x44e   :  { %3738 = vmatpush.msrb.mxu0 %v9189_v50  ;;  %v9244_v25 = vand.u32 4294901760, %v3713_v40 }
 0x44f   :  { %3677 = vmatpush.msra.mxu3 %v9012_v54  ;;  %3644 = vmatpush.msra.mxu2 %v3475_v34  ;;  %v9208_v54 = vsub.f32 %v3721_v60, %v9189_v50  ;;  %v3787_v35 = vsub.f32 %v9202_v55, %v3786_v48  ;;  %v3776_v34 = vand.u32 4294901760, %v3775_v49 }
 0x450   :  { %3740 = vmatpush.msrb.mxu0 %v9191_v9  ;;  %v9257_v15 = vsub.f32 %v3713_v40, %v9244_v25 }
 0x451   :  { %3679 = vmatpush.msra.mxu3 %v9020_v41  ;;  %3648 = vmatpush.msra.mxu2 %v3481_v2  ;;  %v9211_v41 = vsub.f32 %v3719_v51, %v9191_v9  ;;  %v3792_v27 = vand.u32 4294901760, %v9208_v54  ;;  %v3788_v45 = vand.u32 4294901760, %v3787_v35  ;;  %v3701_v51 = vld [vmem:[#allocation7 + $0x220] sm:$0xff]  ;;  %v3699_v35 = vld [vmem:[#allocation7 + $0x210] sm:$0xff] }
 0x452   :  { %3777 = vmatpush.msrb.mxu1 %v3776_v34  ;;  %3742 = vmatpush.msrb.mxu0 %v9193_v11  ;;  %v3816_v60 = vand.u32 4294901760, %v9257_v15 }
 0x453   :  { %3681 = vmatpush.msra.mxu3 %v9032_v26  ;;  %3652 = vmatpush.msra.mxu2 %v3487_v30  ;;  %v3780_v26 = vand.u32 4294901760, %v9199_v44  ;;  %v3793_v21 = vsub.f32 %v9208_v54, %v3792_v27 }
 0x454   :  { %3744 = vmatpush.msrb.mxu0 %v9205_v3  ;;  %v3817_v49 = vsub.f32 %v9257_v15, %v3816_v60 }
 0x455   :  { %3683 = vmatpush.msra.mxu3 %v9046_v0  ;;  %v3798_v0 = vand.u32 4294901760, %v9211_v41  ;;  %v3781_v33 = vsub.f32 %v9199_v44, %v3780_v26  ;;  %v3794_v43 = vand.u32 4294901760, %v3793_v21  ;;  %v3697_v21 = vld [vmem:[#allocation7 + $0x200] sm:$0xff] }
 0x456   :  { %3746 = vmatpush.msrb.mxu0 %v9244_v25 }
 0x457   :  { %3685 = vmatpush.msra.mxu3 %v9051_v29  ;;  %v9223_v29 = vsub.f32 %v3715_v20, %v9205_v3  ;;  %v3782_v32 = vand.u32 4294901760, %v3781_v33  ;;  %v3799_v8 = vsub.f32 %v9211_v41, %v3798_v0  ;;  %v9279_v20 = vsub.f32 %v3707_v42, %v9254_v13 }
 0x458   :  { %v9291_v33 = vand.u32 4294901760, %v3701_v51  ;;  %v9307_v42 = vand.u32 4294901760, %v3699_v35  ;;  %3748 = vmatpush.msrb.mxu0 %v9247_v22 }
 0x459   :  { %3687 = vmatpush.msra.mxu3 %v9079_v36  ;;  %v3804_v36 = vand.u32 4294901760, %v9214_v61  ;;  %v3810_v56 = vand.u32 4294901760, %v9223_v29  ;;  %3783 = vmatpush.msrb.mxu1 %v3782_v32  ;;  %v3800_v4 = vand.u32 4294901760, %v3799_v8  ;;  %v3818_v8 = vand.u32 4294901760, %v3817_v49 }
 0x45a   :  { %3750 = vmatpush.msrb.mxu0 %v9249_v53 }
 0x45b   :  { %3689 = vmatpush.msra.mxu3 %v3384_v38  ;;  %v3805_v30 = vsub.f32 %v9214_v61, %v3804_v36  ;;  %3789 = vmatpush.msrb.mxu1 %v3788_v45  ;;  %v3811_v18 = vsub.f32 %v9223_v29, %v3810_v56  ;;  %v9311_v45 = vsub.f32 %v3701_v51, %v9291_v33 }
 0x45c   :  { %3752 = vmatpush.msrb.mxu0 %v9254_v13 }
 0x45d   :  { %3795 = vmatpush.msrb.mxu1 %v3794_v43  ;;  %v3852_v51 = vand.u32 4294901760, %v9311_v45 }
 0x45f   :  { %3801 = vmatpush.msrb.mxu1 %v3800_v4 }
 0x49c   :  { %v3133_v7 = vpop.f32.mrf.mxu1 }
 0x4a4   :  { %v3032_v47 = vpop.f32.mrf.mxu0  ;;  %v3187_v52 = vpop.f32.mrf.mxu2 }
 0x4a5   :  { %v3033_v59 = vadd.f32 %v3032_v47, %v2993_v1  ;;  %v3332_v31 = vpop.f32.mrf.mxu1  ;;  %v9260_v1 = vsub.f32 %v3711_v28, %v9247_v22  ;;  %v9266_v47 = vand.u32 4294901760, %v3705_v24 }
 0x4a6   :  { %v3226_v63 = vpop.f32.mrf.mxu3 }
 0x4a7   :  { %v3134_v23 = vadd.f32 %v3133_v7, %v3033_v59  ;;  %v9264_v7 = vsub.f32 %v3709_v57, %v9249_v53  ;;  %v3703_v59 = vld [vmem:[#allocation7 + $0x230] sm:$0xff]  ;;  %v3834_v57 = vand.u32 4294901760, %v9279_v20  ;;  %3754 = vmatpush.msrb.mxu0 %v9266_v47 }
 0x4a9   :  { %v3188_v10 = vadd.f32 %v3187_v52, %v3134_v23  ;;  %v3822_v23 = vand.u32 4294901760, %v9260_v1  ;;  %v9281_v52 = vand.u32 4294901760, %v3703_v59  ;;  %v3835_v43 = vsub.f32 %v9279_v20, %v3834_v57 }
 0x4ab   :  { %v3227_v19 = vadd.f32 %v3226_v63, %v3188_v10  ;;  %v3806_v10 = vand.u32 4294901760, %v3805_v30  ;;  %v3828_v63 = vand.u32 4294901760, %v9264_v7  ;;  %v3823_v28 = vsub.f32 %v9260_v1, %v3822_v23  ;;  %3756 = vmatpush.msrb.mxu0 %v9281_v52 }
 0x4ac   :  { %v3295_v17 = vpop.f32.mrf.mxu0 }
 0x4ad   :  { %v3296_v58 = vadd.f32 %v3295_v17, %v3227_v19  ;;  %v9286_v19 = vsub.f32 %v3705_v24, %v9266_v47  ;;  %3807 = vmatpush.msrb.mxu1 %v3806_v10  ;;  %v3829_v34 = vsub.f32 %v9264_v7, %v3828_v63  ;;  %v9313_v24 = vand.u32 4294901760, %v3697_v21  ;;  %3758 = vmatpush.msrb.mxu0 %v9291_v33 }
 0x4ae   :  { %v3836_v10 = vand.u32 4294901760, %v3835_v43 }
 0x4af   :  { %v3333_v2 = vadd.f32 %v3332_v31, %v3296_v58  ;;  %v3812_v58 = vand.u32 4294901760, %v3811_v18  ;;  %v9300_v31 = vsub.f32 %v3703_v59, %v9281_v52  ;;  %v3840_v32 = vand.u32 4294901760, %v9286_v19  ;;  %3760 = vmatpush.msrb.mxu0 %v9307_v42 }
 0x4b0   :  { %v9322_v59 = vsub.f32 %v3699_v35, %v9307_v42  ;;  %v3830_v4 = vand.u32 4294901760, %v3829_v34 }
 0x4b1   :  { %v3335_v38 = vmax.f32 %v3333_v2, 0.0  ;;  %3813 = vmatpush.msrb.mxu1 %v3812_v58  ;;  %v3846_v30 = vand.u32 4294901760, %v9300_v31  ;;  %v3841_v18 = vsub.f32 %v9286_v19, %v3840_v32  ;;  %v3853_v58 = vsub.f32 %v9311_v45, %v3852_v51  ;;  %3762 = vmatpush.msrb.mxu0 %v9313_v24 }
 0x4b2   :  { %v3858_v49 = vand.u32 4294901760, %v9322_v59 }
 0x4b3   :  { %v9268_v12 = vand.u32 4294901760, %v3335_v38  ;;  %3819 = vmatpush.msrb.mxu1 %v3818_v8  ;;  %v3842_v35 = vand.u32 4294901760, %v3841_v18  ;;  %v3854_v34 = vand.u32 4294901760, %v3853_v58 }
 0x4b5   :  { %v3387_v62 = vsub.f32 %v3335_v38, %v9268_v12  ;;  %3492 = vmatmul.f32.vlgmr.msrb.gmra.mxu3 %v9268_v12  ;;  %v3824_v38 = vand.u32 4294901760, %v3823_v28  ;;  %v3859_v28 = vsub.f32 %v9322_v59, %v3858_v49 }
 0x4b6   :  { %3928 = vmatpush.msrb.mxu3 %v9183_v6 }
 0x4b7   :  { %3546 = vmatmul.f32.vlgmr.msra.gmra.mxu0 %v3387_v62  ;;  %v3388_v17 = vand.u32 4294901760, %v3387_v62  ;;  %3825 = vmatpush.msrb.mxu1 %v3824_v38 }
 0x4b8   :  { %3930 = vmatpush.msrb.mxu3 %v9185_v16  ;;  %3969 = vmatpush.msra.mxu0 %v3774_v5 }
 0x4b9   :  { %3585 = vmatmul.f32.vlgmr.msra.gmra.mxu1 %v3388_v17  ;;  %v3389_v40 = vsub.f32 %v3387_v62, %v3388_v17  ;;  %v9332_v62 = vsub.f32 %v3697_v21, %v9313_v24  ;;  %v3847_v17 = vsub.f32 %v9300_v31, %v3846_v30 }
 0x4ba   :  { %3932 = vmatpush.msrb.mxu3 %v9187_v46  ;;  %3831 = vmatpush.msrb.mxu1 %v3830_v4 }
 0x4bb   :  { %v3390_v2 = vand.u32 4294901760, %v3389_v40  ;;  %v3864_v21 = vand.u32 4294901760, %v9332_v62  ;;  %v3848_v40 = vand.u32 4294901760, %v3847_v17  ;;  %3973 = vmatpush.msra.mxu0 %v3780_v26  ;;  %v3720_v26 = vld [vmem:[#allocation7 + $0x2b8] sm:$0xff] }
 0x4bc   :  { %3934 = vmatpush.msrb.mxu3 %v9189_v50  ;;  %3837 = vmatpush.msrb.mxu1 %v3836_v10  ;;  %v3708_v10 = vld [vmem:[#allocation7 + $0x258] sm:$0xff] }
 0x4bd   :  { %3391 = vmatmul.f32.vlgmr.msrb.gmra.mxu2 %v3390_v2  ;;  %3691 = vmatmul.f32.vlgmr.msra.gmra.mxu3 %v9268_v12  ;;  %v3865_v2 = vsub.f32 %v9332_v62, %v3864_v21 }
 0x4be   :  { %3875 = vmatpush.msrb.mxu2 %v9196_v39  ;;  %3936 = vmatpush.msrb.mxu3 %v9191_v9 }
 0x4bf   :  { %3843 = vmatpush.msrb.mxu1 %v3842_v35  ;;  %v3866_v8 = vand.u32 4294901760, %v3865_v2  ;;  %3977 = vmatpush.msra.mxu0 %v3786_v48  ;;  %v9516_v35 = vand.u32 4294901760, %v3708_v10 }
 0x4c0   :  { %3878 = vmatpush.msrb.mxu2 %v9199_v44  ;;  %3938 = vmatpush.msrb.mxu3 %v9193_v11 }
 0x4c1   :  { %3849 = vmatpush.msrb.mxu1 %v3848_v40  ;;  %3981 = vmatpush.msra.mxu0 %v3792_v27  ;;  %v3706_v40 = vld [vmem:[#allocation7 + $0x248] sm:$0xff] }
 0x4c2   :  { %3881 = vmatpush.msrb.mxu2 %v9202_v55  ;;  %3940 = vmatpush.msrb.mxu3 %v9205_v3  ;;  %v9529_v2 = vand.u32 4294901760, %v3706_v40 }
 0x4c3   :  { %3855 = vmatpush.msrb.mxu1 %v3854_v34  ;;  %3985 = vmatpush.msra.mxu0 %v3798_v0 }
 0x4c4   :  { %3884 = vmatpush.msrb.mxu2 %v9208_v54  ;;  %3942 = vmatpush.msrb.mxu3 %v9244_v25 }
 0x4c5   :  { %3654 = vmatmul.f32.vlgmr.msra.gmra.mxu2 %v9268_v12  ;;  %v3860_v12 = vand.u32 4294901760, %v3859_v28  ;;  %3989 = vmatpush.msra.mxu0 %v3804_v36 }
 0x4c6   :  { %3887 = vmatpush.msrb.mxu2 %v9211_v41  ;;  %3944 = vmatpush.msrb.mxu3 %v9247_v22 }
 0x4c7   :  { %3861 = vmatpush.msrb.mxu1 %v3860_v12  ;;  %3993 = vmatpush.msra.mxu0 %v3810_v56  ;;  %v3718_v56 = vld [vmem:[#allocation7 + $0x2a8] sm:$0xff]  ;;  %v9532_v12 = vsub.f32 %v3708_v10, %v9516_v35 }
 0x4c8   :  { %3890 = vmatpush.msrb.mxu2 %v9214_v61  ;;  %3946 = vmatpush.msrb.mxu3 %v9249_v53 }
 0x4c9   :  { %3867 = vmatpush.msrb.mxu1 %v3866_v8  ;;  %3997 = vmatpush.msra.mxu0 %v3816_v60 }
 0x4ca   :  { %3893 = vmatpush.msrb.mxu2 %v9223_v29  ;;  %3948 = vmatpush.msrb.mxu3 %v9254_v13  ;;  %v9459_v29 = vand.u32 4294901760, %v3720_v26 }
 0x4cb   :  { %4036 = vmatpush.msra.mxu1 %v9183_v6  ;;  %4001 = vmatpush.msra.mxu0 %v3822_v23  ;;  %v3728_v6 = vld [vmem:[#allocation7 + $0x2f8] sm:$0xff] }
 0x4cc   :  { %3896 = vmatpush.msrb.mxu2 %v9257_v15  ;;  %3950 = vmatpush.msrb.mxu3 %v9266_v47 }
 0x4cd   :  { %4038 = vmatpush.msra.mxu1 %v9185_v16  ;;  %4005 = vmatpush.msra.mxu0 %v3828_v63  ;;  %v9429_v16 = vand.u32 4294901760, %v3728_v6 }
 0x4ce   :  { %3899 = vmatpush.msrb.mxu2 %v9260_v1  ;;  %3952 = vmatpush.msrb.mxu3 %v9281_v52  ;;  %v3716_v1 = vld [vmem:[#allocation7 + $0x298] sm:$0xff] }
 0x4cf   :  { %4040 = vmatpush.msra.mxu1 %v9187_v46  ;;  %4009 = vmatpush.msra.mxu0 %v3834_v57  ;;  %v3726_v46 = vld [vmem:[#allocation7 + $0x2e8] sm:$0xff]  ;;  %v9476_v60 = vand.u32 4294901760, %v3716_v1 }
 0x4d0   :  { %3902 = vmatpush.msrb.mxu2 %v9264_v7  ;;  %3954 = vmatpush.msrb.mxu3 %v9291_v33 }
 0x4d1   :  { %4042 = vmatpush.msra.mxu1 %v9189_v50  ;;  %4013 = vmatpush.msra.mxu0 %v3840_v32  ;;  %v9433_v50 = vsub.f32 %v3728_v6, %v9429_v16  ;;  %v9492_v57 = vsub.f32 %v3716_v1, %v9476_v60  ;;  %v3712_v32 = vld [vmem:[#allocation7 + $0x278] sm:$0xff] }
 0x4d2   :  { %3905 = vmatpush.msrb.mxu2 %v9279_v20  ;;  %3956 = vmatpush.msrb.mxu3 %v9307_v42  ;;  %v9499_v38 = vand.u32 4294901760, %v3712_v32  ;;  %v3704_v6 = vld [vmem:[#allocation7 + $0x238] sm:$0xff] }
 0x4d3   :  { %4044 = vmatpush.msra.mxu1 %v9191_v9  ;;  %4017 = vmatpush.msra.mxu0 %v3846_v30  ;;  %v9435_v9 = vand.u32 4294901760, %v3726_v46  ;;  %v4115_v39 = vand.u32 4294901760, %v9433_v50  ;;  %v3710_v30 = vld [vmem:[#allocation7 + $0x268] sm:$0xff] }
 0x4d4   :  { %3908 = vmatpush.msrb.mxu2 %v9286_v19  ;;  %3958 = vmatpush.msrb.mxu3 %v9313_v24  ;;  %v9508_v18 = vand.u32 4294901760, %v3710_v30 }
 0x4d5   :  { %4046 = vmatpush.msra.mxu1 %v9193_v11  ;;  %4021 = vmatpush.msra.mxu0 %v3852_v51  ;;  %v3724_v11 = vld [vmem:[#allocation7 + $0x2d8] sm:$0xff]  ;;  %v9442_v55 = vsub.f32 %v3726_v46, %v9435_v9  ;;  %v4116_v54 = vsub.f32 %v9433_v50, %v4115_v39  ;;  %v9511_v51 = vsub.f32 %v3712_v32, %v9499_v38 }
 0x4d6   :  { %3911 = vmatpush.msrb.mxu2 %v9300_v31  ;;  %v9439_v44 = vand.u32 4294901760, %v3724_v11  ;;  %v9519_v58 = vsub.f32 %v3710_v30, %v9508_v18 }
 0x4d7   :  { %4048 = vmatpush.msra.mxu1 %v9205_v3  ;;  %4025 = vmatpush.msra.mxu0 %v3858_v49  ;;  %v3722_v3 = vld [vmem:[#allocation7 + $0x2c8] sm:$0xff]  ;;  %v4121_v41 = vand.u32 4294901760, %v9442_v55  ;;  %v4117_v48 = vand.u32 4294901760, %v4116_v54  ;;  %v4163_v49 = vand.u32 4294901760, %v9511_v51  ;;  %v9539_v54 = vand.u32 4294901760, %v3704_v6 }
 0x4d8   :  { %3914 = vmatpush.msrb.mxu2 %v9311_v45  ;;  %v9449_v61 = vand.u32 4294901760, %v3722_v3  ;;  %v9452_v5 = vsub.f32 %v3724_v11, %v9439_v44  ;;  %v4169_v34 = vand.u32 4294901760, %v9519_v58 }
 0x4d9   :  { %4050 = vmatpush.msra.mxu1 %v9244_v25  ;;  %4029 = vmatpush.msra.mxu0 %v3864_v21  ;;  %v4122_v27 = vsub.f32 %v9442_v55, %v4121_v41  ;;  %v4164_v28 = vsub.f32 %v9511_v51, %v4163_v49 }
 0x4da   :  { %3917 = vmatpush.msrb.mxu2 %v9322_v59  ;;  %v4127_v0 = vand.u32 4294901760, %v9452_v5  ;;  %v9462_v36 = vsub.f32 %v3722_v3, %v9449_v61  ;;  %4118 = vmatpush.msra.mxu3 %v4117_v48  ;;  %v4170_v11 = vsub.f32 %v9519_v58, %v4169_v34  ;;  %v4175_v3 = vand.u32 4294901760, %v9532_v12  ;;  %v3702_v48 = vld [vmem:[#allocation7 + $0x228] sm:$0xff] }
 0x4db   :  { %4052 = vmatpush.msra.mxu1 %v9247_v22  ;;  %v4123_v25 = vand.u32 4294901760, %v4122_v27  ;;  %v4165_v46 = vand.u32 4294901760, %v4164_v28 }
 0x4dc   :  { %3920 = vmatpush.msrb.mxu2 %v9332_v62  ;;  %v4128_v22 = vsub.f32 %v9452_v5, %v4127_v0  ;;  %v4133_v15 = vand.u32 4294901760, %v9462_v36  ;;  %v4171_v27 = vand.u32 4294901760, %v4170_v11 }
 0x4dd   :  { %4054 = vmatpush.msra.mxu1 %v9249_v53  ;;  %v9468_v53 = vand.u32 4294901760, %v3718_v56  ;;  %4124 = vmatpush.msra.mxu3 %v4123_v25  ;;  %v9548_v25 = vand.u32 4294901760, %v3702_v48 }
 0x4de   :  { %4073 = vmatpush.msra.mxu2 %v9429_v16  ;;  %v4129_v7 = vand.u32 4294901760, %v4128_v22  ;;  %v4134_v20 = vsub.f32 %v9462_v36, %v4133_v15  ;;  %v9551_v22 = vsub.f32 %v3704_v6, %v9539_v54 }
 0x4df   :  { %4056 = vmatpush.msra.mxu1 %v9254_v13  ;;  %v9471_v13 = vsub.f32 %v3720_v26, %v9459_v29  ;;  %v9479_v23 = vsub.f32 %v3718_v56, %v9468_v53  ;;  %v9542_v26 = vsub.f32 %v3706_v40, %v9529_v2  ;;  %v4176_v56 = vsub.f32 %v9532_v12, %v4175_v3 }
 0x4e0   :  { %4075 = vmatpush.msra.mxu2 %v9435_v9  ;;  %4130 = vmatpush.msra.mxu3 %v4129_v7  ;;  %v4135_v31 = vand.u32 4294901760, %v4134_v20  ;;  %v3700_v7 = vld [vmem:[#allocation7 + $0x218] sm:$0xff] }
 0x4e1   :  { %4058 = vmatpush.msra.mxu1 %v9266_v47  ;;  %v4139_v47 = vand.u32 4294901760, %v9471_v13  ;;  %v4145_v19 = vand.u32 4294901760, %v9479_v23  ;;  %v4181_v1 = vand.u32 4294901760, %v9542_v26  ;;  %v4177_v20 = vand.u32 4294901760, %v4176_v56  ;;  %v9592_v56 = vld [vmem:[%s11038_s4 + $0x20] sm:$0xff] }
 0x4e2   :  { %4077 = vmatpush.msra.mxu2 %v9439_v44  ;;  %4136 = vmatpush.msra.mxu3 %v4135_v31  ;;  %v9559_v31 = vsub.f32 %v3702_v48, %v9548_v25 }
 0x4e3   :  { %4060 = vmatpush.msra.mxu1 %v9281_v52  ;;  %v3714_v52 = vld [vmem:[#allocation7 + $0x288] sm:$0xff]  ;;  %v4140_v63 = vsub.f32 %v9471_v13, %v4139_v47  ;;  %v4146_v45 = vsub.f32 %v9479_v23, %v4145_v19  ;;  %v4182_v32 = vsub.f32 %v9542_v26, %v4181_v1 }
 0x4e4   :  { %4079 = vmatpush.msra.mxu2 %v9449_v61  ;;  %v11050_v30 = vand.u32 4294901760, %v9559_v31 }
 0x4e5   :  { %4062 = vmatpush.msra.mxu1 %v9291_v33  ;;  %v9489_v33 = vand.u32 4294901760, %v3714_v52  ;;  %v4147_v59 = vand.u32 4294901760, %v4146_v45  ;;  %v4183_v10 = vand.u32 4294901760, %v4182_v32 }
 0x4e6   :  { %4081 = vmatpush.msra.mxu2 %v9459_v29 }
 0x4e7   :  { %4064 = vmatpush.msra.mxu1 %v9307_v42  ;;  %v4141_v42 = vand.u32 4294901760, %v4140_v63  ;;  %v9502_v43 = vsub.f32 %v3714_v52, %v9489_v33  ;;  %v4187_v52 = vand.u32 4294901760, %v9551_v22  ;;  %v9556_v63 = vand.u32 4294901760, %v3700_v7 }
 0x4e8   :  { %4083 = vmatpush.msra.mxu2 %v9468_v53 }
 0x4e9   :  { %4066 = vmatpush.msra.mxu1 %v9313_v24  ;;  %v4151_v24 = vand.u32 4294901760, %v9492_v57  ;;  %4142 = vmatpush.msra.mxu3 %v4141_v42  ;;  %v4157_v62 = vand.u32 4294901760, %v9502_v43  ;;  %v3698_v42 = vld [vmem:[#allocation7 + $0x208] sm:$0xff]  ;;  %v4188_v45 = vsub.f32 %v9551_v22, %v4187_v52 }
 0x4ea   :  { %4085 = vmatpush.msra.mxu2 %v9476_v60 }
 0x4eb   :  { %v4152_v4 = vsub.f32 %v9492_v57, %v4151_v24  ;;  %4148 = vmatpush.msra.mxu3 %v4147_v59  ;;  %v4158_v21 = vsub.f32 %v9502_v43, %v4157_v62  ;;  %v9569_v59 = vand.u32 4294901760, %v3698_v42 }
 0x4ec   :  { %4087 = vmatpush.msra.mxu2 %v9489_v33 }
 0x4ed   :  { %v4153_v17 = vand.u32 4294901760, %v4152_v4  ;;  %v4159_v8 = vand.u32 4294901760, %v4158_v21  ;;  %v9572_v4 = vsub.f32 %v3700_v7, %v9556_v63  ;;  %v4194_v21 = vsub.f32 %v9559_v31, %v11050_v30 }
 0x4ee   :  { %4089 = vmatpush.msra.mxu2 %v9499_v38  ;;  %v9580_v28 = vsub.f32 %v3698_v42, %v9569_v59  ;;  %v3353_v7 = vperm.slane %v9592_v56, 1 }
 0x4ef   :  { %4154 = vmatpush.msra.mxu3 %v4153_v17  ;;  %v4189_v17 = vand.u32 4294901760, %v4188_v45  ;;  %v11049_v40 = vand.u32 4294901760, %v9572_v4 }
 0x4f0   :  { %4091 = vmatpush.msra.mxu2 %v9508_v18 }
 0x4f1   :  { %4160 = vmatpush.msra.mxu3 %v4159_v8  ;;  %v4195_v8 = vand.u32 4294901760, %v4194_v21  ;;  %v4200_v6 = vsub.f32 %v9572_v4, %v11049_v40 }
 0x4f2   :  { %4093 = vmatpush.msra.mxu2 %v9516_v35 }
 0x4f3   :  { %4166 = vmatpush.msra.mxu3 %v4165_v46  ;;  %v11048_v46 = vand.u32 4294901760, %v9580_v28  ;;  %v4201_v11 = vand.u32 4294901760, %v4200_v6 }
 0x4f4   :  { %4095 = vmatpush.msra.mxu2 %v9529_v2 }
 0x4f5   :  { %4172 = vmatpush.msra.mxu3 %v4171_v27  ;;  %v4206_v48 = vsub.f32 %v9580_v28, %v11048_v46 }
 0x4f6   :  { %4097 = vmatpush.msra.mxu2 %v9539_v54 }
 0x4f7   :  { %4178 = vmatpush.msra.mxu3 %v4177_v20  ;;  %v4207_v27 = vand.u32 4294901760, %v4206_v48 }
 0x4f8   :  { %4099 = vmatpush.msra.mxu2 %v9548_v25 }
 0x4f9   :  { %4184 = vmatpush.msra.mxu3 %v4183_v10 }
 0x4fa   :  { %4101 = vmatpush.msra.mxu2 %v9556_v63 }
 0x4fb   :  { %4190 = vmatpush.msra.mxu3 %v4189_v17 }
 0x4fc   :  { %4103 = vmatpush.msra.mxu2 %v9569_v59 }
 0x4fd   :  { %4196 = vmatpush.msra.mxu3 %v4195_v8 }
 0x4ff   :  { %4202 = vmatpush.msra.mxu3 %v4201_v11 }
 0x501   :  { %4208 = vmatpush.msra.mxu3 %v4207_v27 }
 0x534   :  { %v3547_v10 = vpop.f32.mrf.mxu0 }
 0x536   :  { %v3586_v21 = vpop.f32.mrf.mxu1 }
 0x538   :  { %v3493_v20 = vpop.f32.mrf.mxu3 }
 0x540   :  { %v3392_v32 = vpop.f32.mrf.mxu2  ;;  %v3692_v48 = vpop.f32.mrf.mxu3 }
 0x541   :  { %v3393_v42 = vadd.f32 %v3392_v32, %v3353_v7  ;;  %v4433_v32 = vld [vmem:[#allocation2 + $0x1b0] sm:$0xff] }
 0x543   :  { %v3494_v45 = vadd.f32 %v3493_v20, %v3393_v42 }
 0x545   :  { %v3548_v17 = vadd.f32 %v3547_v10, %v3494_v45 }
 0x547   :  { %v3587_v6 = vadd.f32 %v3586_v21, %v3548_v17  ;;  %v9792_v21 = vand.u32 4294901760, %v4433_v32 }
 0x548   :  { %v3655_v46 = vpop.f32.mrf.mxu2 }
 0x549   :  { %v3656_v8 = vadd.f32 %v3655_v46, %v3587_v6  ;;  %v4432_v6 = vld [vmem:[#allocation2 + $0x1a8] sm:$0xff] }
 0x54b   :  { %v3693_v11 = vadd.f32 %v3692_v48, %v3656_v8 }
 0x54d   :  { %v3695_v27 = vmax.f32 %v3693_v11, 0.0 }
 0x54f   :  { %v9595_v40 = vand.u32 4294901760, %v3695_v27 }
 0x551   :  { %v9598_v30 = vsub.f32 %v3695_v27, %v9595_v40  ;;  %3869 = vmatmul.f32.vlgmr.msrb.gmra.mxu1 %v9595_v40  ;;  %v9799_v27 = vand.u32 4294901760, %v4432_v6 }
 0x552   :  { %4269 = vmatpush.msrb.mxu1 %v9429_v16 }
 0x553   :  { %3923 = vmatmul.f32.vlgmr.msrb.gmra.mxu2 %v9598_v30  ;;  %v9604_v7 = vand.u32 4294901760, %v9598_v30 }
 0x554   :  { %4271 = vmatpush.msrb.mxu1 %v9435_v9  ;;  %4310 = vmatpush.msrb.mxu2 %v4115_v39  ;;  %v4442_v39 = vld [vmem:[#allocation2 + $0x1f8] sm:$0xff] }
 0x555   :  { %3962 = vmatmul.f32.vlgmr.msrb.gmra.mxu3 %v9604_v7  ;;  %v3766_v46 = vsub.f32 %v9598_v30, %v9604_v7 }
 0x556   :  { %4273 = vmatpush.msrb.mxu1 %v9439_v44  ;;  %4314 = vmatpush.msrb.mxu2 %v4121_v41 }
 0x557   :  { %4377 = vmatpush.msrb.mxu3 %v9429_v16  ;;  %v3767_v20 = vand.u32 4294901760, %v3766_v46  ;;  %v11060_v16 = vand.u32 4294901760, %v9559_v31  ;;  %v4431_v46 = vld [vmem:[#allocation2 + $0x1a0] sm:$0xff] }
 0x558   :  { %4275 = vmatpush.msrb.mxu1 %v9449_v61  ;;  %4318 = vmatpush.msrb.mxu2 %v4127_v0 }
 0x559   :  { %4379 = vmatpush.msrb.mxu3 %v9435_v9  ;;  %3768 = vmatmul.f32.vlgmr.msrb.gmra.mxu0 %v3767_v20  ;;  %v11062_v9 = vand.u32 4294901760, %v9580_v28 }
 0x55a   :  { %4068 = vmatmul.f32.vlgmr.msra.gmra.mxu1 %v9595_v40  ;;  %4216 = vmatpush.msrb.mxu0 %v9433_v50  ;;  %v11061_v50 = vand.u32 4294901760, %v9572_v4 }
 0x55b   :  { %4277 = vmatpush.msrb.mxu1 %v9459_v29  ;;  %4322 = vmatpush.msrb.mxu2 %v4133_v15 }
 0x55c   :  { %4381 = vmatpush.msrb.mxu3 %v9439_v44  ;;  %4109 = vmatmul.f32.vlgmr.msra.gmra.mxu2 %v3767_v20  ;;  %v9695_v44 = vand.u32 4294901760, %v4442_v39 }
 0x55d   :  { %4219 = vmatpush.msrb.mxu0 %v9442_v55  ;;  %4279 = vmatpush.msrb.mxu1 %v9468_v53  ;;  %v4441_v55 = vld [vmem:[#allocation2 + $0x1f0] sm:$0xff] }
 0x55e   :  { %4326 = vmatpush.msrb.mxu2 %v4139_v47  ;;  %4383 = vmatpush.msrb.mxu3 %v9449_v61  ;;  %v9698_v41 = vsub.f32 %v4442_v39, %v9695_v44  ;;  %v9700_v61 = vand.u32 4294901760, %v4441_v55 }
 0x55f   :  { %4210 = vmatmul.f32.vlgmr.msra.gmra.mxu3 %v9595_v40  ;;  %4222 = vmatpush.msrb.mxu0 %v9452_v5  ;;  %v4440_v5 = vld [vmem:[#allocation2 + $0x1e8] sm:$0xff] }
 0x560   :  { %4281 = vmatpush.msrb.mxu1 %v9476_v60  ;;  %4330 = vmatpush.msrb.mxu2 %v4145_v19  ;;  %v4487_v0 = vand.u32 4294901760, %v9698_v41 }
 0x561   :  { %4385 = vmatpush.msrb.mxu3 %v9459_v29  ;;  %4225 = vmatpush.msrb.mxu0 %v9462_v36  ;;  %v9706_v29 = vsub.f32 %v4441_v55, %v9700_v61  ;;  %v9708_v36 = vand.u32 4294901760, %v4440_v5  ;;  %v4430_v55 = vld [vmem:[#allocation2 + $0x198] sm:$0xff] }
 0x562   :  { %4283 = vmatpush.msrb.mxu1 %v9489_v33  ;;  %4334 = vmatpush.msrb.mxu2 %v4151_v24 }
 0x563   :  { %4387 = vmatpush.msrb.mxu3 %v9468_v53  ;;  %4031 = vmatmul.f32.vlgmr.msra.gmra.mxu0 %v9595_v40  ;;  %v4439_v53 = vld [vmem:[#allocation2 + $0x1e0] sm:$0xff]  ;;  %v4493_v15 = vand.u32 4294901760, %v9706_v29  ;;  %v9718_v47 = vsub.f32 %v4440_v5, %v9708_v36 }
 0x564   :  { %4228 = vmatpush.msrb.mxu0 %v9471_v13  ;;  %4285 = vmatpush.msrb.mxu1 %v9499_v38  ;;  %v4488_v13 = vsub.f32 %v9698_v41, %v4487_v0 }
 0x565   :  { %4338 = vmatpush.msrb.mxu2 %v4157_v62  ;;  %4389 = vmatpush.msrb.mxu3 %v9476_v60  ;;  %v9720_v60 = vand.u32 4294901760, %v4439_v53 }
 0x566   :  { %4231 = vmatpush.msrb.mxu0 %v9479_v23  ;;  %4287 = vmatpush.msrb.mxu1 %v9508_v18  ;;  %v4438_v23 = vld [vmem:[#allocation2 + $0x1d8] sm:$0xff]  ;;  %v4489_v19 = vand.u32 4294901760, %v4488_v13 }
 0x567   :  { %4342 = vmatpush.msrb.mxu2 %v4163_v49  ;;  %4391 = vmatpush.msrb.mxu3 %v9489_v33  ;;  %v4494_v33 = vsub.f32 %v9706_v29, %v4493_v15  ;;  %v9730_v24 = vsub.f32 %v4439_v53, %v9720_v60 }
 0x568   :  { %4234 = vmatpush.msrb.mxu0 %v9492_v57  ;;  %4289 = vmatpush.msrb.mxu1 %v9516_v35  ;;  %v4499_v57 = vand.u32 4294901760, %v9718_v47 }
 0x569   :  { %4346 = vmatpush.msrb.mxu2 %v4169_v34  ;;  %4393 = vmatpush.msrb.mxu3 %v9499_v38  ;;  %v9734_v38 = vand.u32 4294901760, %v4438_v23  ;;  %v4505_v62 = vand.u32 4294901760, %v9730_v24 }
 0x56a   :  { %4237 = vmatpush.msrb.mxu0 %v9502_v43  ;;  %4291 = vmatpush.msrb.mxu1 %v9529_v2  ;;  %v4437_v43 = vld [vmem:[#allocation2 + $0x1d0] sm:$0xff] }
 0x56b   :  { %4350 = vmatpush.msrb.mxu2 %v4175_v3  ;;  %4395 = vmatpush.msrb.mxu3 %v9508_v18  ;;  %v4495_v18 = vand.u32 4294901760, %v4494_v33  ;;  %v9741_v49 = vand.u32 4294901760, %v4437_v43  ;;  %v4429_v33 = vld [vmem:[#allocation2 + $0x190] sm:$0xff] }
 0x56c   :  { %4240 = vmatpush.msrb.mxu0 %v9511_v51  ;;  %4293 = vmatpush.msrb.mxu1 %v9539_v54  ;;  %v4500_v51 = vsub.f32 %v9718_v47, %v4499_v57 }
 0x56d   :  { %4354 = vmatpush.msrb.mxu2 %v4181_v1  ;;  %4397 = vmatpush.msrb.mxu3 %v9516_v35  ;;  %v9745_v35 = vsub.f32 %v4438_v23, %v9734_v38  ;;  %v9823_v23 = vand.u32 4294901760, %v4430_v55 }
 0x56e   :  { %4243 = vmatpush.msrb.mxu0 %v9519_v58  ;;  %4295 = vmatpush.msrb.mxu1 %v9548_v25  ;;  %v4436_v58 = vld [vmem:[#allocation2 + $0x1c8] sm:$0xff]  ;;  %v4501_v34 = vand.u32 4294901760, %v4500_v51 }
 0x56f   :  { %4358 = vmatpush.msrb.mxu2 %v4187_v52  ;;  %4399 = vmatpush.msrb.mxu3 %v9529_v2  ;;  %v4506_v2 = vsub.f32 %v9730_v24, %v4505_v62  ;;  %v9755_v3 = vand.u32 4294901760, %v4436_v58  ;;  %v9836_v51 = vsub.f32 %v4430_v55, %v9823_v23 }
 0x570   :  { %4246 = vmatpush.msrb.mxu0 %v9532_v12  ;;  %4297 = vmatpush.msrb.mxu1 %v9556_v63  ;;  %v9753_v12 = vsub.f32 %v4437_v43, %v9741_v49 }
 0x571   :  { %4362 = vmatpush.msrb.mxu2 %v11060_v16  ;;  %4401 = vmatpush.msrb.mxu3 %v9539_v54  ;;  %v4511_v54 = vand.u32 4294901760, %v9745_v35  ;;  %v9762_v1 = vsub.f32 %v4436_v58, %v9755_v3  ;;  %v9838_v58 = vand.u32 4294901760, %v4429_v33 }
 0x572   :  { %4249 = vmatpush.msrb.mxu0 %v9542_v26  ;;  %4299 = vmatpush.msrb.mxu1 %v9569_v59  ;;  %v4435_v26 = vld [vmem:[#allocation2 + $0x1c0] sm:$0xff] }
 0x573   :  { %4366 = vmatpush.msrb.mxu2 %v11061_v50  ;;  %4403 = vmatpush.msrb.mxu3 %v9548_v25  ;;  %v4507_v25 = vand.u32 4294901760, %v4506_v2  ;;  %v9764_v52 = vand.u32 4294901760, %v4435_v26  ;;  %v9811_v50 = vsub.f32 %v4432_v6, %v9799_v27  ;;  %v4428_v2 = vld [vmem:[#allocation2 + $0x188] sm:$0xff] }
 0x574   :  { %4303 = vmatmul.f32.vlgmr.msrb.gmra.mxu1 %v9604_v7  ;;  %4252 = vmatpush.msrb.mxu0 %v9551_v22  ;;  %v4517_v22 = vand.u32 4294901760, %v9753_v12  ;;  %v9804_v7 = vsub.f32 %v4433_v32, %v9792_v21 }
 0x575   :  { %4370 = vmatpush.msrb.mxu2 %v11062_v9  ;;  %4405 = vmatpush.msrb.mxu3 %v9556_v63  ;;  %v4512_v63 = vsub.f32 %v9745_v35, %v4511_v54  ;;  %v9813_v9 = vand.u32 4294901760, %v4431_v46  ;;  %v4547_v53 = vand.u32 4294901760, %v9811_v50 }
 0x576   :  { %4372 = vmatmul.f32.vlgmr.msrb.gmra.mxu2 %v9595_v40  ;;  %4255 = vmatpush.msrb.mxu0 %v9559_v31  ;;  %v4434_v31 = vld [vmem:[#allocation2 + $0x1b8] sm:$0xff]  ;;  %v4541_v39 = vand.u32 4294901760, %v9804_v7 }
 0x577   :  { %4407 = vmatpush.msrb.mxu3 %v9569_v59  ;;  %4588 = vmatpush.msra.mxu2 %v9698_v41  ;;  %v4523_v59 = vand.u32 4294901760, %v9762_v1  ;;  %v9821_v13 = vsub.f32 %v4431_v46, %v9813_v9  ;;  %v4548_v43 = vsub.f32 %v9811_v50, %v4547_v53 }
 0x578   :  { %4409 = vmatmul.f32.vlgmr.msrb.gmra.mxu3 %v9595_v40  ;;  %4258 = vmatpush.msrb.mxu0 %v9572_v4  ;;  %v9777_v4 = vsub.f32 %v4435_v26, %v9764_v52  ;;  %v9779_v40 = vand.u32 4294901760, %v4434_v31 }
 0x579   :  { %4641 = vmatpush.msra.mxu3 %v9695_v44  ;;  %4591 = vmatpush.msra.mxu2 %v9706_v29  ;;  %v4524_v45 = vsub.f32 %v9762_v1, %v4523_v59  ;;  %v4549_v26 = vand.u32 4294901760, %v4548_v43 }
 0x57a   :  { %4261 = vmatpush.msrb.mxu0 %v9580_v28  ;;  %4490 = vmatpush.msra.mxu1 %v4489_v19  ;;  %v4513_v28 = vand.u32 4294901760, %v4512_v63  ;;  %v4529_v10 = vand.u32 4294901760, %v9777_v4  ;;  %v9789_v17 = vsub.f32 %v4434_v31, %v9779_v40  ;;  %v4542_v19 = vsub.f32 %v9804_v7, %v4541_v39 }
 0x57b   :  { %4264 = vmatmul.f32.vlgmr.msrb.gmra.mxu0 %v9598_v30  ;;  %4643 = vmatpush.msra.mxu3 %v9700_v61  ;;  %v4518_v30 = vsub.f32 %v9753_v12, %v4517_v22  ;;  %v4525_v8 = vand.u32 4294901760, %v4524_v45  ;;  %v4559_v63 = vand.u32 4294901760, %v9836_v51  ;;  %v9848_v31 = vsub.f32 %v4429_v33, %v9838_v58 }
 0x57c   :  { %4445 = vmatpush.msra.mxu0 %v9695_v44  ;;  %4594 = vmatpush.msra.mxu2 %v9718_v47  ;;  %v4530_v48 = vsub.f32 %v9777_v4, %v4529_v10  ;;  %v4535_v11 = vand.u32 4294901760, %v9789_v17 }
 0x57d   :  { %4645 = vmatpush.msra.mxu3 %v9708_v36  ;;  %4496 = vmatpush.msra.mxu1 %v4495_v18  ;;  %v4519_v42 = vand.u32 4294901760, %v4518_v30  ;;  %v4553_v18 = vand.u32 4294901760, %v9821_v13  ;;  %v9852_v30 = vand.u32 4294901760, %v4428_v2  ;;  %v4565_v45 = vand.u32 4294901760, %v9848_v31 }
 0x57e   :  { %4447 = vmatpush.msra.mxu0 %v9700_v61  ;;  %4597 = vmatpush.msra.mxu2 %v9730_v24  ;;  %v4531_v20 = vand.u32 4294901760, %v4530_v48  ;;  %v4536_v16 = vsub.f32 %v9789_v17, %v4535_v11 }
 0x57f   :  { %4647 = vmatpush.msra.mxu3 %v9720_v60  ;;  %4502 = vmatpush.msra.mxu1 %v4501_v34  ;;  %v4543_v34 = vand.u32 4294901760, %v4542_v19  ;;  %v4566_v46 = vsub.f32 %v9848_v31, %v4565_v45 }
 0x580   :  { %4449 = vmatpush.msra.mxu0 %v9708_v36  ;;  %4600 = vmatpush.msra.mxu2 %v9745_v35  ;;  %v4537_v5 = vand.u32 4294901760, %v4536_v16 }
 0x581   :  { %4649 = vmatpush.msra.mxu3 %v9734_v38  ;;  %4508 = vmatpush.msra.mxu1 %v4507_v25  ;;  %v4554_v25 = vsub.f32 %v9821_v13, %v4553_v18  ;;  %v4567_v55 = vand.u32 4294901760, %v4566_v46 }
 0x582   :  { %4451 = vmatpush.msra.mxu0 %v9720_v60  ;;  %4603 = vmatpush.msra.mxu2 %v9753_v12 }
 0x583   :  { %4651 = vmatpush.msra.mxu3 %v9741_v49  ;;  %4514 = vmatpush.msra.mxu1 %v4513_v28  ;;  %v4427_v28 = vld [vmem:[#allocation2 + $0x180] sm:$0xff]  ;;  %v4555_v32 = vand.u32 4294901760, %v4554_v25  ;;  %v4796_v25 = vld [vmem:[#allocation5 + $0x1c8] sm:$0xff] }
 0x584   :  { %4453 = vmatpush.msra.mxu0 %v9734_v38  ;;  %4606 = vmatpush.msra.mxu2 %v9762_v1  ;;  %v9859_v6 = vand.u32 4294901760, %v4427_v28 }
 0x585   :  { %4653 = vmatpush.msra.mxu3 %v9755_v3  ;;  %4520 = vmatpush.msra.mxu1 %v4519_v42  ;;  %v4560_v42 = vsub.f32 %v9836_v51, %v4559_v63 }
 0x586   :  { %4455 = vmatpush.msra.mxu0 %v9741_v49  ;;  %4609 = vmatpush.msra.mxu2 %v9777_v4 }
 0x587   :  { %4655 = vmatpush.msra.mxu3 %v9764_v52  ;;  %4526 = vmatpush.msra.mxu1 %v4525_v8  ;;  %v4570_v8 = vsub.f32 %v4428_v2, %v9852_v30  ;;  %v4561_v48 = vand.u32 4294901760, %v4560_v42  ;;  %v3729_v2 = vperm.slane %v9592_v56, 2 }
 0x588   :  { %4457 = vmatpush.msra.mxu0 %v9755_v3  ;;  %4612 = vmatpush.msra.mxu2 %v9789_v17  ;;  %v4418_v17 = vperm.slane %v9592_v56, 4 }
 0x589   :  { %4657 = vmatpush.msra.mxu3 %v9779_v40  ;;  %4532 = vmatpush.msra.mxu1 %v4531_v20  ;;  %v4576_v20 = vsub.f32 %v4427_v28, %v9859_v6  ;;  %v4571_v16 = vand.u32 4294901760, %v4570_v8  ;;  %v9945_v28 = vand.u32 4294901760, %v4796_v25 }
 0x58a   :  { %4459 = vmatpush.msra.mxu0 %v9764_v52  ;;  %4615 = vmatpush.msra.mxu2 %v9804_v7 }
 0x58b   :  { %4659 = vmatpush.msra.mxu3 %v9792_v21  ;;  %4538 = vmatpush.msra.mxu1 %v4537_v5  ;;  %v4577_v5 = vand.u32 4294901760, %v4576_v20  ;;  %v4572_v19 = vsub.f32 %v4570_v8, %v4571_v16 }
 0x58c   :  { %4461 = vmatpush.msra.mxu0 %v9779_v40  ;;  %4618 = vmatpush.msra.mxu2 %v9811_v50 }
 0x58d   :  { %4661 = vmatpush.msra.mxu3 %v9799_v27  ;;  %4544 = vmatpush.msra.mxu1 %v4543_v34  ;;  %v4578_v33 = vsub.f32 %v4576_v20, %v4577_v5  ;;  %v4573_v43 = vand.u32 4294901760, %v4572_v19  ;;  %v9968_v19 = vsub.f32 %v4796_v25, %v9945_v28 }
 0x58e   :  { %4463 = vmatpush.msra.mxu0 %v9792_v21  ;;  %4621 = vmatpush.msra.mxu2 %v9821_v13  ;;  %v4799_v13 = vld [vmem:[#allocation5 + $0x1e0] sm:$0xff] }
 0x58f   :  { %4663 = vmatpush.msra.mxu3 %v9813_v9  ;;  %4550 = vmatpush.msra.mxu1 %v4549_v26  ;;  %v4579_v34 = vand.u32 4294901760, %v4578_v33 }
 0x590   :  { %4465 = vmatpush.msra.mxu0 %v9799_v27  ;;  %4624 = vmatpush.msra.mxu2 %v9836_v51 }
 0x591   :  { %4665 = vmatpush.msra.mxu3 %v9823_v23  ;;  %4556 = vmatpush.msra.mxu1 %v4555_v32 }
 0x592   :  { %4467 = vmatpush.msra.mxu0 %v9813_v9  ;;  %4627 = vmatpush.msra.mxu2 %v9848_v31 }
 0x593   :  { %4667 = vmatpush.msra.mxu3 %v9838_v58  ;;  %4562 = vmatpush.msra.mxu1 %v4561_v48 }
 0x594   :  { %4469 = vmatpush.msra.mxu0 %v9823_v23  ;;  %4630 = vmatpush.msra.mxu2 %v4570_v8  ;;  %v9959_v8 = vld [vmem:[%s11038_s4 + $0x30] sm:$0xff] }
 0x595   :  { %4669 = vmatpush.msra.mxu3 %v9852_v30  ;;  %4568 = vmatpush.msra.mxu1 %v4567_v55 }
 0x596   :  { %4471 = vmatpush.msra.mxu0 %v9838_v58  ;;  %4633 = vmatpush.msra.mxu2 %v4576_v20 }
 0x597   :  { %4671 = vmatpush.msra.mxu3 %v9859_v6  ;;  %4574 = vmatpush.msra.mxu1 %v4573_v43 }
 0x598   :  { %4473 = vmatpush.msra.mxu0 %v9852_v30 }
 0x599   :  { %4580 = vmatpush.msra.mxu1 %v4579_v34 }
 0x59a   :  { %4475 = vmatpush.msra.mxu0 %v9859_v6 }
 0x59b   :  { %4749 = vmatpush.msrb.mxu1 %v9695_v44 }
 0x59c   :  { %4682 = vmatpush.msrb.mxu0 %v4487_v0 }
 0x59d   :  { %4751 = vmatpush.msrb.mxu1 %v9700_v61 }
 0x59e   :  { %4686 = vmatpush.msrb.mxu0 %v4493_v15 }
 0x59f   :  { %4753 = vmatpush.msrb.mxu1 %v9708_v36 }
 0x5a0   :  { %4690 = vmatpush.msrb.mxu0 %v4499_v57 }
 0x5a1   :  { %4755 = vmatpush.msrb.mxu1 %v9720_v60 }
 0x5a2   :  { %4694 = vmatpush.msrb.mxu0 %v4505_v62 }
 0x5a3   :  { %4757 = vmatpush.msrb.mxu1 %v9734_v38 }
 0x5a4   :  { %4698 = vmatpush.msrb.mxu0 %v4511_v54 }
 0x5a5   :  { %4759 = vmatpush.msrb.mxu1 %v9741_v49  ;;  %v6513_v49 = vld [vmem:[%s11038_s4 + $0x28] sm:$0xff] }
 0x5a6   :  { %4702 = vmatpush.msrb.mxu0 %v4517_v22  ;;  %v3730_v12 = vperm.slane %v6513_v49, 2 }
 0x5a7   :  { %4761 = vmatpush.msrb.mxu1 %v9755_v3 }
 0x5a8   :  { %4706 = vmatpush.msrb.mxu0 %v4523_v59 }
 0x5a9   :  { %4763 = vmatpush.msrb.mxu1 %v9764_v52 }
 0x5aa   :  { %4710 = vmatpush.msrb.mxu0 %v4529_v10 }
 0x5ab   :  { %4765 = vmatpush.msrb.mxu1 %v9779_v40 }
 0x5ac   :  { %4714 = vmatpush.msrb.mxu0 %v4535_v11  ;;  %v4801_v11 = vld [vmem:[#allocation5 + $0x1f0] sm:$0xff] }
 0x5ad   :  { %4767 = vmatpush.msrb.mxu1 %v9792_v21  ;;  %v4802_v21 = vld [vmem:[#allocation5 + $0x1f8] sm:$0xff] }
 0x5ae   :  { %4718 = vmatpush.msrb.mxu0 %v4541_v39  ;;  %v9925_v39 = vand.u32 4294901760, %v4801_v11 }
 0x5af   :  { %4769 = vmatpush.msrb.mxu1 %v9799_v27  ;;  %v4800_v27 = vld [vmem:[#allocation5 + $0x1e8] sm:$0xff] }
 0x5b0   :  { %4722 = vmatpush.msrb.mxu0 %v4547_v53  ;;  %v9927_v53 = vand.u32 4294901760, %v4800_v27  ;;  %v9939_v31 = vsub.f32 %v4801_v11, %v9925_v39 }
 0x5b1   :  { %4771 = vmatpush.msrb.mxu1 %v9813_v9  ;;  %v9923_v9 = vand.u32 4294901760, %v4802_v21 }
 0x5b2   :  { %4726 = vmatpush.msrb.mxu0 %v4553_v18  ;;  %v4797_v18 = vld [vmem:[#allocation5 + $0x1d0] sm:$0xff]  ;;  %v4853_v46 = vand.u32 4294901760, %v9939_v31 }
 0x5b3   :  { %4773 = vmatpush.msrb.mxu1 %v9823_v23  ;;  %v4798_v23 = vld [vmem:[#allocation5 + $0x1d8] sm:$0xff]  ;;  %v9933_v56 = vand.u32 4294901760, %v4797_v18  ;;  %4805 = vmatpush.msrb.mxu2 %v9923_v9 }
 0x5b4   :  { %4730 = vmatpush.msrb.mxu0 %v4559_v63  ;;  %v9931_v26 = vand.u32 4294901760, %v4798_v23  ;;  %v4854_v43 = vsub.f32 %v9939_v31, %v4853_v46 }
 0x5b5   :  { %4775 = vmatpush.msrb.mxu1 %v9838_v58  ;;  %v9929_v58 = vand.u32 4294901760, %v4799_v13  ;;  %4807 = vmatpush.msrb.mxu2 %v9925_v39 }
 0x5b6   :  { %4734 = vmatpush.msrb.mxu0 %v4565_v45  ;;  %v9951_v45 = vsub.f32 %v4798_v23, %v9931_v26 }
 0x5b7   :  { %4777 = vmatpush.msrb.mxu1 %v9852_v30  ;;  %v9942_v30 = vsub.f32 %v4800_v27, %v9927_v53  ;;  %v9948_v42 = vsub.f32 %v4799_v13, %v9929_v58  ;;  %4809 = vmatpush.msrb.mxu2 %v9927_v53 }
 0x5b8   :  { %4738 = vmatpush.msrb.mxu0 %v4571_v16 }
 0x5b9   :  { %4779 = vmatpush.msrb.mxu1 %v9859_v6  ;;  %v9954_v6 = vsub.f32 %v4797_v18, %v9933_v56  ;;  %v4859_v20 = vand.u32 4294901760, %v9942_v30  ;;  %v4865_v55 = vand.u32 4294901760, %v9948_v42  ;;  %4811 = vmatpush.msrb.mxu2 %v9929_v58 }
 0x5ba   :  { %4742 = vmatpush.msrb.mxu0 %v4577_v5  ;;  %v4871_v5 = vand.u32 4294901760, %v9951_v45 }
 0x5bb   :  { %v4860_v34 = vsub.f32 %v9942_v30, %v4859_v20  ;;  %4813 = vmatpush.msrb.mxu2 %v9931_v26 }
 0x5bd   :  { %v4861_v49 = vand.u32 4294901760, %v4860_v34  ;;  %4815 = vmatpush.msrb.mxu2 %v9933_v56 }
 0x5bf   :  { %4817 = vmatpush.msrb.mxu2 %v9945_v28 }
 0x5ce   :  { %v3870_v29 = vpop.f32.mrf.mxu1 }
 0x5d6   :  { %v3769_v41 = vpop.f32.mrf.mxu0  ;;  %v3924_v47 = vpop.f32.mrf.mxu2 }
 0x5d7   :  { %v3770_v0 = vadd.f32 %v3769_v41, %v3729_v2  ;;  %v4069_v62 = vpop.f32.mrf.mxu1  ;;  %v4424_v41 = vperm.slane %v9959_v8, 3 }
 0x5d8   :  { %v3963_v24 = vpop.f32.mrf.mxu3 }
 0x5d9   :  { %v3871_v15 = vadd.f32 %v3870_v29, %v3770_v0  ;;  %v4866_v0 = vsub.f32 %v9948_v42, %v4865_v55  ;;  %v4877_v29 = vand.u32 4294901760, %v9954_v6 }
 0x5db   :  { %v3925_v57 = vadd.f32 %v3924_v47, %v3871_v15  ;;  %v4795_v15 = vld [vmem:[#allocation5 + $0x1c0] sm:$0xff]  ;;  %v4794_v47 = vld [vmem:[#allocation5 + $0x1b8] sm:$0xff] }
 0x5dd   :  { %v3964_v44 = vadd.f32 %v3963_v24, %v3925_v57  ;;  %v4793_v57 = vld [vmem:[#allocation5 + $0x1b0] sm:$0xff] }
 0x5df   :  { %v4110_v3 = vpop.f32.mrf.mxu2 }
 0x5e0   :  { %v4032_v61 = vpop.f32.mrf.mxu0  ;;  %v4111_v54 = vadd.f32 %v4110_v3, %v3730_v12  ;;  %v9996_v12 = vand.u32 4294901760, %v4794_v47  ;;  %v9998_v3 = vand.u32 4294901760, %v4793_v57 }
 0x5e1   :  { %v4033_v36 = vadd.f32 %v4032_v61, %v3964_v44  ;;  %v4855_v44 = vand.u32 4294901760, %v4854_v43  ;;  %v4792_v61 = vld [vmem:[#allocation5 + $0x1a8] sm:$0xff] }
 0x5e2   :  { %v4211_v22 = vpop.f32.mrf.mxu3  ;;  %v4788_v43 = vld [vmem:[#allocation5 + $0x188] sm:$0xff] }
 0x5e3   :  { %v4070_v60 = vadd.f32 %v4069_v62, %v4033_v36  ;;  %v4212_v1 = vadd.f32 %v4211_v22, %v4111_v54  ;;  %v4872_v62 = vsub.f32 %v9951_v45, %v4871_v5  ;;  %v4867_v54 = vand.u32 4294901760, %v4866_v0 }
 0x5e4   :  { %v4878_v22 = vsub.f32 %v9954_v6, %v4877_v29 }
 0x5e5   :  { %6533 = vtanh.f32 %v4070_v60  ;;  %v4883_v60 = vand.u32 4294901760, %v9968_v19  ;;  %v4873_v11 = vand.u32 4294901760, %v4872_v62 }
 0x5e6   :  { %v4879_v25 = vand.u32 4294901760, %v4878_v22 }
 0x5e7   :  { %v4884_v27 = vsub.f32 %v9968_v19, %v4883_v60 }
 0x5e9   :  { %v4885_v34 = vand.u32 4294901760, %v4884_v27 }
 0x5eb   :  { %v6534_v38 = vpop.eup %6533 }
 0x5ec   :  { %v4414_v35 = vmul.f32 1.442695, %v6534_v38  ;;  %v4791_v38 = vld [vmem:[#allocation5 + $0x1a0] sm:$0xff] }
 0x5ee   :  { %6535 = vpow2.f32 %v4414_v35  ;;  %v9993_v35 = vand.u32 4294901760, %v4795_v15 }
 0x5f0   :  { %4819 = vmatpush.msrb.mxu2 %v9993_v35 }
 0x5f1   :  { %v4304_v40 = vpop.f32.mrf.mxu1 }
 0x5f2   :  { %4821 = vmatpush.msrb.mxu2 %v9996_v12 }
 0x5f4   :  { %v6536_v59 = vpop.eup %6535  ;;  %4823 = vmatpush.msrb.mxu2 %v9998_v3 }
 0x5f5   :  { %v4416_v50 = vmul.f32 %v6536_v59, %v9001_v14  ;;  %v9936_v14 = vsub.f32 %v4802_v21, %v9923_v9  ;;  %v10009_v59 = vsub.f32 %v4795_v15, %v9993_v35 }
 0x5f7   :  { %v4847_v48 = vand.u32 4294901760, %v9936_v14 }
 0x5f8   :  { %v4265_v52 = vpop.f32.mrf.mxu0 }
 0x5f9   :  { %v4266_v4 = vadd.f32 %v4265_v52, %v4212_v1  ;;  %v4373_v7 = vpop.f32.mrf.mxu2  ;;  %v4848_v33 = vsub.f32 %v9936_v14, %v4847_v48  ;;  %v10006_v1 = vand.u32 4294901760, %v4792_v61  ;;  %v4790_v52 = vld [vmem:[#allocation5 + $0x198] sm:$0xff] }
 0x5fa   :  { %v10032_v23 = vand.u32 4294901760, %v4790_v52 }
 0x5fb   :  { %v4305_v10 = vadd.f32 %v4304_v40, %v4266_v4  ;;  %v4410_v63 = vpop.f32.mrf.mxu3  ;;  %v4849_v24 = vand.u32 4294901760, %v4848_v33  ;;  %v10012_v4 = vsub.f32 %v4794_v47, %v9996_v12  ;;  %v10016_v40 = vsub.f32 %v4793_v57, %v9998_v3  ;;  %4825 = vmatpush.msrb.mxu2 %v10006_v1 }
 0x5fc   :  { %v10030_v13 = vsub.f32 %v4792_v61, %v10006_v1  ;;  %v10054_v0 = vsub.f32 %v4790_v52, %v10032_v23  ;;  %v10065_v61 = vand.u32 4294901760, %v4788_v43 }
 0x5fd   :  { %v4374_v51 = vadd.f32 %v4373_v7, %v4305_v10  ;;  %4850 = vmatpush.msrb.mxu3 %v4849_v24  ;;  %v10018_v10 = vand.u32 4294901760, %v4791_v38  ;;  %v4889_v7 = vand.u32 4294901760, %v10009_v59 }
 0x5fe   :  { %v10074_v22 = vsub.f32 %v4788_v43, %v10065_v61 }
 0x5ff   :  { %v4411_v32 = vadd.f32 %v4410_v63, %v4374_v51  ;;  %4856 = vmatpush.msrb.mxu3 %v4855_v44  ;;  %v4890_v63 = vsub.f32 %v10009_v59, %v4889_v7  ;;  %4827 = vmatpush.msrb.mxu2 %v10018_v10 }
 0x601   :  { %v4417_v16 = vadd.f32 %v4416_v50, %v4411_v32  ;;  %4862 = vmatpush.msrb.mxu3 %v4861_v49  ;;  %v4895_v50 = vand.u32 4294901760, %v10012_v4  ;;  %v4901_v32 = vand.u32 4294901760, %v10016_v40  ;;  %v4891_v57 = vand.u32 4294901760, %v4890_v63  ;;  %4829 = vmatpush.msrb.mxu2 %v10032_v23 }
 0x603   :  { %v4419_v2 = vmul.f32 %v4418_v17, %v4417_v16  ;;  %v4789_v17 = vld [vmem:[#allocation5 + $0x190] sm:$0xff]  ;;  %4868 = vmatpush.msrb.mxu3 %v4867_v54  ;;  %v10045_v16 = vsub.f32 %v4791_v38, %v10018_v10  ;;  %v4902_v24 = vsub.f32 %v10016_v40, %v4901_v32  ;;  %v4919_v54 = vand.u32 4294901760, %v10054_v0 }
 0x604   :  { %v10037_v51 = vand.u32 4294901760, %v4789_v17 }
 0x605   :  { %v9987_v36 = vadd.f32 %v4419_v2, %v9015_v37  ;;  %4874 = vmatpush.msrb.mxu3 %v4873_v11  ;;  %v4896_v2 = vsub.f32 %v10012_v4, %v4895_v50  ;;  %v4913_v44 = vand.u32 4294901760, %v10045_v16  ;;  %v4903_v52 = vand.u32 4294901760, %v4902_v24 }
 0x606   :  { %v10057_v47 = vsub.f32 %v4789_v17, %v10037_v51  ;;  %4831 = vmatpush.msrb.mxu2 %v10037_v51 }
 0x607   :  { %v10001_v37 = vmul.f32 %v4424_v41, %v9987_v36  ;;  %v4907_v41 = vand.u32 4294901760, %v10030_v13  ;;  %4880 = vmatpush.msrb.mxu3 %v4879_v25  ;;  %v4897_v38 = vand.u32 4294901760, %v4896_v2  ;;  %v4914_v17 = vsub.f32 %v10045_v16, %v4913_v44 }
 0x608   :  { %v4925_v11 = vand.u32 4294901760, %v10057_v47  ;;  %v4931_v25 = vand.u32 4294901760, %v10074_v22  ;;  %4833 = vmatpush.msrb.mxu2 %v10065_v61 }
 0x609   :  { %v10021_v21 = vand.u32 4294901760, %v10001_v37  ;;  %4886 = vmatpush.msrb.mxu3 %v4885_v34  ;;  %v4908_v49 = vsub.f32 %v10030_v13, %v4907_v41  ;;  %v4915_v63 = vand.u32 4294901760, %v4914_v17 }
 0x60a   :  { %v4932_v34 = vsub.f32 %v10074_v22, %v4931_v25 }
 0x60b   :  { %4582 = vmatmul.f32.vlgmr.msra.gmra.mxu1 %v10021_v21  ;;  %v4477_v18 = vsub.f32 %v10001_v37, %v10021_v21  ;;  %4892 = vmatpush.msrb.mxu3 %v4891_v57  ;;  %v4909_v27 = vand.u32 4294901760, %v4908_v49 }
 0x60c   :  { %5001 = vmatpush.msra.mxu1 %v9923_v9 }
 0x60d   :  { %4636 = vmatmul.f32.vlgmr.msra.gmra.mxu2 %v4477_v18  ;;  %v4478_v33 = vand.u32 4294901760, %v4477_v18  ;;  %4898 = vmatpush.msrb.mxu3 %v4897_v38 }
 0x60e   :  { %5003 = vmatpush.msra.mxu1 %v9925_v39 }
 0x60f   :  { %4675 = vmatmul.f32.vlgmr.msra.gmra.mxu3 %v4478_v33  ;;  %v4479_v15 = vsub.f32 %v4477_v18, %v4478_v33  ;;  %v4920_v18 = vsub.f32 %v10054_v0, %v4919_v54  ;;  %v4926_v33 = vsub.f32 %v10057_v47, %v4925_v11 }
 0x610   :  { %5005 = vmatpush.msra.mxu1 %v9927_v53  ;;  %4904 = vmatpush.msrb.mxu3 %v4903_v52  ;;  %v5159_v52 = vld [vmem:[#allocation7 + $0x360] sm:$0xff] }
 0x611   :  { %v4480_v62 = vand.u32 4294901760, %v4479_v15  ;;  %v4921_v43 = vand.u32 4294901760, %v4920_v18  ;;  %v4927_v2 = vand.u32 4294901760, %v4926_v33  ;;  %v4933_v15 = vand.u32 4294901760, %v4932_v34  ;;  %v5157_v18 = vld [vmem:[#allocation7 + $0x350] sm:$0xff] }
 0x612   :  { %5007 = vmatpush.msra.mxu1 %v9929_v58  ;;  %4910 = vmatpush.msrb.mxu3 %v4909_v27 }
 0x613   :  { %4481 = vmatmul.f32.vlgmr.msra.gmra.mxu0 %v4480_v62  ;;  %4781 = vmatmul.f32.vlgmr.msrb.gmra.mxu1 %v10021_v21 }
 0x614   :  { %4948 = vmatpush.msra.mxu0 %v9936_v14  ;;  %5009 = vmatpush.msra.mxu1 %v9931_v26  ;;  %v5173_v14 = vld [vmem:[#allocation7 + $0x3d0] sm:$0xff] }
 0x615   :  { %4916 = vmatpush.msrb.mxu3 %v4915_v63 }
 0x616   :  { %4951 = vmatpush.msra.mxu0 %v9939_v31  ;;  %5011 = vmatpush.msra.mxu1 %v9933_v56 }
 0x617   :  { %4922 = vmatpush.msrb.mxu3 %v4921_v43 }
 0x618   :  { %4954 = vmatpush.msra.mxu0 %v9942_v30  ;;  %5013 = vmatpush.msra.mxu1 %v9945_v28 }
 0x619   :  { %4928 = vmatpush.msrb.mxu3 %v4927_v2 }
 0x61a   :  { %4957 = vmatpush.msra.mxu0 %v9948_v42  ;;  %5015 = vmatpush.msra.mxu1 %v9993_v35  ;;  %v5171_v42 = vld [vmem:[#allocation7 + $0x3c0] sm:$0xff] }
 0x61b   :  { %4744 = vmatmul.f32.vlgmr.msrb.gmra.mxu0 %v10021_v21  ;;  %4934 = vmatpush.msrb.mxu3 %v4933_v15  ;;  %v4787_v21 = vld [vmem:[#allocation5 + $0x180] sm:$0xff]  ;;  %v10235_v15 = vand.u32 4294901760, %v5159_v52 }
 0x61c   :  { %4960 = vmatpush.msra.mxu0 %v9951_v45  ;;  %5017 = vmatpush.msra.mxu1 %v9996_v12  ;;  %v4834_v57 = vand.u32 4294901760, %v4787_v21  ;;  %v5169_v45 = vld [vmem:[#allocation7 + $0x3b0] sm:$0xff] }
 0x61e   :  { %4963 = vmatpush.msra.mxu0 %v9954_v6  ;;  %5019 = vmatpush.msra.mxu1 %v9998_v3  ;;  %v4936_v24 = vsub.f32 %v4787_v21, %v4834_v57  ;;  %v5167_v6 = vld [vmem:[#allocation7 + $0x3a0] sm:$0xff] }
 0x61f   :  { %4835 = vmatpush.msrb.mxu2 %v4834_v57  ;;  %v5155_v21 = vld [vmem:[#allocation7 + $0x340] sm:$0xff] }
 0x620   :  { %4966 = vmatpush.msra.mxu0 %v9968_v19  ;;  %5021 = vmatpush.msra.mxu1 %v10006_v1  ;;  %v4937_v62 = vand.u32 4294901760, %v4936_v24 }
 0x621   :  { %5042 = vmatpush.msra.mxu2 %v4847_v48 }
 0x622   :  { %4969 = vmatpush.msra.mxu0 %v10009_v59  ;;  %5023 = vmatpush.msra.mxu1 %v10018_v10  ;;  %v4938_v38 = vsub.f32 %v4936_v24, %v4937_v62 }
 0x623   :  { %5046 = vmatpush.msra.mxu2 %v4853_v46  ;;  %v10175_v46 = vand.u32 4294901760, %v5171_v42 }
 0x624   :  { %4972 = vmatpush.msra.mxu0 %v10012_v4  ;;  %5025 = vmatpush.msra.mxu1 %v10032_v23  ;;  %v4939_v49 = vand.u32 4294901760, %v4938_v38  ;;  %v10240_v38 = vand.u32 4294901760, %v5157_v18 }
 0x625   :  { %5050 = vmatpush.msra.mxu2 %v4859_v20  ;;  %v10177_v20 = vand.u32 4294901760, %v5169_v45 }
 0x626   :  { %4975 = vmatpush.msra.mxu0 %v10016_v40  ;;  %5027 = vmatpush.msra.mxu1 %v10037_v51 }
 0x627   :  { %5054 = vmatpush.msra.mxu2 %v4865_v55  ;;  %4940 = vmatpush.msrb.mxu3 %v4939_v49  ;;  %v5165_v55 = vld [vmem:[#allocation7 + $0x390] sm:$0xff] }
 0x628   :  { %4978 = vmatpush.msra.mxu0 %v10030_v13  ;;  %5029 = vmatpush.msra.mxu1 %v10065_v61 }
 0x629   :  { %5109 = vmatpush.msra.mxu3 %v9923_v9  ;;  %5058 = vmatpush.msra.mxu2 %v4871_v5  ;;  %v4443_v9 = vperm.slane %v9959_v8, 0  ;;  %v10179_v8 = vand.u32 4294901760, %v5167_v6 }
 0x62a   :  { %4981 = vmatpush.msra.mxu0 %v10045_v16  ;;  %5031 = vmatpush.msra.mxu1 %v4834_v57 }
 0x62b   :  { %5111 = vmatpush.msra.mxu3 %v9925_v39  ;;  %5062 = vmatpush.msra.mxu2 %v4877_v29  ;;  %v10200_v59 = vsub.f32 %v5167_v6, %v10179_v8 }
 0x62c   :  { %4984 = vmatpush.msra.mxu0 %v10054_v0 }
 0x62d   :  { %5113 = vmatpush.msra.mxu3 %v9927_v53  ;;  %5066 = vmatpush.msra.mxu2 %v4883_v60 }
 0x62e   :  { %4987 = vmatpush.msra.mxu0 %v10057_v47 }
 0x62f   :  { %5115 = vmatpush.msra.mxu3 %v9929_v58  ;;  %5070 = vmatpush.msra.mxu2 %v4889_v7 }
 0x630   :  { %4990 = vmatpush.msra.mxu0 %v10074_v22  ;;  %v5161_v22 = vld [vmem:[#allocation7 + $0x370] sm:$0xff] }
 0x631   :  { %5117 = vmatpush.msra.mxu3 %v9931_v26  ;;  %5074 = vmatpush.msra.mxu2 %v4895_v50  ;;  %v5177_v26 = vld [vmem:[#allocation7 + $0x3f0] sm:$0xff]  ;;  %v10233_v2 = vand.u32 4294901760, %v5161_v22 }
 0x632   :  { %4993 = vmatpush.msra.mxu0 %v4936_v24  ;;  %v10169_v31 = vand.u32 4294901760, %v5177_v26 }
 0x633   :  { %5119 = vmatpush.msra.mxu3 %v9933_v56  ;;  %5078 = vmatpush.msra.mxu2 %v4901_v32  ;;  %v5175_v56 = vld [vmem:[#allocation7 + $0x3e0] sm:$0xff] }
 0x634   :  { %v10171_v30 = vand.u32 4294901760, %v5175_v56  ;;  %v10182_v19 = vsub.f32 %v5177_v26, %v10169_v31  ;;  %5182 = vmatpush.msrb.mxu0 %v10169_v31 }
 0x635   :  { %5121 = vmatpush.msra.mxu3 %v9945_v28  ;;  %5082 = vmatpush.msra.mxu2 %v4907_v41  ;;  %v10173_v28 = vand.u32 4294901760, %v5173_v14 }
 0x636   :  { %v10185_v29 = vsub.f32 %v5175_v56, %v10171_v30  ;;  %v5224_v40 = vand.u32 4294901760, %v10182_v19  ;;  %5184 = vmatpush.msrb.mxu0 %v10171_v30 }
 0x637   :  { %5123 = vmatpush.msra.mxu3 %v9993_v35  ;;  %5086 = vmatpush.msra.mxu2 %v4913_v44  ;;  %v10188_v60 = vsub.f32 %v5173_v14, %v10173_v28  ;;  %v10191_v35 = vand.u32 4294901760, %v5165_v55 }
 0x638   :  { %v5225_v16 = vsub.f32 %v10182_v19, %v5224_v40  ;;  %5186 = vmatpush.msrb.mxu0 %v10173_v28 }
 0x639   :  { %5125 = vmatpush.msra.mxu3 %v9996_v12  ;;  %5090 = vmatpush.msra.mxu2 %v4919_v54  ;;  %v5236_v7 = vand.u32 4294901760, %v10188_v60  ;;  %v5163_v54 = vld [vmem:[#allocation7 + $0x380] sm:$0xff] }
 0x63a   :  { %5188 = vmatpush.msrb.mxu0 %v10175_v46  ;;  %v10230_v34 = vand.u32 4294901760, %v5163_v54 }
 0x63b   :  { %5127 = vmatpush.msra.mxu3 %v9998_v3  ;;  %5094 = vmatpush.msra.mxu2 %v4925_v11  ;;  %v10194_v3 = vsub.f32 %v5171_v42, %v10175_v46  ;;  %v5237_v0 = vsub.f32 %v10188_v60, %v5236_v7  ;;  %v5226_v11 = vand.u32 4294901760, %v5225_v16 }
 0x63c   :  { %5190 = vmatpush.msrb.mxu0 %v10177_v20  ;;  %v10243_v49 = vsub.f32 %v5163_v54, %v10230_v34 }
 0x63d   :  { %5129 = vmatpush.msra.mxu3 %v10006_v1  ;;  %5098 = vmatpush.msra.mxu2 %v4931_v25  ;;  %v10197_v1 = vsub.f32 %v5169_v45, %v10177_v20  ;;  %v5242_v13 = vand.u32 4294901760, %v10194_v3  ;;  %v5238_v43 = vand.u32 4294901760, %v5237_v0  ;;  %v5151_v45 = vld [vmem:[#allocation7 + $0x320] sm:$0xff]  ;;  %v5149_v0 = vld [vmem:[#allocation7 + $0x310] sm:$0xff] }
 0x63e   :  { %5227 = vmatpush.msrb.mxu1 %v5226_v11  ;;  %5192 = vmatpush.msrb.mxu0 %v10179_v8  ;;  %v5266_v42 = vand.u32 4294901760, %v10243_v49 }
 0x63f   :  { %5131 = vmatpush.msra.mxu3 %v10018_v10  ;;  %5102 = vmatpush.msra.mxu2 %v4937_v62  ;;  %v5230_v10 = vand.u32 4294901760, %v10185_v29  ;;  %v5243_v44 = vsub.f32 %v10194_v3, %v5242_v13 }
 0x640   :  { %5194 = vmatpush.msrb.mxu0 %v10191_v35  ;;  %v5267_v16 = vsub.f32 %v10243_v49, %v5266_v42 }
 0x641   :  { %5133 = vmatpush.msra.mxu3 %v10032_v23  ;;  %v5248_v23 = vand.u32 4294901760, %v10197_v1  ;;  %v5231_v41 = vsub.f32 %v10185_v29, %v5230_v10  ;;  %v5244_v24 = vand.u32 4294901760, %v5243_v44  ;;  %v5147_v44 = vld [vmem:[#allocation7 + $0x300] sm:$0xff] }
 0x642   :  { %5196 = vmatpush.msrb.mxu0 %v10230_v34 }
 0x643   :  { %5135 = vmatpush.msra.mxu3 %v10037_v51  ;;  %v10209_v51 = vsub.f32 %v5165_v55, %v10191_v35  ;;  %v5232_v27 = vand.u32 4294901760, %v5231_v41  ;;  %v5249_v63 = vsub.f32 %v10197_v1, %v5248_v23  ;;  %v10265_v55 = vsub.f32 %v5157_v18, %v10240_v38 }
 0x644   :  { %v10277_v41 = vand.u32 4294901760, %v5151_v45  ;;  %v10293_v18 = vand.u32 4294901760, %v5149_v0  ;;  %5198 = vmatpush.msrb.mxu0 %v10233_v2 }
 0x645   :  { %5137 = vmatpush.msra.mxu3 %v10065_v61  ;;  %v5254_v61 = vand.u32 4294901760, %v10200_v59  ;;  %v5260_v33 = vand.u32 4294901760, %v10209_v51  ;;  %5233 = vmatpush.msrb.mxu1 %v5232_v27  ;;  %v5250_v56 = vand.u32 4294901760, %v5249_v63  ;;  %v5268_v63 = vand.u32 4294901760, %v5267_v16 }
 0x646   :  { %5200 = vmatpush.msrb.mxu0 %v10235_v15 }
 0x647   :  { %5139 = vmatpush.msra.mxu3 %v4834_v57  ;;  %v5255_v62 = vsub.f32 %v10200_v59, %v5254_v61  ;;  %5239 = vmatpush.msrb.mxu1 %v5238_v43  ;;  %v5261_v14 = vsub.f32 %v10209_v51, %v5260_v33  ;;  %v10297_v43 = vsub.f32 %v5151_v45, %v10277_v41 }
 0x648   :  { %5202 = vmatpush.msrb.mxu0 %v10240_v38 }
 0x649   :  { %5245 = vmatpush.msrb.mxu1 %v5244_v24  ;;  %v5302_v45 = vand.u32 4294901760, %v10297_v43 }
 0x64b   :  { %5251 = vmatpush.msrb.mxu1 %v5250_v56 }
 0x688   :  { %v4583_v39 = vpop.f32.mrf.mxu1 }
 0x690   :  { %v4482_v53 = vpop.f32.mrf.mxu0  ;;  %v4637_v5 = vpop.f32.mrf.mxu2 }
 0x691   :  { %v4483_v58 = vadd.f32 %v4482_v53, %v4443_v9  ;;  %v4782_v17 = vpop.f32.mrf.mxu1  ;;  %v10246_v9 = vsub.f32 %v5161_v22, %v10233_v2  ;;  %v10252_v53 = vand.u32 4294901760, %v5155_v21 }
 0x692   :  { %v4676_v4 = vpop.f32.mrf.mxu3 }
 0x693   :  { %v4584_v48 = vadd.f32 %v4583_v39, %v4483_v58  ;;  %v10250_v39 = vsub.f32 %v5159_v52, %v10235_v15  ;;  %v5153_v58 = vld [vmem:[#allocation7 + $0x330] sm:$0xff]  ;;  %v5284_v52 = vand.u32 4294901760, %v10265_v55  ;;  %5204 = vmatpush.msrb.mxu0 %v10252_v53 }
 0x695   :  { %v4638_v12 = vadd.f32 %v4637_v5, %v4584_v48  ;;  %v5272_v48 = vand.u32 4294901760, %v10246_v9  ;;  %v10267_v5 = vand.u32 4294901760, %v5153_v58  ;;  %v5285_v24 = vsub.f32 %v10265_v55, %v5284_v52 }
 0x697   :  { %v4677_v50 = vadd.f32 %v4676_v4, %v4638_v12  ;;  %v5256_v12 = vand.u32 4294901760, %v5255_v62  ;;  %v5278_v4 = vand.u32 4294901760, %v10250_v39  ;;  %v5273_v22 = vsub.f32 %v10246_v9, %v5272_v48  ;;  %5206 = vmatpush.msrb.mxu0 %v10267_v5 }
 0x698   :  { %v4745_v32 = vpop.f32.mrf.mxu0 }
 0x699   :  { %v4746_v47 = vadd.f32 %v4745_v32, %v4677_v50  ;;  %v10272_v50 = vsub.f32 %v5155_v21, %v10252_v53  ;;  %5257 = vmatpush.msrb.mxu1 %v5256_v12  ;;  %v5279_v11 = vsub.f32 %v10250_v39, %v5278_v4  ;;  %v10299_v21 = vand.u32 4294901760, %v5147_v44  ;;  %5208 = vmatpush.msrb.mxu0 %v10277_v41 }
 0x69a   :  { %v5286_v12 = vand.u32 4294901760, %v5285_v24 }
 0x69b   :  { %v4783_v25 = vadd.f32 %v4782_v17, %v4746_v47  ;;  %v5262_v47 = vand.u32 4294901760, %v5261_v14  ;;  %v10286_v17 = vsub.f32 %v5153_v58, %v10267_v5  ;;  %v5290_v27 = vand.u32 4294901760, %v10272_v50  ;;  %5210 = vmatpush.msrb.mxu0 %v10293_v18 }
 0x69c   :  { %v10308_v58 = vsub.f32 %v5149_v0, %v10293_v18  ;;  %v5280_v56 = vand.u32 4294901760, %v5279_v11 }
 0x69d   :  { %v4785_v57 = vmax.f32 %v4783_v25, 0.0  ;;  %5263 = vmatpush.msrb.mxu1 %v5262_v47  ;;  %v5296_v62 = vand.u32 4294901760, %v10286_v17  ;;  %v5291_v14 = vsub.f32 %v10272_v50, %v5290_v27  ;;  %v5303_v47 = vsub.f32 %v10297_v43, %v5302_v45  ;;  %5212 = vmatpush.msrb.mxu0 %v10299_v21 }
 0x69e   :  { %v5308_v16 = vand.u32 4294901760, %v10308_v58 }
 0x69f   :  { %v10254_v26 = vand.u32 4294901760, %v4785_v57  ;;  %5269 = vmatpush.msrb.mxu1 %v5268_v63  ;;  %v5292_v0 = vand.u32 4294901760, %v5291_v14  ;;  %v5304_v11 = vand.u32 4294901760, %v5303_v47 }
 0x6a1   :  { %v4837_v6 = vsub.f32 %v4785_v57, %v10254_v26  ;;  %4942 = vmatmul.f32.vlgmr.msrb.gmra.mxu3 %v10254_v26  ;;  %v5274_v57 = vand.u32 4294901760, %v5273_v22  ;;  %v5309_v22 = vsub.f32 %v10308_v58, %v5308_v16 }
 0x6a2   :  { %5378 = vmatpush.msrb.mxu3 %v10169_v31 }
 0x6a3   :  { %4996 = vmatmul.f32.vlgmr.msra.gmra.mxu0 %v4837_v6  ;;  %v4838_v32 = vand.u32 4294901760, %v4837_v6  ;;  %5275 = vmatpush.msrb.mxu1 %v5274_v57 }
 0x6a4   :  { %5380 = vmatpush.msrb.mxu3 %v10171_v30  ;;  %5419 = vmatpush.msra.mxu0 %v5224_v40 }
 0x6a5   :  { %5035 = vmatmul.f32.vlgmr.msra.gmra.mxu1 %v4838_v32  ;;  %v4839_v54 = vsub.f32 %v4837_v6, %v4838_v32  ;;  %v10318_v6 = vsub.f32 %v5147_v44, %v10299_v21  ;;  %v5297_v32 = vsub.f32 %v10286_v17, %v5296_v62 }
 0x6a6   :  { %5382 = vmatpush.msrb.mxu3 %v10173_v28  ;;  %5281 = vmatpush.msrb.mxu1 %v5280_v56 }
 0x6a7   :  { %v4840_v25 = vand.u32 4294901760, %v4839_v54  ;;  %v5314_v44 = vand.u32 4294901760, %v10318_v6  ;;  %v5298_v54 = vand.u32 4294901760, %v5297_v32  ;;  %5423 = vmatpush.msra.mxu0 %v5230_v10  ;;  %v5170_v10 = vld [vmem:[#allocation7 + $0x3b8] sm:$0xff] }
 0x6a8   :  { %5384 = vmatpush.msrb.mxu3 %v10175_v46  ;;  %5287 = vmatpush.msrb.mxu1 %v5286_v12  ;;  %v5158_v12 = vld [vmem:[#allocation7 + $0x358] sm:$0xff] }
 0x6a9   :  { %4841 = vmatmul.f32.vlgmr.msrb.gmra.mxu2 %v4840_v25  ;;  %5141 = vmatmul.f32.vlgmr.msra.gmra.mxu3 %v10254_v26  ;;  %v5315_v25 = vsub.f32 %v10318_v6, %v5314_v44 }
 0x6aa   :  { %5325 = vmatpush.msrb.mxu2 %v10182_v19  ;;  %5386 = vmatpush.msrb.mxu3 %v10177_v20 }
 0x6ab   :  { %5293 = vmatpush.msrb.mxu1 %v5292_v0  ;;  %v5316_v63 = vand.u32 4294901760, %v5315_v25  ;;  %5427 = vmatpush.msra.mxu0 %v5236_v7  ;;  %v10502_v0 = vand.u32 4294901760, %v5158_v12 }
 0x6ac   :  { %5328 = vmatpush.msrb.mxu2 %v10185_v29  ;;  %5388 = vmatpush.msrb.mxu3 %v10179_v8 }
 0x6ad   :  { %5299 = vmatpush.msrb.mxu1 %v5298_v54  ;;  %5431 = vmatpush.msra.mxu0 %v5242_v13  ;;  %v5156_v54 = vld [vmem:[#allocation7 + $0x348] sm:$0xff] }
 0x6ae   :  { %5331 = vmatpush.msrb.mxu2 %v10188_v60  ;;  %5390 = vmatpush.msrb.mxu3 %v10191_v35  ;;  %v10515_v25 = vand.u32 4294901760, %v5156_v54 }
 0x6af   :  { %5305 = vmatpush.msrb.mxu1 %v5304_v11  ;;  %5435 = vmatpush.msra.mxu0 %v5248_v23 }
 0x6b0   :  { %5334 = vmatpush.msrb.mxu2 %v10194_v3  ;;  %5392 = vmatpush.msrb.mxu3 %v10230_v34 }
 0x6b1   :  { %5104 = vmatmul.f32.vlgmr.msra.gmra.mxu2 %v10254_v26  ;;  %v5310_v26 = vand.u32 4294901760, %v5309_v22  ;;  %5439 = vmatpush.msra.mxu0 %v5254_v61 }
 0x6b2   :  { %5337 = vmatpush.msrb.mxu2 %v10197_v1  ;;  %5394 = vmatpush.msrb.mxu3 %v10233_v2 }
 0x6b3   :  { %5311 = vmatpush.msrb.mxu1 %v5310_v26  ;;  %5443 = vmatpush.msra.mxu0 %v5260_v33  ;;  %v5168_v33 = vld [vmem:[#allocation7 + $0x3a8] sm:$0xff]  ;;  %v10518_v26 = vsub.f32 %v5158_v12, %v10502_v0 }
 0x6b4   :  { %5340 = vmatpush.msrb.mxu2 %v10200_v59  ;;  %5396 = vmatpush.msrb.mxu3 %v10235_v15 }
 0x6b5   :  { %5317 = vmatpush.msrb.mxu1 %v5316_v63  ;;  %5447 = vmatpush.msra.mxu0 %v5266_v42 }
 0x6b6   :  { %5343 = vmatpush.msrb.mxu2 %v10209_v51  ;;  %5398 = vmatpush.msrb.mxu3 %v10240_v38  ;;  %v10445_v51 = vand.u32 4294901760, %v5170_v10 }
 0x6b7   :  { %5486 = vmatpush.msra.mxu1 %v10169_v31  ;;  %5451 = vmatpush.msra.mxu0 %v5272_v48  ;;  %v5178_v31 = vld [vmem:[#allocation7 + $0x3f8] sm:$0xff] }
 0x6b8   :  { %5346 = vmatpush.msrb.mxu2 %v10243_v49  ;;  %5400 = vmatpush.msrb.mxu3 %v10252_v53 }
 0x6b9   :  { %5488 = vmatpush.msra.mxu1 %v10171_v30  ;;  %5455 = vmatpush.msra.mxu0 %v5278_v4  ;;  %v10415_v30 = vand.u32 4294901760, %v5178_v31 }
 0x6ba   :  { %5349 = vmatpush.msrb.mxu2 %v10246_v9  ;;  %5402 = vmatpush.msrb.mxu3 %v10267_v5  ;;  %v5166_v9 = vld [vmem:[#allocation7 + $0x398] sm:$0xff] }
 0x6bb   :  { %5490 = vmatpush.msra.mxu1 %v10173_v28  ;;  %5459 = vmatpush.msra.mxu0 %v5284_v52  ;;  %v5176_v28 = vld [vmem:[#allocation7 + $0x3e8] sm:$0xff]  ;;  %v10462_v42 = vand.u32 4294901760, %v5166_v9 }
 0x6bc   :  { %5352 = vmatpush.msrb.mxu2 %v10250_v39  ;;  %5404 = vmatpush.msrb.mxu3 %v10277_v41 }
 0x6bd   :  { %5492 = vmatpush.msra.mxu1 %v10175_v46  ;;  %5463 = vmatpush.msra.mxu0 %v5290_v27  ;;  %v10419_v46 = vsub.f32 %v5178_v31, %v10415_v30  ;;  %v10478_v52 = vsub.f32 %v5166_v9, %v10462_v42  ;;  %v5162_v27 = vld [vmem:[#allocation7 + $0x378] sm:$0xff] }
 0x6be   :  { %5355 = vmatpush.msrb.mxu2 %v10265_v55  ;;  %5406 = vmatpush.msrb.mxu3 %v10293_v18  ;;  %v10485_v57 = vand.u32 4294901760, %v5162_v27  ;;  %v5154_v31 = vld [vmem:[#allocation7 + $0x338] sm:$0xff] }
 0x6bf   :  { %5494 = vmatpush.msra.mxu1 %v10177_v20  ;;  %5467 = vmatpush.msra.mxu0 %v5296_v62  ;;  %v10421_v20 = vand.u32 4294901760, %v5176_v28  ;;  %v5565_v19 = vand.u32 4294901760, %v10419_v46  ;;  %v5160_v62 = vld [vmem:[#allocation7 + $0x368] sm:$0xff] }
 0x6c0   :  { %5358 = vmatpush.msrb.mxu2 %v10272_v50  ;;  %5408 = vmatpush.msrb.mxu3 %v10299_v21  ;;  %v10494_v14 = vand.u32 4294901760, %v5160_v62 }
 0x6c1   :  { %5496 = vmatpush.msra.mxu1 %v10179_v8  ;;  %5471 = vmatpush.msra.mxu0 %v5302_v45  ;;  %v5174_v8 = vld [vmem:[#allocation7 + $0x3d8] sm:$0xff]  ;;  %v10428_v60 = vsub.f32 %v5176_v28, %v10421_v20  ;;  %v5566_v3 = vsub.f32 %v10419_v46, %v5565_v19  ;;  %v10497_v45 = vsub.f32 %v5162_v27, %v10485_v57 }
 0x6c2   :  { %5361 = vmatpush.msrb.mxu2 %v10286_v17  ;;  %v10425_v29 = vand.u32 4294901760, %v5174_v8  ;;  %v10505_v47 = vsub.f32 %v5160_v62, %v10494_v14 }
 0x6c3   :  { %5498 = vmatpush.msra.mxu1 %v10191_v35  ;;  %5475 = vmatpush.msra.mxu0 %v5308_v16  ;;  %v5172_v35 = vld [vmem:[#allocation7 + $0x3c8] sm:$0xff]  ;;  %v5571_v1 = vand.u32 4294901760, %v10428_v60  ;;  %v5567_v7 = vand.u32 4294901760, %v5566_v3  ;;  %v5613_v16 = vand.u32 4294901760, %v10497_v45  ;;  %v10525_v3 = vand.u32 4294901760, %v5154_v31 }
 0x6c4   :  { %5364 = vmatpush.msrb.mxu2 %v10297_v43  ;;  %v10435_v59 = vand.u32 4294901760, %v5172_v35  ;;  %v10438_v40 = vsub.f32 %v5174_v8, %v10425_v29  ;;  %v5619_v11 = vand.u32 4294901760, %v10505_v47 }
 0x6c5   :  { %5500 = vmatpush.msra.mxu1 %v10230_v34  ;;  %5479 = vmatpush.msra.mxu0 %v5314_v44  ;;  %v5572_v13 = vsub.f32 %v10428_v60, %v5571_v1  ;;  %v5614_v22 = vsub.f32 %v10497_v45, %v5613_v16 }
 0x6c6   :  { %5367 = vmatpush.msrb.mxu2 %v10308_v58  ;;  %v5577_v23 = vand.u32 4294901760, %v10438_v40  ;;  %v10448_v61 = vsub.f32 %v5172_v35, %v10435_v59  ;;  %5568 = vmatpush.msra.mxu3 %v5567_v7  ;;  %v5620_v8 = vsub.f32 %v10505_v47, %v5619_v11  ;;  %v5625_v35 = vand.u32 4294901760, %v10518_v26  ;;  %v5152_v7 = vld [vmem:[#allocation7 + $0x328] sm:$0xff] }
 0x6c7   :  { %5502 = vmatpush.msra.mxu1 %v10233_v2  ;;  %v5573_v34 = vand.u32 4294901760, %v5572_v13  ;;  %v5615_v28 = vand.u32 4294901760, %v5614_v22 }
 0x6c8   :  { %5370 = vmatpush.msrb.mxu2 %v10318_v6  ;;  %v5578_v2 = vsub.f32 %v10438_v40, %v5577_v23  ;;  %v5583_v49 = vand.u32 4294901760, %v10448_v61  ;;  %v5621_v13 = vand.u32 4294901760, %v5620_v8 }
 0x6c9   :  { %5504 = vmatpush.msra.mxu1 %v10235_v15  ;;  %v10454_v15 = vand.u32 4294901760, %v5168_v33  ;;  %5574 = vmatpush.msra.mxu3 %v5573_v34  ;;  %v10534_v34 = vand.u32 4294901760, %v5152_v7 }
 0x6ca   :  { %5523 = vmatpush.msra.mxu2 %v10415_v30  ;;  %v5579_v39 = vand.u32 4294901760, %v5578_v2  ;;  %v5584_v55 = vsub.f32 %v10448_v61, %v5583_v49  ;;  %v10537_v2 = vsub.f32 %v5154_v31, %v10525_v3 }
 0x6cb   :  { %5506 = vmatpush.msra.mxu1 %v10240_v38  ;;  %v10457_v38 = vsub.f32 %v5170_v10, %v10445_v51  ;;  %v10465_v48 = vsub.f32 %v5168_v33, %v10454_v15  ;;  %v10528_v10 = vsub.f32 %v5156_v54, %v10515_v25  ;;  %v5626_v33 = vsub.f32 %v10518_v26, %v5625_v35 }
 0x6cc   :  { %5525 = vmatpush.msra.mxu2 %v10421_v20  ;;  %5580 = vmatpush.msra.mxu3 %v5579_v39  ;;  %v5585_v17 = vand.u32 4294901760, %v5584_v55  ;;  %v5150_v39 = vld [vmem:[#allocation7 + $0x318] sm:$0xff] }
 0x6cd   :  { %5508 = vmatpush.msra.mxu1 %v10252_v53  ;;  %v5589_v53 = vand.u32 4294901760, %v10457_v38  ;;  %v5595_v50 = vand.u32 4294901760, %v10465_v48  ;;  %v5631_v9 = vand.u32 4294901760, %v10528_v10  ;;  %v5627_v55 = vand.u32 4294901760, %v5626_v33  ;;  %v10578_v33 = vld [vmem:[%s11038_s4 + $0x30] sm:$0xff] }
 0x6ce   :  { %5527 = vmatpush.msra.mxu2 %v10425_v29  ;;  %5586 = vmatpush.msra.mxu3 %v5585_v17  ;;  %v10545_v17 = vsub.f32 %v5152_v7, %v10534_v34 }
 0x6cf   :  { %5510 = vmatpush.msra.mxu1 %v10267_v5  ;;  %v5164_v5 = vld [vmem:[#allocation7 + $0x388] sm:$0xff]  ;;  %v5590_v4 = vsub.f32 %v10457_v38, %v5589_v53  ;;  %v5596_v43 = vsub.f32 %v10465_v48, %v5595_v50  ;;  %v5632_v27 = vsub.f32 %v10528_v10, %v5631_v9 }
 0x6d0   :  { %5529 = vmatpush.msra.mxu2 %v10435_v59  ;;  %v11053_v62 = vand.u32 4294901760, %v10545_v17 }
 0x6d1   :  { %5512 = vmatpush.msra.mxu1 %v10277_v41  ;;  %v10475_v41 = vand.u32 4294901760, %v5164_v5  ;;  %v5597_v58 = vand.u32 4294901760, %v5596_v43  ;;  %v5633_v12 = vand.u32 4294901760, %v5632_v27 }
 0x6d2   :  { %5531 = vmatpush.msra.mxu2 %v10445_v51 }
 0x6d3   :  { %5514 = vmatpush.msra.mxu1 %v10293_v18  ;;  %v5591_v18 = vand.u32 4294901760, %v5590_v4  ;;  %v10488_v24 = vsub.f32 %v5164_v5, %v10475_v41  ;;  %v5637_v5 = vand.u32 4294901760, %v10537_v2  ;;  %v10542_v4 = vand.u32 4294901760, %v5150_v39 }
 0x6d4   :  { %5533 = vmatpush.msra.mxu2 %v10454_v15 }
 0x6d5   :  { %5516 = vmatpush.msra.mxu1 %v10299_v21  ;;  %v5601_v21 = vand.u32 4294901760, %v10478_v52  ;;  %5592 = vmatpush.msra.mxu3 %v5591_v18  ;;  %v5607_v6 = vand.u32 4294901760, %v10488_v24  ;;  %v5148_v18 = vld [vmem:[#allocation7 + $0x308] sm:$0xff]  ;;  %v5638_v43 = vsub.f32 %v10537_v2, %v5637_v5 }
 0x6d6   :  { %5535 = vmatpush.msra.mxu2 %v10462_v42 }
 0x6d7   :  { %v5602_v56 = vsub.f32 %v10478_v52, %v5601_v21  ;;  %5598 = vmatpush.msra.mxu3 %v5597_v58  ;;  %v5608_v44 = vsub.f32 %v10488_v24, %v5607_v6  ;;  %v10555_v58 = vand.u32 4294901760, %v5148_v18 }
 0x6d8   :  { %5537 = vmatpush.msra.mxu2 %v10475_v41 }
 0x6d9   :  { %v5603_v32 = vand.u32 4294901760, %v5602_v56  ;;  %v5609_v63 = vand.u32 4294901760, %v5608_v44  ;;  %v10558_v56 = vsub.f32 %v5150_v39, %v10542_v4  ;;  %v5644_v44 = vsub.f32 %v10545_v17, %v11053_v62 }
 0x6da   :  { %5539 = vmatpush.msra.mxu2 %v10485_v57  ;;  %v10566_v22 = vsub.f32 %v5148_v18, %v10555_v58  ;;  %v4803_v39 = vperm.slane %v10578_v33, 1 }
 0x6db   :  { %5604 = vmatpush.msra.mxu3 %v5603_v32  ;;  %v5639_v32 = vand.u32 4294901760, %v5638_v43  ;;  %v11052_v54 = vand.u32 4294901760, %v10558_v56 }
 0x6dc   :  { %5541 = vmatpush.msra.mxu2 %v10494_v14 }
 0x6dd   :  { %5610 = vmatpush.msra.mxu3 %v5609_v63  ;;  %v5645_v63 = vand.u32 4294901760, %v5644_v44  ;;  %v5650_v31 = vsub.f32 %v10558_v56, %v11052_v54 }
 0x6de   :  { %5543 = vmatpush.msra.mxu2 %v10502_v0 }
 0x6df   :  { %5616 = vmatpush.msra.mxu3 %v5615_v28  ;;  %v11051_v28 = vand.u32 4294901760, %v10566_v22  ;;  %v5651_v8 = vand.u32 4294901760, %v5650_v31 }
 0x6e0   :  { %5545 = vmatpush.msra.mxu2 %v10515_v25 }
 0x6e1   :  { %5622 = vmatpush.msra.mxu3 %v5621_v13  ;;  %v5656_v7 = vsub.f32 %v10566_v22, %v11051_v28 }
 0x6e2   :  { %5547 = vmatpush.msra.mxu2 %v10525_v3 }
 0x6e3   :  { %5628 = vmatpush.msra.mxu3 %v5627_v55  ;;  %v5657_v13 = vand.u32 4294901760, %v5656_v7 }
 0x6e4   :  { %5549 = vmatpush.msra.mxu2 %v10534_v34 }
 0x6e5   :  { %5634 = vmatpush.msra.mxu3 %v5633_v12 }
 0x6e6   :  { %5551 = vmatpush.msra.mxu2 %v10542_v4 }
 0x6e7   :  { %5640 = vmatpush.msra.mxu3 %v5639_v32 }
 0x6e8   :  { %5553 = vmatpush.msra.mxu2 %v10555_v58 }
 0x6e9   :  { %5646 = vmatpush.msra.mxu3 %v5645_v63 }
 0x6eb   :  { %5652 = vmatpush.msra.mxu3 %v5651_v8 }
 0x6ed   :  { %5658 = vmatpush.msra.mxu3 %v5657_v13 }
 0x720   :  { %v4997_v12 = vpop.f32.mrf.mxu0 }
 0x722   :  { %v5036_v44 = vpop.f32.mrf.mxu1 }
 0x724   :  { %v4943_v55 = vpop.f32.mrf.mxu3 }
 0x72c   :  { %v4842_v27 = vpop.f32.mrf.mxu2  ;;  %v5142_v7 = vpop.f32.mrf.mxu3 }
 0x72d   :  { %v4843_v18 = vadd.f32 %v4842_v27, %v4803_v39  ;;  %v5877_v27 = vld [vmem:[%s11039_s5 + $0x30] sm:$0xff] }
 0x72f   :  { %v4944_v43 = vadd.f32 %v4943_v55, %v4843_v18 }
 0x731   :  { %v4998_v32 = vadd.f32 %v4997_v12, %v4944_v43 }
 0x733   :  { %v5037_v31 = vadd.f32 %v5036_v44, %v4998_v32  ;;  %v10808_v44 = vand.u32 4294901760, %v5877_v27 }
 0x734   :  { %v5105_v28 = vpop.f32.mrf.mxu2 }
 0x735   :  { %v5106_v63 = vadd.f32 %v5105_v28, %v5037_v31  ;;  %v5876_v31 = vld [vmem:[%s11039_s5 + $0x28] sm:$0xff] }
 0x737   :  { %v5143_v8 = vadd.f32 %v5142_v7, %v5106_v63 }
 0x739   :  { %v5145_v13 = vmax.f32 %v5143_v8, 0.0 }
 0x73b   :  { %v10581_v54 = vand.u32 4294901760, %v5145_v13 }
 0x73d   :  { %v10584_v62 = vsub.f32 %v5145_v13, %v10581_v54  ;;  %5319 = vmatmul.f32.vlgmr.msrb.gmra.mxu1 %v10581_v54  ;;  %v10818_v13 = vand.u32 4294901760, %v5876_v31 }
 0x73e   :  { %5719 = vmatpush.msrb.mxu1 %v10415_v30 }
 0x73f   :  { %5373 = vmatmul.f32.vlgmr.msrb.gmra.mxu2 %v10584_v62  ;;  %v10590_v39 = vand.u32 4294901760, %v10584_v62 }
 0x740   :  { %5721 = vmatpush.msrb.mxu1 %v10421_v20  ;;  %5760 = vmatpush.msrb.mxu2 %v5565_v19  ;;  %v5886_v19 = vld [vmem:[%s11039_s5 + $0x78] sm:$0xff] }
 0x741   :  { %5412 = vmatmul.f32.vlgmr.msrb.gmra.mxu3 %v10590_v39  ;;  %v5216_v28 = vsub.f32 %v10584_v62, %v10590_v39 }
 0x742   :  { %5723 = vmatpush.msrb.mxu1 %v10425_v29  ;;  %5764 = vmatpush.msrb.mxu2 %v5571_v1 }
 0x743   :  { %5827 = vmatpush.msrb.mxu3 %v10415_v30  ;;  %v5217_v55 = vand.u32 4294901760, %v5216_v28  ;;  %v11063_v30 = vand.u32 4294901760, %v10545_v17  ;;  %v5875_v28 = vld [vmem:[%s11039_s5 + $0x20] sm:$0xff] }
 0x744   :  { %5725 = vmatpush.msrb.mxu1 %v10435_v59  ;;  %5768 = vmatpush.msrb.mxu2 %v5577_v23 }
 0x745   :  { %5829 = vmatpush.msrb.mxu3 %v10421_v20  ;;  %5218 = vmatmul.f32.vlgmr.msrb.gmra.mxu0 %v5217_v55  ;;  %v11065_v20 = vand.u32 4294901760, %v10566_v22 }
 0x746   :  { %5518 = vmatmul.f32.vlgmr.msra.gmra.mxu1 %v10581_v54  ;;  %5666 = vmatpush.msrb.mxu0 %v10419_v46  ;;  %v11064_v46 = vand.u32 4294901760, %v10558_v56 }
 0x747   :  { %5727 = vmatpush.msrb.mxu1 %v10445_v51  ;;  %5772 = vmatpush.msrb.mxu2 %v5583_v49 }
 0x748   :  { %5831 = vmatpush.msrb.mxu3 %v10425_v29  ;;  %5559 = vmatmul.f32.vlgmr.msra.gmra.mxu2 %v5217_v55  ;;  %v10684_v29 = vand.u32 4294901760, %v5886_v19 }
 0x749   :  { %5669 = vmatpush.msrb.mxu0 %v10428_v60  ;;  %5729 = vmatpush.msrb.mxu1 %v10454_v15  ;;  %v5885_v60 = vld [vmem:[%s11039_s5 + $0x70] sm:$0xff] }
 0x74a   :  { %5776 = vmatpush.msrb.mxu2 %v5589_v53  ;;  %5833 = vmatpush.msrb.mxu3 %v10435_v59  ;;  %v10690_v1 = vsub.f32 %v5886_v19, %v10684_v29  ;;  %v10692_v59 = vand.u32 4294901760, %v5885_v60 }
 0x74b   :  { %5660 = vmatmul.f32.vlgmr.msra.gmra.mxu3 %v10581_v54  ;;  %5672 = vmatpush.msrb.mxu0 %v10438_v40  ;;  %v5884_v40 = vld [vmem:[%s11039_s5 + $0x68] sm:$0xff] }
 0x74c   :  { %5731 = vmatpush.msrb.mxu1 %v10462_v42  ;;  %5780 = vmatpush.msrb.mxu2 %v5595_v50  ;;  %v5932_v23 = vand.u32 4294901760, %v10690_v1 }
 0x74d   :  { %5835 = vmatpush.msrb.mxu3 %v10445_v51  ;;  %5675 = vmatpush.msrb.mxu0 %v10448_v61  ;;  %v10701_v51 = vsub.f32 %v5885_v60, %v10692_v59  ;;  %v10703_v61 = vand.u32 4294901760, %v5884_v40  ;;  %v5874_v60 = vld [vmem:[%s11039_s5 + $0x18] sm:$0xff] }
 0x74e   :  { %5733 = vmatpush.msrb.mxu1 %v10475_v41  ;;  %5784 = vmatpush.msrb.mxu2 %v5601_v21 }
 0x74f   :  { %5837 = vmatpush.msrb.mxu3 %v10454_v15  ;;  %5481 = vmatmul.f32.vlgmr.msra.gmra.mxu0 %v10581_v54  ;;  %v5883_v15 = vld [vmem:[%s11039_s5 + $0x60] sm:$0xff]  ;;  %v5938_v49 = vand.u32 4294901760, %v10701_v51  ;;  %v10716_v53 = vsub.f32 %v5884_v40, %v10703_v61 }
 0x750   :  { %5678 = vmatpush.msrb.mxu0 %v10457_v38  ;;  %5735 = vmatpush.msrb.mxu1 %v10485_v57  ;;  %v5933_v38 = vsub.f32 %v10690_v1, %v5932_v23 }
 0x751   :  { %5788 = vmatpush.msrb.mxu2 %v5607_v6  ;;  %5839 = vmatpush.msrb.mxu3 %v10462_v42  ;;  %v10718_v42 = vand.u32 4294901760, %v5883_v15 }
 0x752   :  { %5681 = vmatpush.msrb.mxu0 %v10465_v48  ;;  %5737 = vmatpush.msrb.mxu1 %v10494_v14  ;;  %v5882_v48 = vld [vmem:[%s11039_s5 + $0x58] sm:$0xff]  ;;  %v5934_v50 = vand.u32 4294901760, %v5933_v38 }
 0x753   :  { %5792 = vmatpush.msrb.mxu2 %v5613_v16  ;;  %5841 = vmatpush.msrb.mxu3 %v10475_v41  ;;  %v5939_v41 = vsub.f32 %v10701_v51, %v5938_v49  ;;  %v10731_v21 = vsub.f32 %v5883_v15, %v10718_v42 }
 0x754   :  { %5684 = vmatpush.msrb.mxu0 %v10478_v52  ;;  %5739 = vmatpush.msrb.mxu1 %v10502_v0  ;;  %v5944_v52 = vand.u32 4294901760, %v10716_v53 }
 0x755   :  { %5796 = vmatpush.msrb.mxu2 %v5619_v11  ;;  %5843 = vmatpush.msrb.mxu3 %v10485_v57  ;;  %v10735_v57 = vand.u32 4294901760, %v5882_v48  ;;  %v5950_v6 = vand.u32 4294901760, %v10731_v21 }
 0x756   :  { %5687 = vmatpush.msrb.mxu0 %v10488_v24  ;;  %5741 = vmatpush.msrb.mxu1 %v10515_v25  ;;  %v5881_v24 = vld [vmem:[%s11039_s5 + $0x50] sm:$0xff] }
 0x757   :  { %5800 = vmatpush.msrb.mxu2 %v5625_v35  ;;  %5845 = vmatpush.msrb.mxu3 %v10494_v14  ;;  %v5940_v14 = vand.u32 4294901760, %v5939_v41  ;;  %v10745_v16 = vand.u32 4294901760, %v5881_v24  ;;  %v5873_v41 = vld [vmem:[%s11039_s5 + $0x10] sm:$0xff] }
 0x758   :  { %5690 = vmatpush.msrb.mxu0 %v10497_v45  ;;  %5743 = vmatpush.msrb.mxu1 %v10525_v3  ;;  %v5945_v45 = vsub.f32 %v10716_v53, %v5944_v52 }
 0x759   :  { %5804 = vmatpush.msrb.mxu2 %v5631_v9  ;;  %5847 = vmatpush.msrb.mxu3 %v10502_v0  ;;  %v10749_v0 = vsub.f32 %v5882_v48, %v10735_v57  ;;  %v10848_v48 = vand.u32 4294901760, %v5874_v60 }
 0x75a   :  { %5693 = vmatpush.msrb.mxu0 %v10505_v47  ;;  %5745 = vmatpush.msrb.mxu1 %v10534_v34  ;;  %v5880_v47 = vld [vmem:[%s11039_s5 + $0x48] sm:$0xff]  ;;  %v5946_v11 = vand.u32 4294901760, %v5945_v45 }
 0x75b   :  { %5808 = vmatpush.msrb.mxu2 %v5637_v5  ;;  %5849 = vmatpush.msrb.mxu3 %v10515_v25  ;;  %v5951_v25 = vsub.f32 %v10731_v21, %v5950_v6  ;;  %v10762_v35 = vand.u32 4294901760, %v5880_v47  ;;  %v10864_v45 = vsub.f32 %v5874_v60, %v10848_v48 }
 0x75c   :  { %5696 = vmatpush.msrb.mxu0 %v10518_v26  ;;  %5747 = vmatpush.msrb.mxu1 %v10542_v4  ;;  %v10760_v26 = vsub.f32 %v5881_v24, %v10745_v16 }
 0x75d   :  { %5812 = vmatpush.msrb.mxu2 %v11063_v30  ;;  %5851 = vmatpush.msrb.mxu3 %v10525_v3  ;;  %v5956_v3 = vand.u32 4294901760, %v10749_v0  ;;  %v10772_v9 = vsub.f32 %v5880_v47, %v10762_v35  ;;  %v10866_v47 = vand.u32 4294901760, %v5873_v41 }
 0x75e   :  { %5699 = vmatpush.msrb.mxu0 %v10528_v10  ;;  %5749 = vmatpush.msrb.mxu1 %v10555_v58  ;;  %v5879_v10 = vld [vmem:[%s11039_s5 + $0x40] sm:$0xff] }
 0x75f   :  { %5816 = vmatpush.msrb.mxu2 %v11064_v46  ;;  %5853 = vmatpush.msrb.mxu3 %v10534_v34  ;;  %v5952_v34 = vand.u32 4294901760, %v5951_v25  ;;  %v10774_v5 = vand.u32 4294901760, %v5879_v10  ;;  %v10833_v46 = vsub.f32 %v5876_v31, %v10818_v13  ;;  %v5872_v25 = vld [vmem:[%s11039_s5 + $0x8] sm:$0xff] }
 0x760   :  { %5753 = vmatmul.f32.vlgmr.msrb.gmra.mxu1 %v10590_v39  ;;  %5702 = vmatpush.msrb.mxu0 %v10537_v2  ;;  %v5962_v2 = vand.u32 4294901760, %v10760_v26  ;;  %v10823_v39 = vsub.f32 %v5877_v27, %v10808_v44 }
 0x761   :  { %5820 = vmatpush.msrb.mxu2 %v11065_v20  ;;  %5855 = vmatpush.msrb.mxu3 %v10542_v4  ;;  %v5957_v4 = vsub.f32 %v10749_v0, %v5956_v3  ;;  %v10835_v20 = vand.u32 4294901760, %v5875_v28  ;;  %v5992_v15 = vand.u32 4294901760, %v10833_v46 }
 0x762   :  { %5822 = vmatmul.f32.vlgmr.msrb.gmra.mxu2 %v10581_v54  ;;  %5705 = vmatpush.msrb.mxu0 %v10545_v17  ;;  %v5878_v17 = vld [vmem:[%s11039_s5 + $0x38] sm:$0xff]  ;;  %v5986_v19 = vand.u32 4294901760, %v10823_v39 }
 0x763   :  { %5857 = vmatpush.msrb.mxu3 %v10555_v58  ;;  %6033 = vmatpush.msra.mxu2 %v10690_v1  ;;  %v5968_v58 = vand.u32 4294901760, %v10772_v9  ;;  %v10846_v38 = vsub.f32 %v5875_v28, %v10835_v20  ;;  %v5993_v24 = vsub.f32 %v10833_v46, %v5992_v15  ;;  %v5179_v1 = vperm.slane %v10578_v33, 2 }
 0x764   :  { %5859 = vmatmul.f32.vlgmr.msrb.gmra.mxu3 %v10581_v54  ;;  %5708 = vmatpush.msrb.mxu0 %v10558_v56  ;;  %v10790_v56 = vsub.f32 %v5879_v10, %v10774_v5  ;;  %v10792_v54 = vand.u32 4294901760, %v5878_v17 }
 0x765   :  { %6086 = vmatpush.msra.mxu3 %v10684_v29  ;;  %6036 = vmatpush.msra.mxu2 %v10701_v51  ;;  %v5969_v43 = vsub.f32 %v10772_v9, %v5968_v58  ;;  %v5994_v10 = vand.u32 4294901760, %v5993_v24 }
 0x766   :  { %5711 = vmatpush.msrb.mxu0 %v10566_v22  ;;  %5935 = vmatpush.msra.mxu1 %v5934_v50  ;;  %v5958_v22 = vand.u32 4294901760, %v5957_v4  ;;  %v5974_v12 = vand.u32 4294901760, %v10790_v56  ;;  %v10805_v32 = vsub.f32 %v5878_v17, %v10792_v54  ;;  %v5987_v50 = vsub.f32 %v10823_v39, %v5986_v19 }
 0x767   :  { %5714 = vmatmul.f32.vlgmr.msrb.gmra.mxu0 %v10584_v62  ;;  %6088 = vmatpush.msra.mxu3 %v10692_v59  ;;  %v5963_v62 = vsub.f32 %v10760_v26, %v5962_v2  ;;  %v5970_v63 = vand.u32 4294901760, %v5969_v43  ;;  %v6004_v4 = vand.u32 4294901760, %v10864_v45  ;;  %v10879_v17 = vsub.f32 %v5873_v41, %v10866_v47 }
 0x768   :  { %5890 = vmatpush.msra.mxu0 %v10684_v29  ;;  %6039 = vmatpush.msra.mxu2 %v10716_v53  ;;  %v5975_v7 = vsub.f32 %v10790_v56, %v5974_v12  ;;  %v5980_v8 = vand.u32 4294901760, %v10805_v32 }
 0x769   :  { %6090 = vmatpush.msra.mxu3 %v10703_v61  ;;  %5941 = vmatpush.msra.mxu1 %v5940_v14  ;;  %v5964_v18 = vand.u32 4294901760, %v5963_v62  ;;  %v5998_v14 = vand.u32 4294901760, %v10846_v38  ;;  %v10883_v62 = vand.u32 4294901760, %v5872_v25  ;;  %v6010_v43 = vand.u32 4294901760, %v10879_v17 }
 0x76a   :  { %5892 = vmatpush.msra.mxu0 %v10692_v59  ;;  %6042 = vmatpush.msra.mxu2 %v10731_v21  ;;  %v5976_v55 = vand.u32 4294901760, %v5975_v7  ;;  %v5981_v30 = vsub.f32 %v10805_v32, %v5980_v8 }
 0x76b   :  { %6092 = vmatpush.msra.mxu3 %v10718_v42  ;;  %5947 = vmatpush.msra.mxu1 %v5946_v11  ;;  %v5988_v11 = vand.u32 4294901760, %v5987_v50  ;;  %v6011_v28 = vsub.f32 %v10879_v17, %v6010_v43 }
 0x76c   :  { %5894 = vmatpush.msra.mxu0 %v10703_v61  ;;  %6045 = vmatpush.msra.mxu2 %v10749_v0  ;;  %v5982_v40 = vand.u32 4294901760, %v5981_v30 }
 0x76d   :  { %6094 = vmatpush.msra.mxu3 %v10735_v57  ;;  %5953 = vmatpush.msra.mxu1 %v5952_v34  ;;  %v5999_v34 = vsub.f32 %v10846_v38, %v5998_v14  ;;  %v6012_v60 = vand.u32 4294901760, %v6011_v28 }
 0x76e   :  { %5896 = vmatpush.msra.mxu0 %v10718_v42  ;;  %6048 = vmatpush.msra.mxu2 %v10760_v26 }
 0x76f   :  { %6096 = vmatpush.msra.mxu3 %v10745_v16  ;;  %5959 = vmatpush.msra.mxu1 %v5958_v22  ;;  %v5871_v22 = vld [vmem:[%s11039_s5] sm:$0xff]  ;;  %v6000_v27 = vand.u32 4294901760, %v5999_v34 }
 0x770   :  { %5898 = vmatpush.msra.mxu0 %v10735_v57  ;;  %6051 = vmatpush.msra.mxu2 %v10772_v9  ;;  %v10893_v31 = vand.u32 4294901760, %v5871_v22 }
 0x771   :  { %6098 = vmatpush.msra.mxu3 %v10762_v35  ;;  %5965 = vmatpush.msra.mxu1 %v5964_v18  ;;  %v6005_v18 = vsub.f32 %v10864_v45, %v6004_v4 }
 0x772   :  { %5900 = vmatpush.msra.mxu0 %v10745_v16  ;;  %6054 = vmatpush.msra.mxu2 %v10790_v56 }
 0x773   :  { %6100 = vmatpush.msra.mxu3 %v10774_v5  ;;  %5971 = vmatpush.msra.mxu1 %v5970_v63  ;;  %v6015_v63 = vsub.f32 %v5872_v25, %v10883_v62  ;;  %v6006_v7 = vand.u32 4294901760, %v6005_v18 }
 0x774   :  { %5902 = vmatpush.msra.mxu0 %v10762_v35  ;;  %6057 = vmatpush.msra.mxu2 %v10805_v32 }
 0x775   :  { %6102 = vmatpush.msra.mxu3 %v10792_v54  ;;  %5977 = vmatpush.msra.mxu1 %v5976_v55  ;;  %v6021_v55 = vsub.f32 %v5871_v22, %v10893_v31  ;;  %v6016_v30 = vand.u32 4294901760, %v6015_v63 }
 0x776   :  { %5904 = vmatpush.msra.mxu0 %v10774_v5  ;;  %6060 = vmatpush.msra.mxu2 %v10823_v39 }
 0x777   :  { %6104 = vmatpush.msra.mxu3 %v10808_v44  ;;  %5983 = vmatpush.msra.mxu1 %v5982_v40  ;;  %v6022_v40 = vand.u32 4294901760, %v6021_v55  ;;  %v6017_v50 = vsub.f32 %v6015_v63, %v6016_v30 }
 0x778   :  { %5906 = vmatpush.msra.mxu0 %v10792_v54  ;;  %6063 = vmatpush.msra.mxu2 %v10833_v46 }
 0x779   :  { %6106 = vmatpush.msra.mxu3 %v10818_v13  ;;  %5989 = vmatpush.msra.mxu1 %v5988_v11  ;;  %v6023_v41 = vsub.f32 %v6021_v55, %v6022_v40  ;;  %v6018_v24 = vand.u32 4294901760, %v6017_v50 }
 0x77a   :  { %5908 = vmatpush.msra.mxu0 %v10808_v44  ;;  %6066 = vmatpush.msra.mxu2 %v10846_v38 }
 0x77b   :  { %6108 = vmatpush.msra.mxu3 %v10835_v20  ;;  %5995 = vmatpush.msra.mxu1 %v5994_v10  ;;  %v6024_v11 = vand.u32 4294901760, %v6023_v41 }
 0x77c   :  { %5910 = vmatpush.msra.mxu0 %v10818_v13  ;;  %6069 = vmatpush.msra.mxu2 %v10864_v45 }
 0x77d   :  { %6110 = vmatpush.msra.mxu3 %v10848_v48  ;;  %6001 = vmatpush.msra.mxu1 %v6000_v27 }
 0x77e   :  { %5912 = vmatpush.msra.mxu0 %v10835_v20  ;;  %6072 = vmatpush.msra.mxu2 %v10879_v17  ;;  %v6241_v17 = vld [vmem:[%s11040_s6 + $0x20] sm:$0xff] }
 0x77f   :  { %6112 = vmatpush.msra.mxu3 %v10866_v47  ;;  %6007 = vmatpush.msra.mxu1 %v6006_v7 }
 0x780   :  { %5914 = vmatpush.msra.mxu0 %v10848_v48  ;;  %6075 = vmatpush.msra.mxu2 %v6015_v63 }
 0x781   :  { %6114 = vmatpush.msra.mxu3 %v10883_v62  ;;  %6013 = vmatpush.msra.mxu1 %v6012_v60 }
 0x782   :  { %5916 = vmatpush.msra.mxu0 %v10866_v47  ;;  %6078 = vmatpush.msra.mxu2 %v6021_v55 }
 0x783   :  { %6116 = vmatpush.msra.mxu3 %v10893_v31  ;;  %6019 = vmatpush.msra.mxu1 %v6018_v24 }
 0x784   :  { %5918 = vmatpush.msra.mxu0 %v10883_v62 }
 0x785   :  { %6025 = vmatpush.msra.mxu1 %v6024_v11 }
 0x786   :  { %5920 = vmatpush.msra.mxu0 %v10893_v31 }
 0x787   :  { %6194 = vmatpush.msrb.mxu1 %v10684_v29 }
 0x788   :  { %6127 = vmatpush.msrb.mxu0 %v5932_v23 }
 0x789   :  { %6196 = vmatpush.msrb.mxu1 %v10692_v59 }
 0x78a   :  { %6131 = vmatpush.msrb.mxu0 %v5938_v49 }
 0x78b   :  { %6198 = vmatpush.msrb.mxu1 %v10703_v61 }
 0x78c   :  { %6135 = vmatpush.msrb.mxu0 %v5944_v52 }
 0x78d   :  { %6200 = vmatpush.msrb.mxu1 %v10718_v42 }
 0x78e   :  { %6139 = vmatpush.msrb.mxu0 %v5950_v6 }
 0x78f   :  { %6202 = vmatpush.msrb.mxu1 %v10735_v57 }
 0x790   :  { %6143 = vmatpush.msrb.mxu0 %v5956_v3 }
 0x791   :  { %6204 = vmatpush.msrb.mxu1 %v10745_v16  ;;  %v6515_v16 = vld [vmem:[%s11038_s4 + $0x38] sm:$0xff] }
 0x792   :  { %6147 = vmatpush.msrb.mxu0 %v5962_v2  ;;  %v5180_v26 = vperm.slane %v6515_v16, 2 }
 0x793   :  { %6206 = vmatpush.msrb.mxu1 %v10762_v35 }
 0x794   :  { %6151 = vmatpush.msrb.mxu0 %v5968_v58 }
 0x795   :  { %6208 = vmatpush.msrb.mxu1 %v10774_v5 }
 0x796   :  { %6155 = vmatpush.msrb.mxu0 %v5974_v12 }
 0x797   :  { %6210 = vmatpush.msrb.mxu1 %v10792_v54 }
 0x798   :  { %6159 = vmatpush.msrb.mxu0 %v5980_v8 }
 0x799   :  { %6212 = vmatpush.msrb.mxu1 %v10808_v44 }
 0x79a   :  { %6163 = vmatpush.msrb.mxu0 %v5986_v19 }
 0x79b   :  { %6214 = vmatpush.msrb.mxu1 %v10818_v13 }
 0x79c   :  { %6167 = vmatpush.msrb.mxu0 %v5992_v15 }
 0x79d   :  { %6216 = vmatpush.msrb.mxu1 %v10835_v20  ;;  %v5868_v20 = vperm.slane %v10578_v33, 4  ;;  %v6243_v33 = vld [vmem:[%s11040_s6 + $0x30] sm:$0xff] }
 0x79e   :  { %6171 = vmatpush.msrb.mxu0 %v5998_v14  ;;  %v10969_v34 = vand.u32 4294901760, %v6243_v33 }
 0x79f   :  { %6218 = vmatpush.msrb.mxu1 %v10848_v48 }
 0x7a0   :  { %6175 = vmatpush.msrb.mxu0 %v6004_v4  ;;  %v10982_v27 = vsub.f32 %v6243_v33, %v10969_v34 }
 0x7a1   :  { %6220 = vmatpush.msrb.mxu1 %v10866_v47 }
 0x7a2   :  { %6179 = vmatpush.msrb.mxu0 %v6010_v43  ;;  %v6298_v63 = vand.u32 4294901760, %v10982_v27 }
 0x7a3   :  { %6222 = vmatpush.msrb.mxu1 %v10883_v62  ;;  %v10976_v62 = vand.u32 4294901760, %v6241_v17 }
 0x7a4   :  { %6183 = vmatpush.msrb.mxu0 %v6016_v30  ;;  %v6299_v30 = vsub.f32 %v10982_v27, %v6298_v63 }
 0x7a5   :  { %6224 = vmatpush.msrb.mxu1 %v10893_v31  ;;  %v10990_v43 = vsub.f32 %v6241_v17, %v10976_v62 }
 0x7a6   :  { %6187 = vmatpush.msrb.mxu0 %v6022_v40  ;;  %v6300_v50 = vand.u32 4294901760, %v6299_v30 }
 0x7a7   :  { %v6310_v28 = vand.u32 4294901760, %v10990_v43 }
 0x7a9   :  { %v6311_v41 = vsub.f32 %v10990_v43, %v6310_v28 }
 0x7ab   :  { %v6312_v11 = vand.u32 4294901760, %v6311_v41 }
 0x7ba   :  { %v5320_v49 = vpop.f32.mrf.mxu1 }
 0x7c2   :  { %v5219_v23 = vpop.f32.mrf.mxu0  ;;  %v5374_v52 = vpop.f32.mrf.mxu2 }
 0x7c3   :  { %v5220_v51 = vadd.f32 %v5219_v23, %v5179_v1  ;;  %v5519_v57 = vpop.f32.mrf.mxu1  ;;  %v6524_v1 = vld [vmem:[%s11039_s5 + $0x80] ss:$0 sm:$0xff] }
 0x7c4   :  { %v5413_v21 = vpop.f32.mrf.mxu3 }
 0x7c5   :  { %v5321_v53 = vadd.f32 %v5320_v49, %v5220_v51 }
 0x7c7   :  { %v5375_v29 = vadd.f32 %v5374_v52, %v5321_v53 }
 0x7c9   :  { %v5414_v59 = vadd.f32 %v5413_v21, %v5375_v29 }
 0x7cb   :  { %v5560_v35 = vpop.f32.mrf.mxu2 }
 0x7cc   :  { %v5482_v61 = vpop.f32.mrf.mxu0  ;;  %v5561_v2 = vadd.f32 %v5560_v35, %v5180_v26  ;;  %v6239_v35 = vld [vmem:[%s11040_s6 + $0x10] sm:$0xff] }
 0x7cd   :  { %v5483_v42 = vadd.f32 %v5482_v61, %v5414_v59 }
 0x7ce   :  { %v5661_v9 = vpop.f32.mrf.mxu3 }
 0x7cf   :  { %v5520_v6 = vadd.f32 %v5519_v57, %v5483_v42  ;;  %v5662_v5 = vadd.f32 %v5661_v9, %v5561_v2  ;;  %v6267_v2 = vand.u32 4294901760, %v6239_v35  ;;  %v6238_v9 = vld [vmem:[%s11040_s6 + $0x8] sm:$0xff] }
 0x7d1   :  { %6537 = vtanh.f32 %v5520_v6 }
 0x7d7   :  { %v6538_v0 = vpop.eup %6537 }
 0x7d8   :  { %v5864_v3 = vmul.f32 1.442695, %v6538_v0  ;;  %v6240_v0 = vld [vmem:[%s11040_s6 + $0x18] sm:$0xff] }
 0x7d9   :  { %v6265_v26 = vand.u32 4294901760, %v6240_v0 }
 0x7da   :  { %6539 = vpow2.f32 %v5864_v3 }
 0x7db   :  { %v6315_v3 = vsub.f32 %v6240_v0, %v6265_v26 }
 0x7dd   :  { %v5754_v54 = vpop.f32.mrf.mxu1 }
 0x7e0   :  { %v6540_v32 = vpop.eup %6539 }
 0x7e1   :  { %v5866_v46 = vmul.f32 %v6540_v32, %v9987_v36  ;;  %v6244_v36 = vld [vmem:[%s11040_s6 + $0x38] sm:$0xff] }
 0x7e2   :  { %v10967_v10 = vand.u32 4294901760, %v6244_v36 }
 0x7e4   :  { %v5715_v58 = vpop.f32.mrf.mxu0  ;;  %v10979_v22 = vsub.f32 %v6244_v36, %v10967_v10  ;;  %6258 = vmatpush.msrb.mxu2 %v10967_v10 }
 0x7e5   :  { %v5716_v56 = vadd.f32 %v5715_v58, %v5662_v5  ;;  %v5823_v44 = vpop.f32.mrf.mxu2  ;;  %v6316_v5 = vand.u32 4294901760, %v6315_v3  ;;  %v6321_v58 = vsub.f32 %v6239_v35, %v6267_v2 }
 0x7e6   :  { %v6292_v31 = vand.u32 4294901760, %v10979_v22  ;;  %6260 = vmatpush.msrb.mxu2 %v10969_v34 }
 0x7e7   :  { %v5755_v12 = vadd.f32 %v5754_v54, %v5716_v56  ;;  %v5860_v13 = vpop.f32.mrf.mxu3  ;;  %v6269_v56 = vand.u32 4294901760, %v6238_v9  ;;  %v6237_v54 = vld [vmem:[%s11040_s6] sm:$0xff]  ;;  %v6322_v32 = vand.u32 4294901760, %v6321_v58 }
 0x7e8   :  { %v6293_v55 = vsub.f32 %v10979_v22, %v6292_v31 }
 0x7e9   :  { %v5824_v8 = vadd.f32 %v5823_v44, %v5755_v12  ;;  %v6317_v12 = vsub.f32 %v6315_v3, %v6316_v5  ;;  %v6327_v44 = vsub.f32 %v6238_v9, %v6269_v56 }
 0x7ea   :  { %v6294_v40 = vand.u32 4294901760, %v6293_v55 }
 0x7eb   :  { %v5861_v39 = vadd.f32 %v5860_v13, %v5824_v8  ;;  %v6271_v8 = vand.u32 4294901760, %v6237_v54  ;;  %v6318_v13 = vand.u32 4294901760, %v6317_v12 }
 0x7ec   :  { %6295 = vmatpush.msrb.mxu3 %v6294_v40 }
 0x7ed   :  { %v5867_v19 = vadd.f32 %v5866_v46, %v5861_v39  ;;  %v6323_v39 = vsub.f32 %v6321_v58, %v6322_v32  ;;  %v6328_v46 = vand.u32 4294901760, %v6327_v44 }
 0x7ee   :  { %6301 = vmatpush.msrb.mxu3 %v6300_v50 }
 0x7ef   :  { %v5869_v15 = vmul.f32 %v5868_v20, %v5867_v19  ;;  %v6333_v20 = vsub.f32 %v6237_v54, %v6271_v8  ;;  %v6324_v19 = vand.u32 4294901760, %v6323_v39 }
 0x7f1   :  { %v5870_v38 = vadd.f32 %v5869_v15, %v10001_v37  ;;  %v6242_v37 = vld [vmem:[%s11040_s6 + $0x28] sm:$0xff]  ;;  %v6329_v15 = vsub.f32 %v6327_v44, %v6328_v46  ;;  %s6659_s6 = smov [#allocation8]  }
 0x7f2   :  { %v10971_v4 = vand.u32 4294901760, %v6242_v37  ;;  %s6497_s15 = sshll.u32 %s6659_s6, 4  ;;  %s6498_s15 = int_to_ptr.vmem [resolvable:$true] %s6497_s15 }
 0x7f3   :  { %v5921_v48 = vand.u32 4294901760, %v5870_v38 }
 0x7f4   :  { %v10985_v18 = vsub.f32 %v6242_v37, %v10971_v4  ;;  %6262 = vmatpush.msrb.mxu2 %v10971_v4 }
 0x7f5   :  { %v5922_v14 = vsub.f32 %v5870_v38, %v5921_v48  ;;  %6027 = vmatmul.f32.vlgmr.msra.gmra.mxu1 %v5921_v48  ;;  %v6334_v38 = vand.u32 4294901760, %v6333_v20 }
 0x7f6   :  { %6466 = vmatpush.msra.mxu1 %v10967_v10  ;;  %v6304_v7 = vand.u32 4294901760, %v10985_v18  ;;  %6264 = vmatpush.msrb.mxu2 %v10976_v62 }
 0x7f7   :  { %6081 = vmatmul.f32.vlgmr.msra.gmra.mxu2 %v5922_v14  ;;  %v5923_v45 = vand.u32 4294901760, %v5922_v14 }
 0x7f8   :  { %6468 = vmatpush.msra.mxu1 %v10969_v34  ;;  %v6305_v60 = vsub.f32 %v10985_v18, %v6304_v7  ;;  %6266 = vmatpush.msrb.mxu2 %v6265_v26 }
 0x7f9   :  { %6120 = vmatmul.f32.vlgmr.msra.gmra.mxu3 %v5923_v45  ;;  %v5924_v47 = vsub.f32 %v5922_v14, %v5923_v45  ;;  %v6335_v14 = vsub.f32 %v6333_v20, %v6334_v38 }
 0x7fa   :  { %6470 = vmatpush.msra.mxu1 %v10971_v4  ;;  %v6306_v24 = vand.u32 4294901760, %v6305_v60  ;;  %6268 = vmatpush.msrb.mxu2 %v6267_v2 }
 0x7fb   :  { %v5925_v25 = vand.u32 4294901760, %v5924_v47  ;;  %v6336_v45 = vand.u32 4294901760, %v6335_v14 }
 0x7fc   :  { %6472 = vmatpush.msra.mxu1 %v10976_v62  ;;  %6307 = vmatpush.msrb.mxu3 %v6306_v24 }
 0x7fd   :  { %5926 = vmatmul.f32.vlgmr.msra.gmra.mxu0 %v5925_v25  ;;  %6226 = vmatmul.f32.vlgmr.msrb.gmra.mxu1 %v5921_v48 }
 0x7fe   :  { %6423 = vmatpush.msra.mxu0 %v6292_v31  ;;  %6313 = vmatpush.msrb.mxu3 %v6312_v11 }
 0x7ff   :  { %6474 = vmatpush.msra.mxu1 %v6265_v26  ;;  %6270 = vmatpush.msrb.mxu2 %v6269_v56 }
 0x800   :  { %6427 = vmatpush.msra.mxu0 %v6298_v63  ;;  %6319 = vmatpush.msrb.mxu3 %v6318_v13 }
 0x801   :  { %6476 = vmatpush.msra.mxu1 %v6267_v2  ;;  %6272 = vmatpush.msrb.mxu2 %v6271_v8 }
 0x802   :  { %6431 = vmatpush.msra.mxu0 %v6304_v7  ;;  %6325 = vmatpush.msrb.mxu3 %v6324_v19 }
 0x803   :  { %6478 = vmatpush.msra.mxu1 %v6269_v56  ;;  %6353 = vmatpush.msra.mxu2 %v10979_v22 }
 0x804   :  { %6435 = vmatpush.msra.mxu0 %v6310_v28 }
 0x805   :  { %6189 = vmatmul.f32.vlgmr.msrb.gmra.mxu0 %v5921_v48  ;;  %6480 = vmatpush.msra.mxu1 %v6271_v8  ;;  %v6330_v48 = vand.u32 4294901760, %v6329_v15 }
 0x806   :  { %6439 = vmatpush.msra.mxu0 %v6316_v5  ;;  %6356 = vmatpush.msra.mxu2 %v10982_v27 }
 0x807   :  { %6331 = vmatpush.msrb.mxu3 %v6330_v48 }
 0x808   :  { %6443 = vmatpush.msra.mxu0 %v6322_v32  ;;  %6359 = vmatpush.msra.mxu2 %v10985_v18 }
 0x809   :  { %6337 = vmatpush.msrb.mxu3 %v6336_v45 }
 0x80a   :  { %6447 = vmatpush.msra.mxu0 %v6328_v46  ;;  %6362 = vmatpush.msra.mxu2 %v10990_v43 }
 0x80b   :  { %6390 = vmatpush.msra.mxu3 %v10967_v10 }
 0x80c   :  { %6451 = vmatpush.msra.mxu0 %v6334_v38  ;;  %6365 = vmatpush.msra.mxu2 %v6315_v3 }
 0x80d   :  { %6392 = vmatpush.msra.mxu3 %v10969_v34 }
 0x80e   :  { %6368 = vmatpush.msra.mxu2 %v6321_v58 }
 0x80f   :  { %6394 = vmatpush.msra.mxu3 %v10971_v4 }
 0x810   :  { %6371 = vmatpush.msra.mxu2 %v6327_v44 }
 0x811   :  { %6396 = vmatpush.msra.mxu3 %v10976_v62 }
 0x812   :  { %6374 = vmatpush.msra.mxu2 %v6333_v20 }
 0x813   :  { %6398 = vmatpush.msra.mxu3 %v6265_v26 }
 0x815   :  { %6400 = vmatpush.msra.mxu3 %v6267_v2 }
 0x817   :  { %6402 = vmatpush.msra.mxu3 %v6269_v56 }
 0x819   :  { %6404 = vmatpush.msra.mxu3 %v6271_v8 }
 0x872   :  { %v6028_v23 = vpop.f32.mrf.mxu1 }
 0x87a   :  { %v5927_v51 = vpop.f32.mrf.mxu0  ;;  %v6082_v52 = vpop.f32.mrf.mxu2 }
 0x87b   :  { %v5928_v49 = vadd.f32 %v6524_v1, %v5927_v51  ;;  %v6227_v57 = vpop.f32.mrf.mxu1 }
 0x87c   :  { %v6121_v21 = vpop.f32.mrf.mxu3 }
 0x87d   :  { %v6029_v53 = vadd.f32 %v6028_v23, %v5928_v49 }
 0x87f   :  { %v6083_v29 = vadd.f32 %v6082_v52, %v6029_v53 }
 0x881   :  { %v6122_v59 = vadd.f32 %v6121_v21, %v6083_v29 }
 0x882   :  { %v6190_v61 = vpop.f32.mrf.mxu0 }
 0x883   :  { %v6191_v42 = vadd.f32 %v6190_v61, %v6122_v59 }
 0x885   :  { %v6228_v6 = vadd.f32 %v6227_v57, %v6191_v42 }
 0x887   :  { %v6231_v16 = vsel %vm6230_vm0, %v6228_v6, -inf }
 0x888   :  { %6232 = vmax.xlane.f32.xlu0 %v6231_v16 }
 0x8fb   :  { %v6233_v47 = vpop.xlane.xlu0 %6232 }
 0x8fc   :  { %v6234_v25 = vsub.f32 %v6228_v6, %v6233_v47 }
 0x8fe   :  { %v6235_v36 = vmul.f32 1.442695, %v6234_v25 }
 0x900   :  { %6541 = vpow2.f32 %v6235_v36 }
 0x906   :  { %v6542_v33 = vpop.eup %6541 }
 0x907   :  { %v6247_v37 = vsel %vm6245_vm1, %v6542_v33, 0 }
 0x908   :  { %v6273_v10 = vand.u32 4294901760, %v6247_v37 }
 0x90a   :  { %v6274_v34 = vsub.f32 %v6247_v37, %v6273_v10  ;;  %6339 = vmatmul.f32.vlgmr.msrb.gmra.mxu3 %v6273_v10  ;;  %6453 = vmatmul.f32.vlgmr.msra.gmra.mxu0 %v6273_v10 }
 0x90b   :  { %6482 = vmatmul.f32.vlgmr.msra.gmra.mxu1 %v6273_v10 }
 0x90c   :  { %v6275_v4 = vand.u32 4294901760, %v6274_v34 }
 0x90e   :  { %v6276_v17 = vsub.f32 %v6274_v34, %v6275_v4 }
 0x910   :  { %v6277_v62 = vand.u32 4294901760, %v6276_v17 }
 0x912   :  { %6278 = vmatmul.f32.vlgmr.msrb.gmra.mxu2 %v6277_v62  ;;  %6408 = vmatmul.f32.vlgmr.msra.gmra.mxu3 %v6275_v4 }
 0x91a   :  { %6377 = vmatmul.f32.vlgmr.msra.gmra.mxu2 %v6274_v34 }
 0x987   :  { %v6454_v28 = vpop.f32.mrf.mxu0 }
 0x988   :  { %v6483_v30 = vpop.f32.mrf.mxu1 }
 0x98d   :  { %v6340_v22 = vpop.f32.mrf.mxu3 }
 0x995   :  { %v6279_v27 = vpop.f32.mrf.mxu2  ;;  %v6409_v63 = vpop.f32.mrf.mxu3 }
 0x996   :  { %v6341_v18 = vadd.f32 %v6340_v22, %v6279_v27 }
 0x99d   :  { %v6378_v43 = vpop.f32.mrf.mxu2 }
 0x99e   :  { %v6379_v31 = vadd.f32 %v6378_v43, %v6341_v18 }
 0x9a0   :  { %v6410_v7 = vadd.f32 %v6409_v63, %v6379_v31 }
 0x9a2   :  { %v6455_v55 = vadd.f32 %v6454_v28, %v6410_v7 }
 0x9a4   :  { %v6484_v60 = vadd.f32 %v6483_v30, %v6455_v55 }
 0x9a6   :  { %6543 = vrcp.f32 %v6484_v60 }
 0x9ac   :  { %v6544_v40 = vpop.eup %6543 }
 0x9ad   :  { %v6487_v50 = vmul.f32 %v6544_v40, %v6484_v60 }
 0x9af   :  { %v6488_v41 = vsub.f32 2.0, %v6487_v50 }
 0x9b1   :  { %v6489_v24 = vmul.f32 %v6544_v40, %v6488_v41 }
 0x9b3   :  { %v6490_v11 = vmul.f32 %v6542_v33, %v6489_v24 }
 0x9b5   :  { %6491 = vst.msk [vmem:[#allocation8] sm:$0x3] %vm6230_vm0, %v6490_v11 }
 0x9b6   :  { %6502 = dma.vmem_to_hbm [thread:$0]  %s6498_s15, 32, %s6500_s17, [#allocation4]  }
 0x9b7   :  { %6650 = dma.done.wait [#allocation4], 32  }
 0x9b8   :  { %6651 = vsyncadd [#allocation4], 4294967264 }
 0x9b9   :  { %6507 = vsyncpa [#allocation3], 1 }
 0x9ba   :  { %6508 = vsyncpa [#allocation6], 1 }
 0x9bb   :  { %6509 = vsyncpa [#allocation4], 1 }

</bundles_post_ra>
